<compile_context>
chip_gen: v7x
topology: tpu7x:2x2x1
jax: 0.10.0
libtpu: 0.0.40
codegen_flags: <defaults>
</compile_context>

<pallas_src>
import jax
import jax.numpy as jnp
from jax.experimental import pallas as pl
from jax.experimental.pallas import tpu as pltpu

# Constants implied by the module
NUM_CLASSES = 4
WINDOW = 128               # num_win_samples * (samp_rate / 60) = 128
LP = WINDOW // 2           # length after MaxPool1d(2) = 64
C_IN = 6
C_HID = 64
K_CONV = 3
FC1_IN = 32 * WINDOW       # 4096 == C_HID * LP
FC1_OUT = 100
FC1_PAD = 128              # fc1 outputs padded to one full lane tile
BN_EPS = 1e-5
BLK = 8                    # samples per grid step (multiple of 8 sublanes)


def fused_kernel(a1_ref, w1_ref, b1_ref, s1_ref, t1_ref,
                 w2_ref, b2_ref, s2_ref, t2_ref,
                 w3_ref, bfc1_ref, wfc2_ref, bfc2_ref, o_ref):
    """Full Motion1DCNN forward for one batch block of BLK samples.

    All (rows, C_HID) intermediates use row = j*BLK + b (position-major), so
    per-position shifts are aligned sublane moves and fc1 consumes the
    channel-major torch flatten via a pre-permuted weight (no reshape on-chip).
    """
    blk = o_ref.shape[0]
    rows = a1_ref.shape[2]             # LP * blk
    lp = rows // blk

    w1 = w1_ref[...]                   # (18, 64) im2col conv1 weight

    def conv1_bn_relu(a):              # a: (rows, 18)
        h = jnp.dot(a, w1, preferred_element_type=jnp.float32) + b1_ref[...]
        return jnp.maximum(h * s1_ref[...] + t1_ref[...], 0.0)

    # conv1 at even / odd positions, MaxPool1d(2) is then a plain elementwise max.
    h_even = conv1_bn_relu(a1_ref[0, 0])
    h_odd = conv1_bn_relu(a1_ref[0, 1])
    p_c = jnp.maximum(h_even, h_odd)                              # (rows, 64)

    # conv2 (k=3, pad=1): the +-1 position taps are aligned shifts by BLK rows;
    # the zero block reproduces the conv zero padding at j=0 / j=LP-1.
    zero_blk = jnp.zeros((blk, p_c.shape[1]), jnp.float32)
    p_l = jnp.concatenate([zero_blk, p_c[:rows - blk]], axis=0)   # position j-1
    p_r = jnp.concatenate([p_c[blk:], zero_blk], axis=0)          # position j+1

    g = (jnp.dot(p_l, w2_ref[0], preferred_element_type=jnp.float32)
         + jnp.dot(p_c, w2_ref[1], preferred_element_type=jnp.float32)
         + jnp.dot(p_r, w2_ref[2], preferred_element_type=jnp.float32)
         + b2_ref[...])
    g = jnp.maximum(g * s2_ref[...] + t2_ref[...], 0.0)           # (rows, 64)
    # TODO(synk): Dropout(0.25) is the identity at inference; train-mode masking not implemented.

    # fc1: y[b, o] = sum_{j,c} g[(j,b), c] * w3[j, c, o]; w3 is pre-permuted so this
    # equals torch's channel-major flatten @ fc1.weight.T (padded to 128 outputs).
    acc = jnp.zeros((blk, FC1_PAD), jnp.float32)
    for j in range(lp):
        g_j = g[j * blk:(j + 1) * blk, :].astype(jnp.bfloat16)    # aligned (blk, 64)
        acc = acc + jnp.dot(g_j, w3_ref[j], preferred_element_type=jnp.float32)
    y = jnp.maximum(acc + bfc1_ref[...], 0.0)                     # (blk, 128)

    # fc2 (padded rows of wfc2 are zero, so padded fc1 lanes contribute nothing).
    o_ref[...] = (jnp.dot(y, wfc2_ref[...], preferred_element_type=jnp.float32)
                  + bfc2_ref[...])


@jax.jit
def motion_1dcnn_forward(x_ncl, params):
    B = x_ncl.shape[0]
    b_pad = -(-B // BLK) * BLK
    nblk = b_pad // BLK

    x = x_ncl.astype(jnp.float32)
    if b_pad != B:
        x = jnp.pad(x, ((0, b_pad - B), (0, 0), (0, 0)))

    # ---- glue: build the conv1 im2col with (position, sample)-major rows ----
    xl = jnp.transpose(x, (0, 2, 1))                          # NCL -> NLC (b_pad, 128, 6)
    xp = jnp.pad(xl, ((0, 0), (1, 1), (0, 0)))                # zero pad length by 1
    im = jnp.stack([xp[:, k:k + WINDOW, :] for k in range(K_CONV)], axis=2)
    im = im.reshape(b_pad, WINDOW, K_CONV * C_IN)             # feature = k*C_IN + cin
    im = im.reshape(nblk, BLK, LP, 2, K_CONV * C_IN)          # position = 2*j + parity
    im = jnp.transpose(im, (0, 3, 2, 1, 4))                   # [blk, parity, j, b, f]
    a1 = im.reshape(nblk, 2, LP * BLK, K_CONV * C_IN)         # row = j*BLK + b

    vec64 = pl.BlockSpec((1, C_HID), lambda i: (0, 0))
    out = pl.pallas_call(
        fused_kernel,
        out_shape=jax.ShapeDtypeStruct((b_pad, NUM_CLASSES), jnp.float32),
        grid=(nblk,),
        in_specs=[
            pl.BlockSpec((1, 2, LP * BLK, K_CONV * C_IN), lambda i: (i, 0, 0, 0)),
            pl.BlockSpec((K_CONV * C_IN, C_HID), lambda i: (0, 0)),     # w1 (im2col)
            vec64, vec64, vec64,                                        # b1, s1, t1
            pl.BlockSpec((K_CONV, C_HID, C_HID), lambda i: (0, 0, 0)),  # w2 taps
            vec64, vec64, vec64,                                        # b2, s2, t2
            pl.BlockSpec((LP, C_HID, FC1_PAD), lambda i: (0, 0, 0)),    # fc1 (bf16)
            pl.BlockSpec((1, FC1_PAD), lambda i: (0, 0)),               # b_fc1
            pl.BlockSpec((FC1_PAD, NUM_CLASSES), lambda i: (0, 0)),     # w_fc2
            pl.BlockSpec((1, NUM_CLASSES), lambda i: (0, 0)),           # b_fc2
        ],
        out_specs=pl.BlockSpec((BLK, NUM_CLASSES), lambda i: (i, 0)),
        compiler_params=pltpu.CompilerParams(
            dimension_semantics=("parallel",),
            vmem_limit_bytes=32 * 1024 * 1024),
    )(a1, params["w1"], params["b1"], params["s1"], params["t1"],
      params["w2"], params["b2"], params["s2"], params["t2"],
      params["w_fc1"], params["b_fc1"], params["w_fc2"], params["b_fc2"])
    return out[:B]


def init_params(key):
    """Deterministic synthetic parameters generated in PyTorch layout, then
    re-laid-out for the fused kernel (BN folded to per-channel scale/shift,
    conv1 in im2col form, fc1 pre-permuted / zero-padded and stored in bf16)."""
    ks = jax.random.split(key, 16)

    def normal(k, shape, scale):
        return scale * jax.random.normal(k, shape, jnp.float32)

    # PyTorch-shaped tensors
    w1_t = normal(ks[0], (C_HID, C_IN, K_CONV), 0.20)        # conv1.weight (out,in,k)
    b1_t = normal(ks[1], (C_HID,), 0.10)
    w2_t = normal(ks[2], (C_HID, C_HID, K_CONV), 0.05)       # conv2.weight
    b2_t = normal(ks[3], (C_HID,), 0.10)
    wfc1_t = normal(ks[4], (FC1_OUT, FC1_IN), 0.02)          # fc1.weight (out,in)
    bfc1_t = normal(ks[5], (FC1_OUT,), 0.10)
    wfc2_t = normal(ks[6], (NUM_CLASSES, FC1_OUT), 0.10)     # fc2.weight
    bfc2_t = normal(ks[7], (NUM_CLASSES,), 0.10)

    def bn_fold(kg, kb, km, kv):
        gamma = 1.0 + 0.1 * jax.random.normal(kg, (C_HID,), jnp.float32)
        beta = 0.1 * jax.random.normal(kb, (C_HID,), jnp.float32)
        mean = 0.1 * jax.random.normal(km, (C_HID,), jnp.float32)
        var = 1.0 + 0.1 * jnp.abs(jax.random.normal(kv, (C_HID,), jnp.float32))
        s = gamma / jnp.sqrt(var + BN_EPS)
        t = beta - mean * s
        return s, t

    s1, t1 = bn_fold(ks[8], ks[9], ks[10], ks[11])
    s2, t2 = bn_fold(ks[12], ks[13], ks[14], ks[15])

    # conv1 as one im2col GEMM weight: (k*C_IN, C_HID), feature index = k*C_IN + cin
    w1 = jnp.transpose(w1_t, (2, 1, 0)).reshape(K_CONV * C_IN, C_HID)
    # conv2 taps kept separate: (K, Cin, Cout)
    w2 = jnp.transpose(w2_t, (2, 1, 0))
    # fc1 pre-permuted for the on-chip (position, channel) layout and padded to 128
    # outputs:  w3[j, c, o] = fc1.weight[o, c*LP + j]   (bf16 halves the largest DMA)
    w3 = jnp.transpose(wfc1_t.reshape(FC1_OUT, C_HID, LP), (2, 1, 0))
    w3 = jnp.pad(w3, ((0, 0), (0, 0), (0, FC1_PAD - FC1_OUT))).astype(jnp.bfloat16)
    bfc1 = jnp.pad(bfc1_t, (0, FC1_PAD - FC1_OUT))[None, :]
    wfc2 = jnp.pad(wfc2_t.T, ((0, FC1_PAD - FC1_OUT), (0, 0)))          # (128, 4)

    return {
        "w1": w1,
        "b1": b1_t[None, :], "s1": s1[None, :], "t1": t1[None, :],
        "w2": w2,
        "b2": b2_t[None, :], "s2": s2[None, :], "t2": t2[None, :],
        "w_fc1": w3,
        "b_fc1": bfc1,
        "w_fc2": wfc2,
        "b_fc2": bfc2_t[None, :],
    }


if __name__ == "__main__":
    key = jax.random.PRNGKey(0)
    pkey, xkey = jax.random.split(key)
    params = init_params(pkey)

    B = 4
    x = jax.random.normal(xkey, (B, C_IN, WINDOW), jnp.float32)   # NCL, like PyTorch

    logits = jax.block_until_ready(motion_1dcnn_forward(x, params))

    assert logits.shape == (B, NUM_CLASSES), logits.shape
    assert bool(jnp.all(jnp.isfinite(logits)))
    print("KERNEL_OK")
</pallas_src>

<mosaic_0001>
module attributes {stable_mosaic.version = 11 : i64} {
  func.func @fused_kernel(%arg0: i32, %arg1: memref<1x2x512x18xf32, #tpu.memory_space<vmem>>, %arg2: memref<18x64xf32, #tpu.memory_space<vmem>>, %arg3: memref<1x64xf32, #tpu.memory_space<vmem>>, %arg4: memref<1x64xf32, #tpu.memory_space<vmem>>, %arg5: memref<1x64xf32, #tpu.memory_space<vmem>>, %arg6: memref<3x64x64xf32, #tpu.memory_space<vmem>>, %arg7: memref<1x64xf32, #tpu.memory_space<vmem>>, %arg8: memref<1x64xf32, #tpu.memory_space<vmem>>, %arg9: memref<1x64xf32, #tpu.memory_space<vmem>>, %arg10: memref<64x64x128xbf16, #tpu.memory_space<vmem>>, %arg11: memref<1x128xf32, #tpu.memory_space<vmem>>, %arg12: memref<128x4xf32, #tpu.memory_space<vmem>>, %arg13: memref<1x4xf32, #tpu.memory_space<vmem>>, %arg14: memref<8x4xf32, #tpu.memory_space<vmem>>) attributes {dimension_semantics = [#tpu.dimension_semantics<parallel>], iteration_bounds = array<i64: 1>, scalar_prefetch = 0 : i64, scratch_operands = 0 : i64, tpu.core_type = #tpu.core_type<tc>, window_params = [{transform_indices = @transform_0, window_bounds = array<i64: 1, 2, 512, 18>}, {pipeline_mode = #tpu.pipeline_mode<synchronous>, transform_indices = @transform_1, window_bounds = array<i64: 18, 64>}, {pipeline_mode = #tpu.pipeline_mode<synchronous>, transform_indices = @transform_2, window_bounds = array<i64: 1, 64>}, {pipeline_mode = #tpu.pipeline_mode<synchronous>, transform_indices = @transform_3, window_bounds = array<i64: 1, 64>}, {pipeline_mode = #tpu.pipeline_mode<synchronous>, transform_indices = @transform_4, window_bounds = array<i64: 1, 64>}, {pipeline_mode = #tpu.pipeline_mode<synchronous>, transform_indices = @transform_5, window_bounds = array<i64: 3, 64, 64>}, {pipeline_mode = #tpu.pipeline_mode<synchronous>, transform_indices = @transform_6, window_bounds = array<i64: 1, 64>}, {pipeline_mode = #tpu.pipeline_mode<synchronous>, transform_indices = @transform_7, window_bounds = array<i64: 1, 64>}, {pipeline_mode = #tpu.pipeline_mode<synchronous>, transform_indices = @transform_8, window_bounds = array<i64: 1, 64>}, {pipeline_mode = #tpu.pipeline_mode<synchronous>, transform_indices = @transform_9, window_bounds = array<i64: 64, 64, 128>}, {pipeline_mode = #tpu.pipeline_mode<synchronous>, transform_indices = @transform_10, window_bounds = array<i64: 1, 128>}, {pipeline_mode = #tpu.pipeline_mode<synchronous>, transform_indices = @transform_11, window_bounds = array<i64: 128, 4>}, {pipeline_mode = #tpu.pipeline_mode<synchronous>, transform_indices = @transform_12, window_bounds = array<i64: 1, 4>}, {transform_indices = @transform_13, window_bounds = array<i64: 8, 4>}]} {
    %c0 = arith.constant 0 : index
    %c0_0 = arith.constant 0 : index
    %0 = vector.load %arg2[%c0, %c0_0] : memref<18x64xf32, #tpu.memory_space<vmem>>, vector<18x64xf32>
    %c0_1 = arith.constant 0 : index
    %c0_2 = arith.constant 0 : index
    %c0_3 = arith.constant 0 : index
    %c0_4 = arith.constant 0 : index
    %1 = vector.load %arg1[%c0_1, %c0_2, %c0_3, %c0_4] : memref<1x2x512x18xf32, #tpu.memory_space<vmem>>, vector<1x1x512x18xf32>
    %2 = vector.shape_cast %1 : vector<1x1x512x18xf32> to vector<512x18xf32>
    %cst = arith.constant dense<0.000000e+00> : vector<512x64xf32>
    %3 = tpu.matmul %2, %0, %cst {dimension_numbers = #tpu.dot_dimension_numbers<[1], [0], [0], [1], [0, 0, 1, 1], [], []>} : vector<512x18xf32>, vector<18x64xf32>, vector<512x64xf32> -> vector<512x64xf32>
    %c0_5 = arith.constant 0 : index
    %c0_6 = arith.constant 0 : index
    %4 = vector.load %arg3[%c0_5, %c0_6] : memref<1x64xf32, #tpu.memory_space<vmem>>, vector<1x64xf32>
    %5 = vector.broadcast %4 : vector<1x64xf32> to vector<512x64xf32>
    %6 = arith.addf %3, %5 : vector<512x64xf32>
    %c0_7 = arith.constant 0 : index
    %c0_8 = arith.constant 0 : index
    %7 = vector.load %arg4[%c0_7, %c0_8] : memref<1x64xf32, #tpu.memory_space<vmem>>, vector<1x64xf32>
    %8 = vector.broadcast %7 : vector<1x64xf32> to vector<512x64xf32>
    %9 = arith.mulf %6, %8 : vector<512x64xf32>
    %c0_9 = arith.constant 0 : index
    %c0_10 = arith.constant 0 : index
    %10 = vector.load %arg5[%c0_9, %c0_10] : memref<1x64xf32, #tpu.memory_space<vmem>>, vector<1x64xf32>
    %11 = vector.broadcast %10 : vector<1x64xf32> to vector<512x64xf32>
    %12 = arith.addf %9, %11 : vector<512x64xf32>
    %cst_11 = arith.constant 0.000000e+00 : f32
    %13 = vector.broadcast %cst_11 : f32 to vector<512x64xf32>
    %14 = arith.maximumf %12, %13 : vector<512x64xf32>
    %c0_12 = arith.constant 0 : index
    %c1 = arith.constant 1 : index
    %c0_13 = arith.constant 0 : index
    %c0_14 = arith.constant 0 : index
    %15 = vector.load %arg1[%c0_12, %c1, %c0_13, %c0_14] : memref<1x2x512x18xf32, #tpu.memory_space<vmem>>, vector<1x1x512x18xf32>
    %16 = vector.shape_cast %15 : vector<1x1x512x18xf32> to vector<512x18xf32>
    %cst_15 = arith.constant dense<0.000000e+00> : vector<512x64xf32>
    %17 = tpu.matmul %16, %0, %cst_15 {dimension_numbers = #tpu.dot_dimension_numbers<[1], [0], [0], [1], [0, 0, 1, 1], [], []>} : vector<512x18xf32>, vector<18x64xf32>, vector<512x64xf32> -> vector<512x64xf32>
    %c0_16 = arith.constant 0 : index
    %c0_17 = arith.constant 0 : index
    %18 = vector.load %arg3[%c0_16, %c0_17] : memref<1x64xf32, #tpu.memory_space<vmem>>, vector<1x64xf32>
    %19 = vector.broadcast %18 : vector<1x64xf32> to vector<512x64xf32>
    %20 = arith.addf %17, %19 : vector<512x64xf32>
    %c0_18 = arith.constant 0 : index
    %c0_19 = arith.constant 0 : index
    %21 = vector.load %arg4[%c0_18, %c0_19] : memref<1x64xf32, #tpu.memory_space<vmem>>, vector<1x64xf32>
    %22 = vector.broadcast %21 : vector<1x64xf32> to vector<512x64xf32>
    %23 = arith.mulf %20, %22 : vector<512x64xf32>
    %c0_20 = arith.constant 0 : index
    %c0_21 = arith.constant 0 : index
    %24 = vector.load %arg5[%c0_20, %c0_21] : memref<1x64xf32, #tpu.memory_space<vmem>>, vector<1x64xf32>
    %25 = vector.broadcast %24 : vector<1x64xf32> to vector<512x64xf32>
    %26 = arith.addf %23, %25 : vector<512x64xf32>
    %cst_22 = arith.constant 0.000000e+00 : f32
    %27 = vector.broadcast %cst_22 : f32 to vector<512x64xf32>
    %28 = arith.maximumf %26, %27 : vector<512x64xf32>
    %29 = arith.maximumf %14, %28 : vector<512x64xf32>
    %cst_23 = arith.constant 0.000000e+00 : f32
    %30 = vector.broadcast %cst_23 : f32 to vector<8x64xf32>
    %31 = vector.extract_strided_slice %29 {offsets = [0, 0], sizes = [504, 64], strides = [1, 1]} : vector<512x64xf32> to vector<504x64xf32>
    %32 = tpu.concatenate %30, %31 in 0 : vector<8x64xf32>, vector<504x64xf32> -> vector<512x64xf32>
    %33 = vector.extract_strided_slice %29 {offsets = [8, 0], sizes = [504, 64], strides = [1, 1]} : vector<512x64xf32> to vector<504x64xf32>
    %34 = tpu.concatenate %33, %30 in 0 : vector<504x64xf32>, vector<8x64xf32> -> vector<512x64xf32>
    %c0_24 = arith.constant 0 : index
    %c0_25 = arith.constant 0 : index
    %c0_26 = arith.constant 0 : index
    %35 = vector.load %arg6[%c0_24, %c0_25, %c0_26] : memref<3x64x64xf32, #tpu.memory_space<vmem>>, vector<1x64x64xf32>
    %36 = vector.shape_cast %35 : vector<1x64x64xf32> to vector<64x64xf32>
    %cst_27 = arith.constant dense<0.000000e+00> : vector<512x64xf32>
    %37 = tpu.matmul %32, %36, %cst_27 {dimension_numbers = #tpu.dot_dimension_numbers<[1], [0], [0], [1], [0, 0, 1, 1], [], []>} : vector<512x64xf32>, vector<64x64xf32>, vector<512x64xf32> -> vector<512x64xf32>
    %c1_28 = arith.constant 1 : index
    %c0_29 = arith.constant 0 : index
    %c0_30 = arith.constant 0 : index
    %38 = vector.load %arg6[%c1_28, %c0_29, %c0_30] : memref<3x64x64xf32, #tpu.memory_space<vmem>>, vector<1x64x64xf32>
    %39 = vector.shape_cast %38 : vector<1x64x64xf32> to vector<64x64xf32>
    %cst_31 = arith.constant dense<0.000000e+00> : vector<512x64xf32>
    %40 = tpu.matmul %29, %39, %cst_31 {dimension_numbers = #tpu.dot_dimension_numbers<[1], [0], [0], [1], [0, 0, 1, 1], [], []>} : vector<512x64xf32>, vector<64x64xf32>, vector<512x64xf32> -> vector<512x64xf32>
    %41 = arith.addf %37, %40 : vector<512x64xf32>
    %c2 = arith.constant 2 : index
    %c0_32 = arith.constant 0 : index
    %c0_33 = arith.constant 0 : index
    %42 = vector.load %arg6[%c2, %c0_32, %c0_33] : memref<3x64x64xf32, #tpu.memory_space<vmem>>, vector<1x64x64xf32>
    %43 = vector.shape_cast %42 : vector<1x64x64xf32> to vector<64x64xf32>
    %cst_34 = arith.constant dense<0.000000e+00> : vector<512x64xf32>
    %44 = tpu.matmul %34, %43, %cst_34 {dimension_numbers = #tpu.dot_dimension_numbers<[1], [0], [0], [1], [0, 0, 1, 1], [], []>} : vector<512x64xf32>, vector<64x64xf32>, vector<512x64xf32> -> vector<512x64xf32>
    %45 = arith.addf %41, %44 : vector<512x64xf32>
    %c0_35 = arith.constant 0 : index
    %c0_36 = arith.constant 0 : index
    %46 = vector.load %arg7[%c0_35, %c0_36] : memref<1x64xf32, #tpu.memory_space<vmem>>, vector<1x64xf32>
    %47 = vector.broadcast %46 : vector<1x64xf32> to vector<512x64xf32>
    %48 = arith.addf %45, %47 : vector<512x64xf32>
    %c0_37 = arith.constant 0 : index
    %c0_38 = arith.constant 0 : index
    %49 = vector.load %arg8[%c0_37, %c0_38] : memref<1x64xf32, #tpu.memory_space<vmem>>, vector<1x64xf32>
    %50 = vector.broadcast %49 : vector<1x64xf32> to vector<512x64xf32>
    %51 = arith.mulf %48, %50 : vector<512x64xf32>
    %c0_39 = arith.constant 0 : index
    %c0_40 = arith.constant 0 : index
    %52 = vector.load %arg9[%c0_39, %c0_40] : memref<1x64xf32, #tpu.memory_space<vmem>>, vector<1x64xf32>
    %53 = vector.broadcast %52 : vector<1x64xf32> to vector<512x64xf32>
    %54 = arith.addf %51, %53 : vector<512x64xf32>
    %cst_41 = arith.constant 0.000000e+00 : f32
    %55 = vector.broadcast %cst_41 : f32 to vector<512x64xf32>
    %56 = arith.maximumf %54, %55 : vector<512x64xf32>
    %cst_42 = arith.constant 0.000000e+00 : f32
    %57 = vector.broadcast %cst_42 : f32 to vector<8x128xf32>
    %58 = vector.extract_strided_slice %56 {offsets = [0, 0], sizes = [8, 64], strides = [1, 1]} : vector<512x64xf32> to vector<8x64xf32>
    %59 = arith.truncf %58 : vector<8x64xf32> to vector<8x64xbf16>
    %c0_43 = arith.constant 0 : index
    %c0_44 = arith.constant 0 : index
    %c0_45 = arith.constant 0 : index
    %60 = vector.load %arg10[%c0_43, %c0_44, %c0_45] : memref<64x64x128xbf16, #tpu.memory_space<vmem>>, vector<1x64x128xbf16>
    %61 = vector.shape_cast %60 : vector<1x64x128xbf16> to vector<64x128xbf16>
    %cst_46 = arith.constant dense<0.000000e+00> : vector<8x128xf32>
    %62 = tpu.matmul %59, %61, %cst_46 {dimension_numbers = #tpu.dot_dimension_numbers<[1], [0], [0], [1], [0, 0, 1, 1], [], []>} : vector<8x64xbf16>, vector<64x128xbf16>, vector<8x128xf32> -> vector<8x128xf32>
    %63 = arith.addf %57, %62 : vector<8x128xf32>
    %64 = vector.extract_strided_slice %56 {offsets = [8, 0], sizes = [8, 64], strides = [1, 1]} : vector<512x64xf32> to vector<8x64xf32>
    %65 = arith.truncf %64 : vector<8x64xf32> to vector<8x64xbf16>
    %c1_47 = arith.constant 1 : index
    %c0_48 = arith.constant 0 : index
    %c0_49 = arith.constant 0 : index
    %66 = vector.load %arg10[%c1_47, %c0_48, %c0_49] : memref<64x64x128xbf16, #tpu.memory_space<vmem>>, vector<1x64x128xbf16>
    %67 = vector.shape_cast %66 : vector<1x64x128xbf16> to vector<64x128xbf16>
    %cst_50 = arith.constant dense<0.000000e+00> : vector<8x128xf32>
    %68 = tpu.matmul %65, %67, %cst_50 {dimension_numbers = #tpu.dot_dimension_numbers<[1], [0], [0], [1], [0, 0, 1, 1], [], []>} : vector<8x64xbf16>, vector<64x128xbf16>, vector<8x128xf32> -> vector<8x128xf32>
    %69 = arith.addf %63, %68 : vector<8x128xf32>
    %70 = vector.extract_strided_slice %56 {offsets = [16, 0], sizes = [8, 64], strides = [1, 1]} : vector<512x64xf32> to vector<8x64xf32>
    %71 = arith.truncf %70 : vector<8x64xf32> to vector<8x64xbf16>
    %c2_51 = arith.constant 2 : index
    %c0_52 = arith.constant 0 : index
    %c0_53 = arith.constant 0 : index
    %72 = vector.load %arg10[%c2_51, %c0_52, %c0_53] : memref<64x64x128xbf16, #tpu.memory_space<vmem>>, vector<1x64x128xbf16>
    %73 = vector.shape_cast %72 : vector<1x64x128xbf16> to vector<64x128xbf16>
    %cst_54 = arith.constant dense<0.000000e+00> : vector<8x128xf32>
    %74 = tpu.matmul %71, %73, %cst_54 {dimension_numbers = #tpu.dot_dimension_numbers<[1], [0], [0], [1], [0, 0, 1, 1], [], []>} : vector<8x64xbf16>, vector<64x128xbf16>, vector<8x128xf32> -> vector<8x128xf32>
    %75 = arith.addf %69, %74 : vector<8x128xf32>
    %76 = vector.extract_strided_slice %56 {offsets = [24, 0], sizes = [8, 64], strides = [1, 1]} : vector<512x64xf32> to vector<8x64xf32>
    %77 = arith.truncf %76 : vector<8x64xf32> to vector<8x64xbf16>
    %c3 = arith.constant 3 : index
    %c0_55 = arith.constant 0 : index
    %c0_56 = arith.constant 0 : index
    %78 = vector.load %arg10[%c3, %c0_55, %c0_56] : memref<64x64x128xbf16, #tpu.memory_space<vmem>>, vector<1x64x128xbf16>
    %79 = vector.shape_cast %78 : vector<1x64x128xbf16> to vector<64x128xbf16>
    %cst_57 = arith.constant dense<0.000000e+00> : vector<8x128xf32>
    %80 = tpu.matmul %77, %79, %cst_57 {dimension_numbers = #tpu.dot_dimension_numbers<[1], [0], [0], [1], [0, 0, 1, 1], [], []>} : vector<8x64xbf16>, vector<64x128xbf16>, vector<8x128xf32> -> vector<8x128xf32>
    %81 = arith.addf %75, %80 : vector<8x128xf32>
    %82 = vector.extract_strided_slice %56 {offsets = [32, 0], sizes = [8, 64], strides = [1, 1]} : vector<512x64xf32> to vector<8x64xf32>
    %83 = arith.truncf %82 : vector<8x64xf32> to vector<8x64xbf16>
    %c4 = arith.constant 4 : index
    %c0_58 = arith.constant 0 : index
    %c0_59 = arith.constant 0 : index
    %84 = vector.load %arg10[%c4, %c0_58, %c0_59] : memref<64x64x128xbf16, #tpu.memory_space<vmem>>, vector<1x64x128xbf16>
    %85 = vector.shape_cast %84 : vector<1x64x128xbf16> to vector<64x128xbf16>
    %cst_60 = arith.constant dense<0.000000e+00> : vector<8x128xf32>
    %86 = tpu.matmul %83, %85, %cst_60 {dimension_numbers = #tpu.dot_dimension_numbers<[1], [0], [0], [1], [0, 0, 1, 1], [], []>} : vector<8x64xbf16>, vector<64x128xbf16>, vector<8x128xf32> -> vector<8x128xf32>
    %87 = arith.addf %81, %86 : vector<8x128xf32>
    %88 = vector.extract_strided_slice %56 {offsets = [40, 0], sizes = [8, 64], strides = [1, 1]} : vector<512x64xf32> to vector<8x64xf32>
    %89 = arith.truncf %88 : vector<8x64xf32> to vector<8x64xbf16>
    %c5 = arith.constant 5 : index
    %c0_61 = arith.constant 0 : index
    %c0_62 = arith.constant 0 : index
    %90 = vector.load %arg10[%c5, %c0_61, %c0_62] : memref<64x64x128xbf16, #tpu.memory_space<vmem>>, vector<1x64x128xbf16>
    %91 = vector.shape_cast %90 : vector<1x64x128xbf16> to vector<64x128xbf16>
    %cst_63 = arith.constant dense<0.000000e+00> : vector<8x128xf32>
    %92 = tpu.matmul %89, %91, %cst_63 {dimension_numbers = #tpu.dot_dimension_numbers<[1], [0], [0], [1], [0, 0, 1, 1], [], []>} : vector<8x64xbf16>, vector<64x128xbf16>, vector<8x128xf32> -> vector<8x128xf32>
    %93 = arith.addf %87, %92 : vector<8x128xf32>
    %94 = vector.extract_strided_slice %56 {offsets = [48, 0], sizes = [8, 64], strides = [1, 1]} : vector<512x64xf32> to vector<8x64xf32>
    %95 = arith.truncf %94 : vector<8x64xf32> to vector<8x64xbf16>
    %c6 = arith.constant 6 : index
    %c0_64 = arith.constant 0 : index
    %c0_65 = arith.constant 0 : index
    %96 = vector.load %arg10[%c6, %c0_64, %c0_65] : memref<64x64x128xbf16, #tpu.memory_space<vmem>>, vector<1x64x128xbf16>
    %97 = vector.shape_cast %96 : vector<1x64x128xbf16> to vector<64x128xbf16>
    %cst_66 = arith.constant dense<0.000000e+00> : vector<8x128xf32>
    %98 = tpu.matmul %95, %97, %cst_66 {dimension_numbers = #tpu.dot_dimension_numbers<[1], [0], [0], [1], [0, 0, 1, 1], [], []>} : vector<8x64xbf16>, vector<64x128xbf16>, vector<8x128xf32> -> vector<8x128xf32>
    %99 = arith.addf %93, %98 : vector<8x128xf32>
    %100 = vector.extract_strided_slice %56 {offsets = [56, 0], sizes = [8, 64], strides = [1, 1]} : vector<512x64xf32> to vector<8x64xf32>
    %101 = arith.truncf %100 : vector<8x64xf32> to vector<8x64xbf16>
    %c7 = arith.constant 7 : index
    %c0_67 = arith.constant 0 : index
    %c0_68 = arith.constant 0 : index
    %102 = vector.load %arg10[%c7, %c0_67, %c0_68] : memref<64x64x128xbf16, #tpu.memory_space<vmem>>, vector<1x64x128xbf16>
    %103 = vector.shape_cast %102 : vector<1x64x128xbf16> to vector<64x128xbf16>
    %cst_69 = arith.constant dense<0.000000e+00> : vector<8x128xf32>
    %104 = tpu.matmul %101, %103, %cst_69 {dimension_numbers = #tpu.dot_dimension_numbers<[1], [0], [0], [1], [0, 0, 1, 1], [], []>} : vector<8x64xbf16>, vector<64x128xbf16>, vector<8x128xf32> -> vector<8x128xf32>
    %105 = arith.addf %99, %104 : vector<8x128xf32>
    %106 = vector.extract_strided_slice %56 {offsets = [64, 0], sizes = [8, 64], strides = [1, 1]} : vector<512x64xf32> to vector<8x64xf32>
    %107 = arith.truncf %106 : vector<8x64xf32> to vector<8x64xbf16>
    %c8 = arith.constant 8 : index
    %c0_70 = arith.constant 0 : index
    %c0_71 = arith.constant 0 : index
    %108 = vector.load %arg10[%c8, %c0_70, %c0_71] : memref<64x64x128xbf16, #tpu.memory_space<vmem>>, vector<1x64x128xbf16>
    %109 = vector.shape_cast %108 : vector<1x64x128xbf16> to vector<64x128xbf16>
    %cst_72 = arith.constant dense<0.000000e+00> : vector<8x128xf32>
    %110 = tpu.matmul %107, %109, %cst_72 {dimension_numbers = #tpu.dot_dimension_numbers<[1], [0], [0], [1], [0, 0, 1, 1], [], []>} : vector<8x64xbf16>, vector<64x128xbf16>, vector<8x128xf32> -> vector<8x128xf32>
    %111 = arith.addf %105, %110 : vector<8x128xf32>
    %112 = vector.extract_strided_slice %56 {offsets = [72, 0], sizes = [8, 64], strides = [1, 1]} : vector<512x64xf32> to vector<8x64xf32>
    %113 = arith.truncf %112 : vector<8x64xf32> to vector<8x64xbf16>
    %c9 = arith.constant 9 : index
    %c0_73 = arith.constant 0 : index
    %c0_74 = arith.constant 0 : index
    %114 = vector.load %arg10[%c9, %c0_73, %c0_74] : memref<64x64x128xbf16, #tpu.memory_space<vmem>>, vector<1x64x128xbf16>
    %115 = vector.shape_cast %114 : vector<1x64x128xbf16> to vector<64x128xbf16>
    %cst_75 = arith.constant dense<0.000000e+00> : vector<8x128xf32>
    %116 = tpu.matmul %113, %115, %cst_75 {dimension_numbers = #tpu.dot_dimension_numbers<[1], [0], [0], [1], [0, 0, 1, 1], [], []>} : vector<8x64xbf16>, vector<64x128xbf16>, vector<8x128xf32> -> vector<8x128xf32>
    %117 = arith.addf %111, %116 : vector<8x128xf32>
    %118 = vector.extract_strided_slice %56 {offsets = [80, 0], sizes = [8, 64], strides = [1, 1]} : vector<512x64xf32> to vector<8x64xf32>
    %119 = arith.truncf %118 : vector<8x64xf32> to vector<8x64xbf16>
    %c10 = arith.constant 10 : index
    %c0_76 = arith.constant 0 : index
    %c0_77 = arith.constant 0 : index
    %120 = vector.load %arg10[%c10, %c0_76, %c0_77] : memref<64x64x128xbf16, #tpu.memory_space<vmem>>, vector<1x64x128xbf16>
    %121 = vector.shape_cast %120 : vector<1x64x128xbf16> to vector<64x128xbf16>
    %cst_78 = arith.constant dense<0.000000e+00> : vector<8x128xf32>
    %122 = tpu.matmul %119, %121, %cst_78 {dimension_numbers = #tpu.dot_dimension_numbers<[1], [0], [0], [1], [0, 0, 1, 1], [], []>} : vector<8x64xbf16>, vector<64x128xbf16>, vector<8x128xf32> -> vector<8x128xf32>
    %123 = arith.addf %117, %122 : vector<8x128xf32>
    %124 = vector.extract_strided_slice %56 {offsets = [88, 0], sizes = [8, 64], strides = [1, 1]} : vector<512x64xf32> to vector<8x64xf32>
    %125 = arith.truncf %124 : vector<8x64xf32> to vector<8x64xbf16>
    %c11 = arith.constant 11 : index
    %c0_79 = arith.constant 0 : index
    %c0_80 = arith.constant 0 : index
    %126 = vector.load %arg10[%c11, %c0_79, %c0_80] : memref<64x64x128xbf16, #tpu.memory_space<vmem>>, vector<1x64x128xbf16>
    %127 = vector.shape_cast %126 : vector<1x64x128xbf16> to vector<64x128xbf16>
    %cst_81 = arith.constant dense<0.000000e+00> : vector<8x128xf32>
    %128 = tpu.matmul %125, %127, %cst_81 {dimension_numbers = #tpu.dot_dimension_numbers<[1], [0], [0], [1], [0, 0, 1, 1], [], []>} : vector<8x64xbf16>, vector<64x128xbf16>, vector<8x128xf32> -> vector<8x128xf32>
    %129 = arith.addf %123, %128 : vector<8x128xf32>
    %130 = vector.extract_strided_slice %56 {offsets = [96, 0], sizes = [8, 64], strides = [1, 1]} : vector<512x64xf32> to vector<8x64xf32>
    %131 = arith.truncf %130 : vector<8x64xf32> to vector<8x64xbf16>
    %c12 = arith.constant 12 : index
    %c0_82 = arith.constant 0 : index
    %c0_83 = arith.constant 0 : index
    %132 = vector.load %arg10[%c12, %c0_82, %c0_83] : memref<64x64x128xbf16, #tpu.memory_space<vmem>>, vector<1x64x128xbf16>
    %133 = vector.shape_cast %132 : vector<1x64x128xbf16> to vector<64x128xbf16>
    %cst_84 = arith.constant dense<0.000000e+00> : vector<8x128xf32>
    %134 = tpu.matmul %131, %133, %cst_84 {dimension_numbers = #tpu.dot_dimension_numbers<[1], [0], [0], [1], [0, 0, 1, 1], [], []>} : vector<8x64xbf16>, vector<64x128xbf16>, vector<8x128xf32> -> vector<8x128xf32>
    %135 = arith.addf %129, %134 : vector<8x128xf32>
    %136 = vector.extract_strided_slice %56 {offsets = [104, 0], sizes = [8, 64], strides = [1, 1]} : vector<512x64xf32> to vector<8x64xf32>
    %137 = arith.truncf %136 : vector<8x64xf32> to vector<8x64xbf16>
    %c13 = arith.constant 13 : index
    %c0_85 = arith.constant 0 : index
    %c0_86 = arith.constant 0 : index
    %138 = vector.load %arg10[%c13, %c0_85, %c0_86] : memref<64x64x128xbf16, #tpu.memory_space<vmem>>, vector<1x64x128xbf16>
    %139 = vector.shape_cast %138 : vector<1x64x128xbf16> to vector<64x128xbf16>
    %cst_87 = arith.constant dense<0.000000e+00> : vector<8x128xf32>
    %140 = tpu.matmul %137, %139, %cst_87 {dimension_numbers = #tpu.dot_dimension_numbers<[1], [0], [0], [1], [0, 0, 1, 1], [], []>} : vector<8x64xbf16>, vector<64x128xbf16>, vector<8x128xf32> -> vector<8x128xf32>
    %141 = arith.addf %135, %140 : vector<8x128xf32>
    %142 = vector.extract_strided_slice %56 {offsets = [112, 0], sizes = [8, 64], strides = [1, 1]} : vector<512x64xf32> to vector<8x64xf32>
    %143 = arith.truncf %142 : vector<8x64xf32> to vector<8x64xbf16>
    %c14 = arith.constant 14 : index
    %c0_88 = arith.constant 0 : index
    %c0_89 = arith.constant 0 : index
    %144 = vector.load %arg10[%c14, %c0_88, %c0_89] : memref<64x64x128xbf16, #tpu.memory_space<vmem>>, vector<1x64x128xbf16>
    %145 = vector.shape_cast %144 : vector<1x64x128xbf16> to vector<64x128xbf16>
    %cst_90 = arith.constant dense<0.000000e+00> : vector<8x128xf32>
    %146 = tpu.matmul %143, %145, %cst_90 {dimension_numbers = #tpu.dot_dimension_numbers<[1], [0], [0], [1], [0, 0, 1, 1], [], []>} : vector<8x64xbf16>, vector<64x128xbf16>, vector<8x128xf32> -> vector<8x128xf32>
    %147 = arith.addf %141, %146 : vector<8x128xf32>
    %148 = vector.extract_strided_slice %56 {offsets = [120, 0], sizes = [8, 64], strides = [1, 1]} : vector<512x64xf32> to vector<8x64xf32>
    %149 = arith.truncf %148 : vector<8x64xf32> to vector<8x64xbf16>
    %c15 = arith.constant 15 : index
    %c0_91 = arith.constant 0 : index
    %c0_92 = arith.constant 0 : index
    %150 = vector.load %arg10[%c15, %c0_91, %c0_92] : memref<64x64x128xbf16, #tpu.memory_space<vmem>>, vector<1x64x128xbf16>
    %151 = vector.shape_cast %150 : vector<1x64x128xbf16> to vector<64x128xbf16>
    %cst_93 = arith.constant dense<0.000000e+00> : vector<8x128xf32>
    %152 = tpu.matmul %149, %151, %cst_93 {dimension_numbers = #tpu.dot_dimension_numbers<[1], [0], [0], [1], [0, 0, 1, 1], [], []>} : vector<8x64xbf16>, vector<64x128xbf16>, vector<8x128xf32> -> vector<8x128xf32>
    %153 = arith.addf %147, %152 : vector<8x128xf32>
    %154 = vector.extract_strided_slice %56 {offsets = [128, 0], sizes = [8, 64], strides = [1, 1]} : vector<512x64xf32> to vector<8x64xf32>
    %155 = arith.truncf %154 : vector<8x64xf32> to vector<8x64xbf16>
    %c16 = arith.constant 16 : index
    %c0_94 = arith.constant 0 : index
    %c0_95 = arith.constant 0 : index
    %156 = vector.load %arg10[%c16, %c0_94, %c0_95] : memref<64x64x128xbf16, #tpu.memory_space<vmem>>, vector<1x64x128xbf16>
    %157 = vector.shape_cast %156 : vector<1x64x128xbf16> to vector<64x128xbf16>
    %cst_96 = arith.constant dense<0.000000e+00> : vector<8x128xf32>
    %158 = tpu.matmul %155, %157, %cst_96 {dimension_numbers = #tpu.dot_dimension_numbers<[1], [0], [0], [1], [0, 0, 1, 1], [], []>} : vector<8x64xbf16>, vector<64x128xbf16>, vector<8x128xf32> -> vector<8x128xf32>
    %159 = arith.addf %153, %158 : vector<8x128xf32>
    %160 = vector.extract_strided_slice %56 {offsets = [136, 0], sizes = [8, 64], strides = [1, 1]} : vector<512x64xf32> to vector<8x64xf32>
    %161 = arith.truncf %160 : vector<8x64xf32> to vector<8x64xbf16>
    %c17 = arith.constant 17 : index
    %c0_97 = arith.constant 0 : index
    %c0_98 = arith.constant 0 : index
    %162 = vector.load %arg10[%c17, %c0_97, %c0_98] : memref<64x64x128xbf16, #tpu.memory_space<vmem>>, vector<1x64x128xbf16>
    %163 = vector.shape_cast %162 : vector<1x64x128xbf16> to vector<64x128xbf16>
    %cst_99 = arith.constant dense<0.000000e+00> : vector<8x128xf32>
    %164 = tpu.matmul %161, %163, %cst_99 {dimension_numbers = #tpu.dot_dimension_numbers<[1], [0], [0], [1], [0, 0, 1, 1], [], []>} : vector<8x64xbf16>, vector<64x128xbf16>, vector<8x128xf32> -> vector<8x128xf32>
    %165 = arith.addf %159, %164 : vector<8x128xf32>
    %166 = vector.extract_strided_slice %56 {offsets = [144, 0], sizes = [8, 64], strides = [1, 1]} : vector<512x64xf32> to vector<8x64xf32>
    %167 = arith.truncf %166 : vector<8x64xf32> to vector<8x64xbf16>
    %c18 = arith.constant 18 : index
    %c0_100 = arith.constant 0 : index
    %c0_101 = arith.constant 0 : index
    %168 = vector.load %arg10[%c18, %c0_100, %c0_101] : memref<64x64x128xbf16, #tpu.memory_space<vmem>>, vector<1x64x128xbf16>
    %169 = vector.shape_cast %168 : vector<1x64x128xbf16> to vector<64x128xbf16>
    %cst_102 = arith.constant dense<0.000000e+00> : vector<8x128xf32>
    %170 = tpu.matmul %167, %169, %cst_102 {dimension_numbers = #tpu.dot_dimension_numbers<[1], [0], [0], [1], [0, 0, 1, 1], [], []>} : vector<8x64xbf16>, vector<64x128xbf16>, vector<8x128xf32> -> vector<8x128xf32>
    %171 = arith.addf %165, %170 : vector<8x128xf32>
    %172 = vector.extract_strided_slice %56 {offsets = [152, 0], sizes = [8, 64], strides = [1, 1]} : vector<512x64xf32> to vector<8x64xf32>
    %173 = arith.truncf %172 : vector<8x64xf32> to vector<8x64xbf16>
    %c19 = arith.constant 19 : index
    %c0_103 = arith.constant 0 : index
    %c0_104 = arith.constant 0 : index
    %174 = vector.load %arg10[%c19, %c0_103, %c0_104] : memref<64x64x128xbf16, #tpu.memory_space<vmem>>, vector<1x64x128xbf16>
    %175 = vector.shape_cast %174 : vector<1x64x128xbf16> to vector<64x128xbf16>
    %cst_105 = arith.constant dense<0.000000e+00> : vector<8x128xf32>
    %176 = tpu.matmul %173, %175, %cst_105 {dimension_numbers = #tpu.dot_dimension_numbers<[1], [0], [0], [1], [0, 0, 1, 1], [], []>} : vector<8x64xbf16>, vector<64x128xbf16>, vector<8x128xf32> -> vector<8x128xf32>
    %177 = arith.addf %171, %176 : vector<8x128xf32>
    %178 = vector.extract_strided_slice %56 {offsets = [160, 0], sizes = [8, 64], strides = [1, 1]} : vector<512x64xf32> to vector<8x64xf32>
    %179 = arith.truncf %178 : vector<8x64xf32> to vector<8x64xbf16>
    %c20 = arith.constant 20 : index
    %c0_106 = arith.constant 0 : index
    %c0_107 = arith.constant 0 : index
    %180 = vector.load %arg10[%c20, %c0_106, %c0_107] : memref<64x64x128xbf16, #tpu.memory_space<vmem>>, vector<1x64x128xbf16>
    %181 = vector.shape_cast %180 : vector<1x64x128xbf16> to vector<64x128xbf16>
    %cst_108 = arith.constant dense<0.000000e+00> : vector<8x128xf32>
    %182 = tpu.matmul %179, %181, %cst_108 {dimension_numbers = #tpu.dot_dimension_numbers<[1], [0], [0], [1], [0, 0, 1, 1], [], []>} : vector<8x64xbf16>, vector<64x128xbf16>, vector<8x128xf32> -> vector<8x128xf32>
    %183 = arith.addf %177, %182 : vector<8x128xf32>
    %184 = vector.extract_strided_slice %56 {offsets = [168, 0], sizes = [8, 64], strides = [1, 1]} : vector<512x64xf32> to vector<8x64xf32>
    %185 = arith.truncf %184 : vector<8x64xf32> to vector<8x64xbf16>
    %c21 = arith.constant 21 : index
    %c0_109 = arith.constant 0 : index
    %c0_110 = arith.constant 0 : index
    %186 = vector.load %arg10[%c21, %c0_109, %c0_110] : memref<64x64x128xbf16, #tpu.memory_space<vmem>>, vector<1x64x128xbf16>
    %187 = vector.shape_cast %186 : vector<1x64x128xbf16> to vector<64x128xbf16>
    %cst_111 = arith.constant dense<0.000000e+00> : vector<8x128xf32>
    %188 = tpu.matmul %185, %187, %cst_111 {dimension_numbers = #tpu.dot_dimension_numbers<[1], [0], [0], [1], [0, 0, 1, 1], [], []>} : vector<8x64xbf16>, vector<64x128xbf16>, vector<8x128xf32> -> vector<8x128xf32>
    %189 = arith.addf %183, %188 : vector<8x128xf32>
    %190 = vector.extract_strided_slice %56 {offsets = [176, 0], sizes = [8, 64], strides = [1, 1]} : vector<512x64xf32> to vector<8x64xf32>
    %191 = arith.truncf %190 : vector<8x64xf32> to vector<8x64xbf16>
    %c22 = arith.constant 22 : index
    %c0_112 = arith.constant 0 : index
    %c0_113 = arith.constant 0 : index
    %192 = vector.load %arg10[%c22, %c0_112, %c0_113] : memref<64x64x128xbf16, #tpu.memory_space<vmem>>, vector<1x64x128xbf16>
    %193 = vector.shape_cast %192 : vector<1x64x128xbf16> to vector<64x128xbf16>
    %cst_114 = arith.constant dense<0.000000e+00> : vector<8x128xf32>
    %194 = tpu.matmul %191, %193, %cst_114 {dimension_numbers = #tpu.dot_dimension_numbers<[1], [0], [0], [1], [0, 0, 1, 1], [], []>} : vector<8x64xbf16>, vector<64x128xbf16>, vector<8x128xf32> -> vector<8x128xf32>
    %195 = arith.addf %189, %194 : vector<8x128xf32>
    %196 = vector.extract_strided_slice %56 {offsets = [184, 0], sizes = [8, 64], strides = [1, 1]} : vector<512x64xf32> to vector<8x64xf32>
    %197 = arith.truncf %196 : vector<8x64xf32> to vector<8x64xbf16>
    %c23 = arith.constant 23 : index
    %c0_115 = arith.constant 0 : index
    %c0_116 = arith.constant 0 : index
    %198 = vector.load %arg10[%c23, %c0_115, %c0_116] : memref<64x64x128xbf16, #tpu.memory_space<vmem>>, vector<1x64x128xbf16>
    %199 = vector.shape_cast %198 : vector<1x64x128xbf16> to vector<64x128xbf16>
    %cst_117 = arith.constant dense<0.000000e+00> : vector<8x128xf32>
    %200 = tpu.matmul %197, %199, %cst_117 {dimension_numbers = #tpu.dot_dimension_numbers<[1], [0], [0], [1], [0, 0, 1, 1], [], []>} : vector<8x64xbf16>, vector<64x128xbf16>, vector<8x128xf32> -> vector<8x128xf32>
    %201 = arith.addf %195, %200 : vector<8x128xf32>
    %202 = vector.extract_strided_slice %56 {offsets = [192, 0], sizes = [8, 64], strides = [1, 1]} : vector<512x64xf32> to vector<8x64xf32>
    %203 = arith.truncf %202 : vector<8x64xf32> to vector<8x64xbf16>
    %c24 = arith.constant 24 : index
    %c0_118 = arith.constant 0 : index
    %c0_119 = arith.constant 0 : index
    %204 = vector.load %arg10[%c24, %c0_118, %c0_119] : memref<64x64x128xbf16, #tpu.memory_space<vmem>>, vector<1x64x128xbf16>
    %205 = vector.shape_cast %204 : vector<1x64x128xbf16> to vector<64x128xbf16>
    %cst_120 = arith.constant dense<0.000000e+00> : vector<8x128xf32>
    %206 = tpu.matmul %203, %205, %cst_120 {dimension_numbers = #tpu.dot_dimension_numbers<[1], [0], [0], [1], [0, 0, 1, 1], [], []>} : vector<8x64xbf16>, vector<64x128xbf16>, vector<8x128xf32> -> vector<8x128xf32>
    %207 = arith.addf %201, %206 : vector<8x128xf32>
    %208 = vector.extract_strided_slice %56 {offsets = [200, 0], sizes = [8, 64], strides = [1, 1]} : vector<512x64xf32> to vector<8x64xf32>
    %209 = arith.truncf %208 : vector<8x64xf32> to vector<8x64xbf16>
    %c25 = arith.constant 25 : index
    %c0_121 = arith.constant 0 : index
    %c0_122 = arith.constant 0 : index
    %210 = vector.load %arg10[%c25, %c0_121, %c0_122] : memref<64x64x128xbf16, #tpu.memory_space<vmem>>, vector<1x64x128xbf16>
    %211 = vector.shape_cast %210 : vector<1x64x128xbf16> to vector<64x128xbf16>
    %cst_123 = arith.constant dense<0.000000e+00> : vector<8x128xf32>
    %212 = tpu.matmul %209, %211, %cst_123 {dimension_numbers = #tpu.dot_dimension_numbers<[1], [0], [0], [1], [0, 0, 1, 1], [], []>} : vector<8x64xbf16>, vector<64x128xbf16>, vector<8x128xf32> -> vector<8x128xf32>
    %213 = arith.addf %207, %212 : vector<8x128xf32>
    %214 = vector.extract_strided_slice %56 {offsets = [208, 0], sizes = [8, 64], strides = [1, 1]} : vector<512x64xf32> to vector<8x64xf32>
    %215 = arith.truncf %214 : vector<8x64xf32> to vector<8x64xbf16>
    %c26 = arith.constant 26 : index
    %c0_124 = arith.constant 0 : index
    %c0_125 = arith.constant 0 : index
    %216 = vector.load %arg10[%c26, %c0_124, %c0_125] : memref<64x64x128xbf16, #tpu.memory_space<vmem>>, vector<1x64x128xbf16>
    %217 = vector.shape_cast %216 : vector<1x64x128xbf16> to vector<64x128xbf16>
    %cst_126 = arith.constant dense<0.000000e+00> : vector<8x128xf32>
    %218 = tpu.matmul %215, %217, %cst_126 {dimension_numbers = #tpu.dot_dimension_numbers<[1], [0], [0], [1], [0, 0, 1, 1], [], []>} : vector<8x64xbf16>, vector<64x128xbf16>, vector<8x128xf32> -> vector<8x128xf32>
    %219 = arith.addf %213, %218 : vector<8x128xf32>
    %220 = vector.extract_strided_slice %56 {offsets = [216, 0], sizes = [8, 64], strides = [1, 1]} : vector<512x64xf32> to vector<8x64xf32>
    %221 = arith.truncf %220 : vector<8x64xf32> to vector<8x64xbf16>
    %c27 = arith.constant 27 : index
    %c0_127 = arith.constant 0 : index
    %c0_128 = arith.constant 0 : index
    %222 = vector.load %arg10[%c27, %c0_127, %c0_128] : memref<64x64x128xbf16, #tpu.memory_space<vmem>>, vector<1x64x128xbf16>
    %223 = vector.shape_cast %222 : vector<1x64x128xbf16> to vector<64x128xbf16>
    %cst_129 = arith.constant dense<0.000000e+00> : vector<8x128xf32>
    %224 = tpu.matmul %221, %223, %cst_129 {dimension_numbers = #tpu.dot_dimension_numbers<[1], [0], [0], [1], [0, 0, 1, 1], [], []>} : vector<8x64xbf16>, vector<64x128xbf16>, vector<8x128xf32> -> vector<8x128xf32>
    %225 = arith.addf %219, %224 : vector<8x128xf32>
    %226 = vector.extract_strided_slice %56 {offsets = [224, 0], sizes = [8, 64], strides = [1, 1]} : vector<512x64xf32> to vector<8x64xf32>
    %227 = arith.truncf %226 : vector<8x64xf32> to vector<8x64xbf16>
    %c28 = arith.constant 28 : index
    %c0_130 = arith.constant 0 : index
    %c0_131 = arith.constant 0 : index
    %228 = vector.load %arg10[%c28, %c0_130, %c0_131] : memref<64x64x128xbf16, #tpu.memory_space<vmem>>, vector<1x64x128xbf16>
    %229 = vector.shape_cast %228 : vector<1x64x128xbf16> to vector<64x128xbf16>
    %cst_132 = arith.constant dense<0.000000e+00> : vector<8x128xf32>
    %230 = tpu.matmul %227, %229, %cst_132 {dimension_numbers = #tpu.dot_dimension_numbers<[1], [0], [0], [1], [0, 0, 1, 1], [], []>} : vector<8x64xbf16>, vector<64x128xbf16>, vector<8x128xf32> -> vector<8x128xf32>
    %231 = arith.addf %225, %230 : vector<8x128xf32>
    %232 = vector.extract_strided_slice %56 {offsets = [232, 0], sizes = [8, 64], strides = [1, 1]} : vector<512x64xf32> to vector<8x64xf32>
    %233 = arith.truncf %232 : vector<8x64xf32> to vector<8x64xbf16>
    %c29 = arith.constant 29 : index
    %c0_133 = arith.constant 0 : index
    %c0_134 = arith.constant 0 : index
    %234 = vector.load %arg10[%c29, %c0_133, %c0_134] : memref<64x64x128xbf16, #tpu.memory_space<vmem>>, vector<1x64x128xbf16>
    %235 = vector.shape_cast %234 : vector<1x64x128xbf16> to vector<64x128xbf16>
    %cst_135 = arith.constant dense<0.000000e+00> : vector<8x128xf32>
    %236 = tpu.matmul %233, %235, %cst_135 {dimension_numbers = #tpu.dot_dimension_numbers<[1], [0], [0], [1], [0, 0, 1, 1], [], []>} : vector<8x64xbf16>, vector<64x128xbf16>, vector<8x128xf32> -> vector<8x128xf32>
    %237 = arith.addf %231, %236 : vector<8x128xf32>
    %238 = vector.extract_strided_slice %56 {offsets = [240, 0], sizes = [8, 64], strides = [1, 1]} : vector<512x64xf32> to vector<8x64xf32>
    %239 = arith.truncf %238 : vector<8x64xf32> to vector<8x64xbf16>
    %c30 = arith.constant 30 : index
    %c0_136 = arith.constant 0 : index
    %c0_137 = arith.constant 0 : index
    %240 = vector.load %arg10[%c30, %c0_136, %c0_137] : memref<64x64x128xbf16, #tpu.memory_space<vmem>>, vector<1x64x128xbf16>
    %241 = vector.shape_cast %240 : vector<1x64x128xbf16> to vector<64x128xbf16>
    %cst_138 = arith.constant dense<0.000000e+00> : vector<8x128xf32>
    %242 = tpu.matmul %239, %241, %cst_138 {dimension_numbers = #tpu.dot_dimension_numbers<[1], [0], [0], [1], [0, 0, 1, 1], [], []>} : vector<8x64xbf16>, vector<64x128xbf16>, vector<8x128xf32> -> vector<8x128xf32>
    %243 = arith.addf %237, %242 : vector<8x128xf32>
    %244 = vector.extract_strided_slice %56 {offsets = [248, 0], sizes = [8, 64], strides = [1, 1]} : vector<512x64xf32> to vector<8x64xf32>
    %245 = arith.truncf %244 : vector<8x64xf32> to vector<8x64xbf16>
    %c31 = arith.constant 31 : index
    %c0_139 = arith.constant 0 : index
    %c0_140 = arith.constant 0 : index
    %246 = vector.load %arg10[%c31, %c0_139, %c0_140] : memref<64x64x128xbf16, #tpu.memory_space<vmem>>, vector<1x64x128xbf16>
    %247 = vector.shape_cast %246 : vector<1x64x128xbf16> to vector<64x128xbf16>
    %cst_141 = arith.constant dense<0.000000e+00> : vector<8x128xf32>
    %248 = tpu.matmul %245, %247, %cst_141 {dimension_numbers = #tpu.dot_dimension_numbers<[1], [0], [0], [1], [0, 0, 1, 1], [], []>} : vector<8x64xbf16>, vector<64x128xbf16>, vector<8x128xf32> -> vector<8x128xf32>
    %249 = arith.addf %243, %248 : vector<8x128xf32>
    %250 = vector.extract_strided_slice %56 {offsets = [256, 0], sizes = [8, 64], strides = [1, 1]} : vector<512x64xf32> to vector<8x64xf32>
    %251 = arith.truncf %250 : vector<8x64xf32> to vector<8x64xbf16>
    %c32 = arith.constant 32 : index
    %c0_142 = arith.constant 0 : index
    %c0_143 = arith.constant 0 : index
    %252 = vector.load %arg10[%c32, %c0_142, %c0_143] : memref<64x64x128xbf16, #tpu.memory_space<vmem>>, vector<1x64x128xbf16>
    %253 = vector.shape_cast %252 : vector<1x64x128xbf16> to vector<64x128xbf16>
    %cst_144 = arith.constant dense<0.000000e+00> : vector<8x128xf32>
    %254 = tpu.matmul %251, %253, %cst_144 {dimension_numbers = #tpu.dot_dimension_numbers<[1], [0], [0], [1], [0, 0, 1, 1], [], []>} : vector<8x64xbf16>, vector<64x128xbf16>, vector<8x128xf32> -> vector<8x128xf32>
    %255 = arith.addf %249, %254 : vector<8x128xf32>
    %256 = vector.extract_strided_slice %56 {offsets = [264, 0], sizes = [8, 64], strides = [1, 1]} : vector<512x64xf32> to vector<8x64xf32>
    %257 = arith.truncf %256 : vector<8x64xf32> to vector<8x64xbf16>
    %c33 = arith.constant 33 : index
    %c0_145 = arith.constant 0 : index
    %c0_146 = arith.constant 0 : index
    %258 = vector.load %arg10[%c33, %c0_145, %c0_146] : memref<64x64x128xbf16, #tpu.memory_space<vmem>>, vector<1x64x128xbf16>
    %259 = vector.shape_cast %258 : vector<1x64x128xbf16> to vector<64x128xbf16>
    %cst_147 = arith.constant dense<0.000000e+00> : vector<8x128xf32>
    %260 = tpu.matmul %257, %259, %cst_147 {dimension_numbers = #tpu.dot_dimension_numbers<[1], [0], [0], [1], [0, 0, 1, 1], [], []>} : vector<8x64xbf16>, vector<64x128xbf16>, vector<8x128xf32> -> vector<8x128xf32>
    %261 = arith.addf %255, %260 : vector<8x128xf32>
    %262 = vector.extract_strided_slice %56 {offsets = [272, 0], sizes = [8, 64], strides = [1, 1]} : vector<512x64xf32> to vector<8x64xf32>
    %263 = arith.truncf %262 : vector<8x64xf32> to vector<8x64xbf16>
    %c34 = arith.constant 34 : index
    %c0_148 = arith.constant 0 : index
    %c0_149 = arith.constant 0 : index
    %264 = vector.load %arg10[%c34, %c0_148, %c0_149] : memref<64x64x128xbf16, #tpu.memory_space<vmem>>, vector<1x64x128xbf16>
    %265 = vector.shape_cast %264 : vector<1x64x128xbf16> to vector<64x128xbf16>
    %cst_150 = arith.constant dense<0.000000e+00> : vector<8x128xf32>
    %266 = tpu.matmul %263, %265, %cst_150 {dimension_numbers = #tpu.dot_dimension_numbers<[1], [0], [0], [1], [0, 0, 1, 1], [], []>} : vector<8x64xbf16>, vector<64x128xbf16>, vector<8x128xf32> -> vector<8x128xf32>
    %267 = arith.addf %261, %266 : vector<8x128xf32>
    %268 = vector.extract_strided_slice %56 {offsets = [280, 0], sizes = [8, 64], strides = [1, 1]} : vector<512x64xf32> to vector<8x64xf32>
    %269 = arith.truncf %268 : vector<8x64xf32> to vector<8x64xbf16>
    %c35 = arith.constant 35 : index
    %c0_151 = arith.constant 0 : index
    %c0_152 = arith.constant 0 : index
    %270 = vector.load %arg10[%c35, %c0_151, %c0_152] : memref<64x64x128xbf16, #tpu.memory_space<vmem>>, vector<1x64x128xbf16>
    %271 = vector.shape_cast %270 : vector<1x64x128xbf16> to vector<64x128xbf16>
    %cst_153 = arith.constant dense<0.000000e+00> : vector<8x128xf32>
    %272 = tpu.matmul %269, %271, %cst_153 {dimension_numbers = #tpu.dot_dimension_numbers<[1], [0], [0], [1], [0, 0, 1, 1], [], []>} : vector<8x64xbf16>, vector<64x128xbf16>, vector<8x128xf32> -> vector<8x128xf32>
    %273 = arith.addf %267, %272 : vector<8x128xf32>
    %274 = vector.extract_strided_slice %56 {offsets = [288, 0], sizes = [8, 64], strides = [1, 1]} : vector<512x64xf32> to vector<8x64xf32>
    %275 = arith.truncf %274 : vector<8x64xf32> to vector<8x64xbf16>
    %c36 = arith.constant 36 : index
    %c0_154 = arith.constant 0 : index
    %c0_155 = arith.constant 0 : index
    %276 = vector.load %arg10[%c36, %c0_154, %c0_155] : memref<64x64x128xbf16, #tpu.memory_space<vmem>>, vector<1x64x128xbf16>
    %277 = vector.shape_cast %276 : vector<1x64x128xbf16> to vector<64x128xbf16>
    %cst_156 = arith.constant dense<0.000000e+00> : vector<8x128xf32>
    %278 = tpu.matmul %275, %277, %cst_156 {dimension_numbers = #tpu.dot_dimension_numbers<[1], [0], [0], [1], [0, 0, 1, 1], [], []>} : vector<8x64xbf16>, vector<64x128xbf16>, vector<8x128xf32> -> vector<8x128xf32>
    %279 = arith.addf %273, %278 : vector<8x128xf32>
    %280 = vector.extract_strided_slice %56 {offsets = [296, 0], sizes = [8, 64], strides = [1, 1]} : vector<512x64xf32> to vector<8x64xf32>
    %281 = arith.truncf %280 : vector<8x64xf32> to vector<8x64xbf16>
    %c37 = arith.constant 37 : index
    %c0_157 = arith.constant 0 : index
    %c0_158 = arith.constant 0 : index
    %282 = vector.load %arg10[%c37, %c0_157, %c0_158] : memref<64x64x128xbf16, #tpu.memory_space<vmem>>, vector<1x64x128xbf16>
    %283 = vector.shape_cast %282 : vector<1x64x128xbf16> to vector<64x128xbf16>
    %cst_159 = arith.constant dense<0.000000e+00> : vector<8x128xf32>
    %284 = tpu.matmul %281, %283, %cst_159 {dimension_numbers = #tpu.dot_dimension_numbers<[1], [0], [0], [1], [0, 0, 1, 1], [], []>} : vector<8x64xbf16>, vector<64x128xbf16>, vector<8x128xf32> -> vector<8x128xf32>
    %285 = arith.addf %279, %284 : vector<8x128xf32>
    %286 = vector.extract_strided_slice %56 {offsets = [304, 0], sizes = [8, 64], strides = [1, 1]} : vector<512x64xf32> to vector<8x64xf32>
    %287 = arith.truncf %286 : vector<8x64xf32> to vector<8x64xbf16>
    %c38 = arith.constant 38 : index
    %c0_160 = arith.constant 0 : index
    %c0_161 = arith.constant 0 : index
    %288 = vector.load %arg10[%c38, %c0_160, %c0_161] : memref<64x64x128xbf16, #tpu.memory_space<vmem>>, vector<1x64x128xbf16>
    %289 = vector.shape_cast %288 : vector<1x64x128xbf16> to vector<64x128xbf16>
    %cst_162 = arith.constant dense<0.000000e+00> : vector<8x128xf32>
    %290 = tpu.matmul %287, %289, %cst_162 {dimension_numbers = #tpu.dot_dimension_numbers<[1], [0], [0], [1], [0, 0, 1, 1], [], []>} : vector<8x64xbf16>, vector<64x128xbf16>, vector<8x128xf32> -> vector<8x128xf32>
    %291 = arith.addf %285, %290 : vector<8x128xf32>
    %292 = vector.extract_strided_slice %56 {offsets = [312, 0], sizes = [8, 64], strides = [1, 1]} : vector<512x64xf32> to vector<8x64xf32>
    %293 = arith.truncf %292 : vector<8x64xf32> to vector<8x64xbf16>
    %c39 = arith.constant 39 : index
    %c0_163 = arith.constant 0 : index
    %c0_164 = arith.constant 0 : index
    %294 = vector.load %arg10[%c39, %c0_163, %c0_164] : memref<64x64x128xbf16, #tpu.memory_space<vmem>>, vector<1x64x128xbf16>
    %295 = vector.shape_cast %294 : vector<1x64x128xbf16> to vector<64x128xbf16>
    %cst_165 = arith.constant dense<0.000000e+00> : vector<8x128xf32>
    %296 = tpu.matmul %293, %295, %cst_165 {dimension_numbers = #tpu.dot_dimension_numbers<[1], [0], [0], [1], [0, 0, 1, 1], [], []>} : vector<8x64xbf16>, vector<64x128xbf16>, vector<8x128xf32> -> vector<8x128xf32>
    %297 = arith.addf %291, %296 : vector<8x128xf32>
    %298 = vector.extract_strided_slice %56 {offsets = [320, 0], sizes = [8, 64], strides = [1, 1]} : vector<512x64xf32> to vector<8x64xf32>
    %299 = arith.truncf %298 : vector<8x64xf32> to vector<8x64xbf16>
    %c40 = arith.constant 40 : index
    %c0_166 = arith.constant 0 : index
    %c0_167 = arith.constant 0 : index
    %300 = vector.load %arg10[%c40, %c0_166, %c0_167] : memref<64x64x128xbf16, #tpu.memory_space<vmem>>, vector<1x64x128xbf16>
    %301 = vector.shape_cast %300 : vector<1x64x128xbf16> to vector<64x128xbf16>
    %cst_168 = arith.constant dense<0.000000e+00> : vector<8x128xf32>
    %302 = tpu.matmul %299, %301, %cst_168 {dimension_numbers = #tpu.dot_dimension_numbers<[1], [0], [0], [1], [0, 0, 1, 1], [], []>} : vector<8x64xbf16>, vector<64x128xbf16>, vector<8x128xf32> -> vector<8x128xf32>
    %303 = arith.addf %297, %302 : vector<8x128xf32>
    %304 = vector.extract_strided_slice %56 {offsets = [328, 0], sizes = [8, 64], strides = [1, 1]} : vector<512x64xf32> to vector<8x64xf32>
    %305 = arith.truncf %304 : vector<8x64xf32> to vector<8x64xbf16>
    %c41 = arith.constant 41 : index
    %c0_169 = arith.constant 0 : index
    %c0_170 = arith.constant 0 : index
    %306 = vector.load %arg10[%c41, %c0_169, %c0_170] : memref<64x64x128xbf16, #tpu.memory_space<vmem>>, vector<1x64x128xbf16>
    %307 = vector.shape_cast %306 : vector<1x64x128xbf16> to vector<64x128xbf16>
    %cst_171 = arith.constant dense<0.000000e+00> : vector<8x128xf32>
    %308 = tpu.matmul %305, %307, %cst_171 {dimension_numbers = #tpu.dot_dimension_numbers<[1], [0], [0], [1], [0, 0, 1, 1], [], []>} : vector<8x64xbf16>, vector<64x128xbf16>, vector<8x128xf32> -> vector<8x128xf32>
    %309 = arith.addf %303, %308 : vector<8x128xf32>
    %310 = vector.extract_strided_slice %56 {offsets = [336, 0], sizes = [8, 64], strides = [1, 1]} : vector<512x64xf32> to vector<8x64xf32>
    %311 = arith.truncf %310 : vector<8x64xf32> to vector<8x64xbf16>
    %c42 = arith.constant 42 : index
    %c0_172 = arith.constant 0 : index
    %c0_173 = arith.constant 0 : index
    %312 = vector.load %arg10[%c42, %c0_172, %c0_173] : memref<64x64x128xbf16, #tpu.memory_space<vmem>>, vector<1x64x128xbf16>
    %313 = vector.shape_cast %312 : vector<1x64x128xbf16> to vector<64x128xbf16>
    %cst_174 = arith.constant dense<0.000000e+00> : vector<8x128xf32>
    %314 = tpu.matmul %311, %313, %cst_174 {dimension_numbers = #tpu.dot_dimension_numbers<[1], [0], [0], [1], [0, 0, 1, 1], [], []>} : vector<8x64xbf16>, vector<64x128xbf16>, vector<8x128xf32> -> vector<8x128xf32>
    %315 = arith.addf %309, %314 : vector<8x128xf32>
    %316 = vector.extract_strided_slice %56 {offsets = [344, 0], sizes = [8, 64], strides = [1, 1]} : vector<512x64xf32> to vector<8x64xf32>
    %317 = arith.truncf %316 : vector<8x64xf32> to vector<8x64xbf16>
    %c43 = arith.constant 43 : index
    %c0_175 = arith.constant 0 : index
    %c0_176 = arith.constant 0 : index
    %318 = vector.load %arg10[%c43, %c0_175, %c0_176] : memref<64x64x128xbf16, #tpu.memory_space<vmem>>, vector<1x64x128xbf16>
    %319 = vector.shape_cast %318 : vector<1x64x128xbf16> to vector<64x128xbf16>
    %cst_177 = arith.constant dense<0.000000e+00> : vector<8x128xf32>
    %320 = tpu.matmul %317, %319, %cst_177 {dimension_numbers = #tpu.dot_dimension_numbers<[1], [0], [0], [1], [0, 0, 1, 1], [], []>} : vector<8x64xbf16>, vector<64x128xbf16>, vector<8x128xf32> -> vector<8x128xf32>
    %321 = arith.addf %315, %320 : vector<8x128xf32>
    %322 = vector.extract_strided_slice %56 {offsets = [352, 0], sizes = [8, 64], strides = [1, 1]} : vector<512x64xf32> to vector<8x64xf32>
    %323 = arith.truncf %322 : vector<8x64xf32> to vector<8x64xbf16>
    %c44 = arith.constant 44 : index
    %c0_178 = arith.constant 0 : index
    %c0_179 = arith.constant 0 : index
    %324 = vector.load %arg10[%c44, %c0_178, %c0_179] : memref<64x64x128xbf16, #tpu.memory_space<vmem>>, vector<1x64x128xbf16>
    %325 = vector.shape_cast %324 : vector<1x64x128xbf16> to vector<64x128xbf16>
    %cst_180 = arith.constant dense<0.000000e+00> : vector<8x128xf32>
    %326 = tpu.matmul %323, %325, %cst_180 {dimension_numbers = #tpu.dot_dimension_numbers<[1], [0], [0], [1], [0, 0, 1, 1], [], []>} : vector<8x64xbf16>, vector<64x128xbf16>, vector<8x128xf32> -> vector<8x128xf32>
    %327 = arith.addf %321, %326 : vector<8x128xf32>
    %328 = vector.extract_strided_slice %56 {offsets = [360, 0], sizes = [8, 64], strides = [1, 1]} : vector<512x64xf32> to vector<8x64xf32>
    %329 = arith.truncf %328 : vector<8x64xf32> to vector<8x64xbf16>
    %c45 = arith.constant 45 : index
    %c0_181 = arith.constant 0 : index
    %c0_182 = arith.constant 0 : index
    %330 = vector.load %arg10[%c45, %c0_181, %c0_182] : memref<64x64x128xbf16, #tpu.memory_space<vmem>>, vector<1x64x128xbf16>
    %331 = vector.shape_cast %330 : vector<1x64x128xbf16> to vector<64x128xbf16>
    %cst_183 = arith.constant dense<0.000000e+00> : vector<8x128xf32>
    %332 = tpu.matmul %329, %331, %cst_183 {dimension_numbers = #tpu.dot_dimension_numbers<[1], [0], [0], [1], [0, 0, 1, 1], [], []>} : vector<8x64xbf16>, vector<64x128xbf16>, vector<8x128xf32> -> vector<8x128xf32>
    %333 = arith.addf %327, %332 : vector<8x128xf32>
    %334 = vector.extract_strided_slice %56 {offsets = [368, 0], sizes = [8, 64], strides = [1, 1]} : vector<512x64xf32> to vector<8x64xf32>
    %335 = arith.truncf %334 : vector<8x64xf32> to vector<8x64xbf16>
    %c46 = arith.constant 46 : index
    %c0_184 = arith.constant 0 : index
    %c0_185 = arith.constant 0 : index
    %336 = vector.load %arg10[%c46, %c0_184, %c0_185] : memref<64x64x128xbf16, #tpu.memory_space<vmem>>, vector<1x64x128xbf16>
    %337 = vector.shape_cast %336 : vector<1x64x128xbf16> to vector<64x128xbf16>
    %cst_186 = arith.constant dense<0.000000e+00> : vector<8x128xf32>
    %338 = tpu.matmul %335, %337, %cst_186 {dimension_numbers = #tpu.dot_dimension_numbers<[1], [0], [0], [1], [0, 0, 1, 1], [], []>} : vector<8x64xbf16>, vector<64x128xbf16>, vector<8x128xf32> -> vector<8x128xf32>
    %339 = arith.addf %333, %338 : vector<8x128xf32>
    %340 = vector.extract_strided_slice %56 {offsets = [376, 0], sizes = [8, 64], strides = [1, 1]} : vector<512x64xf32> to vector<8x64xf32>
    %341 = arith.truncf %340 : vector<8x64xf32> to vector<8x64xbf16>
    %c47 = arith.constant 47 : index
    %c0_187 = arith.constant 0 : index
    %c0_188 = arith.constant 0 : index
    %342 = vector.load %arg10[%c47, %c0_187, %c0_188] : memref<64x64x128xbf16, #tpu.memory_space<vmem>>, vector<1x64x128xbf16>
    %343 = vector.shape_cast %342 : vector<1x64x128xbf16> to vector<64x128xbf16>
    %cst_189 = arith.constant dense<0.000000e+00> : vector<8x128xf32>
    %344 = tpu.matmul %341, %343, %cst_189 {dimension_numbers = #tpu.dot_dimension_numbers<[1], [0], [0], [1], [0, 0, 1, 1], [], []>} : vector<8x64xbf16>, vector<64x128xbf16>, vector<8x128xf32> -> vector<8x128xf32>
    %345 = arith.addf %339, %344 : vector<8x128xf32>
    %346 = vector.extract_strided_slice %56 {offsets = [384, 0], sizes = [8, 64], strides = [1, 1]} : vector<512x64xf32> to vector<8x64xf32>
    %347 = arith.truncf %346 : vector<8x64xf32> to vector<8x64xbf16>
    %c48 = arith.constant 48 : index
    %c0_190 = arith.constant 0 : index
    %c0_191 = arith.constant 0 : index
    %348 = vector.load %arg10[%c48, %c0_190, %c0_191] : memref<64x64x128xbf16, #tpu.memory_space<vmem>>, vector<1x64x128xbf16>
    %349 = vector.shape_cast %348 : vector<1x64x128xbf16> to vector<64x128xbf16>
    %cst_192 = arith.constant dense<0.000000e+00> : vector<8x128xf32>
    %350 = tpu.matmul %347, %349, %cst_192 {dimension_numbers = #tpu.dot_dimension_numbers<[1], [0], [0], [1], [0, 0, 1, 1], [], []>} : vector<8x64xbf16>, vector<64x128xbf16>, vector<8x128xf32> -> vector<8x128xf32>
    %351 = arith.addf %345, %350 : vector<8x128xf32>
    %352 = vector.extract_strided_slice %56 {offsets = [392, 0], sizes = [8, 64], strides = [1, 1]} : vector<512x64xf32> to vector<8x64xf32>
    %353 = arith.truncf %352 : vector<8x64xf32> to vector<8x64xbf16>
    %c49 = arith.constant 49 : index
    %c0_193 = arith.constant 0 : index
    %c0_194 = arith.constant 0 : index
    %354 = vector.load %arg10[%c49, %c0_193, %c0_194] : memref<64x64x128xbf16, #tpu.memory_space<vmem>>, vector<1x64x128xbf16>
    %355 = vector.shape_cast %354 : vector<1x64x128xbf16> to vector<64x128xbf16>
    %cst_195 = arith.constant dense<0.000000e+00> : vector<8x128xf32>
    %356 = tpu.matmul %353, %355, %cst_195 {dimension_numbers = #tpu.dot_dimension_numbers<[1], [0], [0], [1], [0, 0, 1, 1], [], []>} : vector<8x64xbf16>, vector<64x128xbf16>, vector<8x128xf32> -> vector<8x128xf32>
    %357 = arith.addf %351, %356 : vector<8x128xf32>
    %358 = vector.extract_strided_slice %56 {offsets = [400, 0], sizes = [8, 64], strides = [1, 1]} : vector<512x64xf32> to vector<8x64xf32>
    %359 = arith.truncf %358 : vector<8x64xf32> to vector<8x64xbf16>
    %c50 = arith.constant 50 : index
    %c0_196 = arith.constant 0 : index
    %c0_197 = arith.constant 0 : index
    %360 = vector.load %arg10[%c50, %c0_196, %c0_197] : memref<64x64x128xbf16, #tpu.memory_space<vmem>>, vector<1x64x128xbf16>
    %361 = vector.shape_cast %360 : vector<1x64x128xbf16> to vector<64x128xbf16>
    %cst_198 = arith.constant dense<0.000000e+00> : vector<8x128xf32>
    %362 = tpu.matmul %359, %361, %cst_198 {dimension_numbers = #tpu.dot_dimension_numbers<[1], [0], [0], [1], [0, 0, 1, 1], [], []>} : vector<8x64xbf16>, vector<64x128xbf16>, vector<8x128xf32> -> vector<8x128xf32>
    %363 = arith.addf %357, %362 : vector<8x128xf32>
    %364 = vector.extract_strided_slice %56 {offsets = [408, 0], sizes = [8, 64], strides = [1, 1]} : vector<512x64xf32> to vector<8x64xf32>
    %365 = arith.truncf %364 : vector<8x64xf32> to vector<8x64xbf16>
    %c51 = arith.constant 51 : index
    %c0_199 = arith.constant 0 : index
    %c0_200 = arith.constant 0 : index
    %366 = vector.load %arg10[%c51, %c0_199, %c0_200] : memref<64x64x128xbf16, #tpu.memory_space<vmem>>, vector<1x64x128xbf16>
    %367 = vector.shape_cast %366 : vector<1x64x128xbf16> to vector<64x128xbf16>
    %cst_201 = arith.constant dense<0.000000e+00> : vector<8x128xf32>
    %368 = tpu.matmul %365, %367, %cst_201 {dimension_numbers = #tpu.dot_dimension_numbers<[1], [0], [0], [1], [0, 0, 1, 1], [], []>} : vector<8x64xbf16>, vector<64x128xbf16>, vector<8x128xf32> -> vector<8x128xf32>
    %369 = arith.addf %363, %368 : vector<8x128xf32>
    %370 = vector.extract_strided_slice %56 {offsets = [416, 0], sizes = [8, 64], strides = [1, 1]} : vector<512x64xf32> to vector<8x64xf32>
    %371 = arith.truncf %370 : vector<8x64xf32> to vector<8x64xbf16>
    %c52 = arith.constant 52 : index
    %c0_202 = arith.constant 0 : index
    %c0_203 = arith.constant 0 : index
    %372 = vector.load %arg10[%c52, %c0_202, %c0_203] : memref<64x64x128xbf16, #tpu.memory_space<vmem>>, vector<1x64x128xbf16>
    %373 = vector.shape_cast %372 : vector<1x64x128xbf16> to vector<64x128xbf16>
    %cst_204 = arith.constant dense<0.000000e+00> : vector<8x128xf32>
    %374 = tpu.matmul %371, %373, %cst_204 {dimension_numbers = #tpu.dot_dimension_numbers<[1], [0], [0], [1], [0, 0, 1, 1], [], []>} : vector<8x64xbf16>, vector<64x128xbf16>, vector<8x128xf32> -> vector<8x128xf32>
    %375 = arith.addf %369, %374 : vector<8x128xf32>
    %376 = vector.extract_strided_slice %56 {offsets = [424, 0], sizes = [8, 64], strides = [1, 1]} : vector<512x64xf32> to vector<8x64xf32>
    %377 = arith.truncf %376 : vector<8x64xf32> to vector<8x64xbf16>
    %c53 = arith.constant 53 : index
    %c0_205 = arith.constant 0 : index
    %c0_206 = arith.constant 0 : index
    %378 = vector.load %arg10[%c53, %c0_205, %c0_206] : memref<64x64x128xbf16, #tpu.memory_space<vmem>>, vector<1x64x128xbf16>
    %379 = vector.shape_cast %378 : vector<1x64x128xbf16> to vector<64x128xbf16>
    %cst_207 = arith.constant dense<0.000000e+00> : vector<8x128xf32>
    %380 = tpu.matmul %377, %379, %cst_207 {dimension_numbers = #tpu.dot_dimension_numbers<[1], [0], [0], [1], [0, 0, 1, 1], [], []>} : vector<8x64xbf16>, vector<64x128xbf16>, vector<8x128xf32> -> vector<8x128xf32>
    %381 = arith.addf %375, %380 : vector<8x128xf32>
    %382 = vector.extract_strided_slice %56 {offsets = [432, 0], sizes = [8, 64], strides = [1, 1]} : vector<512x64xf32> to vector<8x64xf32>
    %383 = arith.truncf %382 : vector<8x64xf32> to vector<8x64xbf16>
    %c54 = arith.constant 54 : index
    %c0_208 = arith.constant 0 : index
    %c0_209 = arith.constant 0 : index
    %384 = vector.load %arg10[%c54, %c0_208, %c0_209] : memref<64x64x128xbf16, #tpu.memory_space<vmem>>, vector<1x64x128xbf16>
    %385 = vector.shape_cast %384 : vector<1x64x128xbf16> to vector<64x128xbf16>
    %cst_210 = arith.constant dense<0.000000e+00> : vector<8x128xf32>
    %386 = tpu.matmul %383, %385, %cst_210 {dimension_numbers = #tpu.dot_dimension_numbers<[1], [0], [0], [1], [0, 0, 1, 1], [], []>} : vector<8x64xbf16>, vector<64x128xbf16>, vector<8x128xf32> -> vector<8x128xf32>
    %387 = arith.addf %381, %386 : vector<8x128xf32>
    %388 = vector.extract_strided_slice %56 {offsets = [440, 0], sizes = [8, 64], strides = [1, 1]} : vector<512x64xf32> to vector<8x64xf32>
    %389 = arith.truncf %388 : vector<8x64xf32> to vector<8x64xbf16>
    %c55 = arith.constant 55 : index
    %c0_211 = arith.constant 0 : index
    %c0_212 = arith.constant 0 : index
    %390 = vector.load %arg10[%c55, %c0_211, %c0_212] : memref<64x64x128xbf16, #tpu.memory_space<vmem>>, vector<1x64x128xbf16>
    %391 = vector.shape_cast %390 : vector<1x64x128xbf16> to vector<64x128xbf16>
    %cst_213 = arith.constant dense<0.000000e+00> : vector<8x128xf32>
    %392 = tpu.matmul %389, %391, %cst_213 {dimension_numbers = #tpu.dot_dimension_numbers<[1], [0], [0], [1], [0, 0, 1, 1], [], []>} : vector<8x64xbf16>, vector<64x128xbf16>, vector<8x128xf32> -> vector<8x128xf32>
    %393 = arith.addf %387, %392 : vector<8x128xf32>
    %394 = vector.extract_strided_slice %56 {offsets = [448, 0], sizes = [8, 64], strides = [1, 1]} : vector<512x64xf32> to vector<8x64xf32>
    %395 = arith.truncf %394 : vector<8x64xf32> to vector<8x64xbf16>
    %c56 = arith.constant 56 : index
    %c0_214 = arith.constant 0 : index
    %c0_215 = arith.constant 0 : index
    %396 = vector.load %arg10[%c56, %c0_214, %c0_215] : memref<64x64x128xbf16, #tpu.memory_space<vmem>>, vector<1x64x128xbf16>
    %397 = vector.shape_cast %396 : vector<1x64x128xbf16> to vector<64x128xbf16>
    %cst_216 = arith.constant dense<0.000000e+00> : vector<8x128xf32>
    %398 = tpu.matmul %395, %397, %cst_216 {dimension_numbers = #tpu.dot_dimension_numbers<[1], [0], [0], [1], [0, 0, 1, 1], [], []>} : vector<8x64xbf16>, vector<64x128xbf16>, vector<8x128xf32> -> vector<8x128xf32>
    %399 = arith.addf %393, %398 : vector<8x128xf32>
    %400 = vector.extract_strided_slice %56 {offsets = [456, 0], sizes = [8, 64], strides = [1, 1]} : vector<512x64xf32> to vector<8x64xf32>
    %401 = arith.truncf %400 : vector<8x64xf32> to vector<8x64xbf16>
    %c57 = arith.constant 57 : index
    %c0_217 = arith.constant 0 : index
    %c0_218 = arith.constant 0 : index
    %402 = vector.load %arg10[%c57, %c0_217, %c0_218] : memref<64x64x128xbf16, #tpu.memory_space<vmem>>, vector<1x64x128xbf16>
    %403 = vector.shape_cast %402 : vector<1x64x128xbf16> to vector<64x128xbf16>
    %cst_219 = arith.constant dense<0.000000e+00> : vector<8x128xf32>
    %404 = tpu.matmul %401, %403, %cst_219 {dimension_numbers = #tpu.dot_dimension_numbers<[1], [0], [0], [1], [0, 0, 1, 1], [], []>} : vector<8x64xbf16>, vector<64x128xbf16>, vector<8x128xf32> -> vector<8x128xf32>
    %405 = arith.addf %399, %404 : vector<8x128xf32>
    %406 = vector.extract_strided_slice %56 {offsets = [464, 0], sizes = [8, 64], strides = [1, 1]} : vector<512x64xf32> to vector<8x64xf32>
    %407 = arith.truncf %406 : vector<8x64xf32> to vector<8x64xbf16>
    %c58 = arith.constant 58 : index
    %c0_220 = arith.constant 0 : index
    %c0_221 = arith.constant 0 : index
    %408 = vector.load %arg10[%c58, %c0_220, %c0_221] : memref<64x64x128xbf16, #tpu.memory_space<vmem>>, vector<1x64x128xbf16>
    %409 = vector.shape_cast %408 : vector<1x64x128xbf16> to vector<64x128xbf16>
    %cst_222 = arith.constant dense<0.000000e+00> : vector<8x128xf32>
    %410 = tpu.matmul %407, %409, %cst_222 {dimension_numbers = #tpu.dot_dimension_numbers<[1], [0], [0], [1], [0, 0, 1, 1], [], []>} : vector<8x64xbf16>, vector<64x128xbf16>, vector<8x128xf32> -> vector<8x128xf32>
    %411 = arith.addf %405, %410 : vector<8x128xf32>
    %412 = vector.extract_strided_slice %56 {offsets = [472, 0], sizes = [8, 64], strides = [1, 1]} : vector<512x64xf32> to vector<8x64xf32>
    %413 = arith.truncf %412 : vector<8x64xf32> to vector<8x64xbf16>
    %c59 = arith.constant 59 : index
    %c0_223 = arith.constant 0 : index
    %c0_224 = arith.constant 0 : index
    %414 = vector.load %arg10[%c59, %c0_223, %c0_224] : memref<64x64x128xbf16, #tpu.memory_space<vmem>>, vector<1x64x128xbf16>
    %415 = vector.shape_cast %414 : vector<1x64x128xbf16> to vector<64x128xbf16>
    %cst_225 = arith.constant dense<0.000000e+00> : vector<8x128xf32>
    %416 = tpu.matmul %413, %415, %cst_225 {dimension_numbers = #tpu.dot_dimension_numbers<[1], [0], [0], [1], [0, 0, 1, 1], [], []>} : vector<8x64xbf16>, vector<64x128xbf16>, vector<8x128xf32> -> vector<8x128xf32>
    %417 = arith.addf %411, %416 : vector<8x128xf32>
    %418 = vector.extract_strided_slice %56 {offsets = [480, 0], sizes = [8, 64], strides = [1, 1]} : vector<512x64xf32> to vector<8x64xf32>
    %419 = arith.truncf %418 : vector<8x64xf32> to vector<8x64xbf16>
    %c60 = arith.constant 60 : index
    %c0_226 = arith.constant 0 : index
    %c0_227 = arith.constant 0 : index
    %420 = vector.load %arg10[%c60, %c0_226, %c0_227] : memref<64x64x128xbf16, #tpu.memory_space<vmem>>, vector<1x64x128xbf16>
    %421 = vector.shape_cast %420 : vector<1x64x128xbf16> to vector<64x128xbf16>
    %cst_228 = arith.constant dense<0.000000e+00> : vector<8x128xf32>
    %422 = tpu.matmul %419, %421, %cst_228 {dimension_numbers = #tpu.dot_dimension_numbers<[1], [0], [0], [1], [0, 0, 1, 1], [], []>} : vector<8x64xbf16>, vector<64x128xbf16>, vector<8x128xf32> -> vector<8x128xf32>
    %423 = arith.addf %417, %422 : vector<8x128xf32>
    %424 = vector.extract_strided_slice %56 {offsets = [488, 0], sizes = [8, 64], strides = [1, 1]} : vector<512x64xf32> to vector<8x64xf32>
    %425 = arith.truncf %424 : vector<8x64xf32> to vector<8x64xbf16>
    %c61 = arith.constant 61 : index
    %c0_229 = arith.constant 0 : index
    %c0_230 = arith.constant 0 : index
    %426 = vector.load %arg10[%c61, %c0_229, %c0_230] : memref<64x64x128xbf16, #tpu.memory_space<vmem>>, vector<1x64x128xbf16>
    %427 = vector.shape_cast %426 : vector<1x64x128xbf16> to vector<64x128xbf16>
    %cst_231 = arith.constant dense<0.000000e+00> : vector<8x128xf32>
    %428 = tpu.matmul %425, %427, %cst_231 {dimension_numbers = #tpu.dot_dimension_numbers<[1], [0], [0], [1], [0, 0, 1, 1], [], []>} : vector<8x64xbf16>, vector<64x128xbf16>, vector<8x128xf32> -> vector<8x128xf32>
    %429 = arith.addf %423, %428 : vector<8x128xf32>
    %430 = vector.extract_strided_slice %56 {offsets = [496, 0], sizes = [8, 64], strides = [1, 1]} : vector<512x64xf32> to vector<8x64xf32>
    %431 = arith.truncf %430 : vector<8x64xf32> to vector<8x64xbf16>
    %c62 = arith.constant 62 : index
    %c0_232 = arith.constant 0 : index
    %c0_233 = arith.constant 0 : index
    %432 = vector.load %arg10[%c62, %c0_232, %c0_233] : memref<64x64x128xbf16, #tpu.memory_space<vmem>>, vector<1x64x128xbf16>
    %433 = vector.shape_cast %432 : vector<1x64x128xbf16> to vector<64x128xbf16>
    %cst_234 = arith.constant dense<0.000000e+00> : vector<8x128xf32>
    %434 = tpu.matmul %431, %433, %cst_234 {dimension_numbers = #tpu.dot_dimension_numbers<[1], [0], [0], [1], [0, 0, 1, 1], [], []>} : vector<8x64xbf16>, vector<64x128xbf16>, vector<8x128xf32> -> vector<8x128xf32>
    %435 = arith.addf %429, %434 : vector<8x128xf32>
    %436 = vector.extract_strided_slice %56 {offsets = [504, 0], sizes = [8, 64], strides = [1, 1]} : vector<512x64xf32> to vector<8x64xf32>
    %437 = arith.truncf %436 : vector<8x64xf32> to vector<8x64xbf16>
    %c63 = arith.constant 63 : index
    %c0_235 = arith.constant 0 : index
    %c0_236 = arith.constant 0 : index
    %438 = vector.load %arg10[%c63, %c0_235, %c0_236] : memref<64x64x128xbf16, #tpu.memory_space<vmem>>, vector<1x64x128xbf16>
    %439 = vector.shape_cast %438 : vector<1x64x128xbf16> to vector<64x128xbf16>
    %cst_237 = arith.constant dense<0.000000e+00> : vector<8x128xf32>
    %440 = tpu.matmul %437, %439, %cst_237 {dimension_numbers = #tpu.dot_dimension_numbers<[1], [0], [0], [1], [0, 0, 1, 1], [], []>} : vector<8x64xbf16>, vector<64x128xbf16>, vector<8x128xf32> -> vector<8x128xf32>
    %441 = arith.addf %435, %440 : vector<8x128xf32>
    %c0_238 = arith.constant 0 : index
    %c0_239 = arith.constant 0 : index
    %442 = vector.load %arg11[%c0_238, %c0_239] : memref<1x128xf32, #tpu.memory_space<vmem>>, vector<1x128xf32>
    %443 = vector.broadcast %442 : vector<1x128xf32> to vector<8x128xf32>
    %444 = arith.addf %441, %443 : vector<8x128xf32>
    %cst_240 = arith.constant 0.000000e+00 : f32
    %445 = vector.broadcast %cst_240 : f32 to vector<8x128xf32>
    %446 = arith.maximumf %444, %445 : vector<8x128xf32>
    %c0_241 = arith.constant 0 : index
    %c0_242 = arith.constant 0 : index
    %447 = vector.load %arg12[%c0_241, %c0_242] : memref<128x4xf32, #tpu.memory_space<vmem>>, vector<128x4xf32>
    %cst_243 = arith.constant dense<0.000000e+00> : vector<8x4xf32>
    %448 = tpu.matmul %446, %447, %cst_243 {dimension_numbers = #tpu.dot_dimension_numbers<[1], [0], [0], [1], [0, 0, 1, 1], [], []>} : vector<8x128xf32>, vector<128x4xf32>, vector<8x4xf32> -> vector<8x4xf32>
    %c0_244 = arith.constant 0 : index
    %c0_245 = arith.constant 0 : index
    %449 = vector.load %arg13[%c0_244, %c0_245] : memref<1x4xf32, #tpu.memory_space<vmem>>, vector<1x4xf32>
    %450 = vector.broadcast %449 : vector<1x4xf32> to vector<8x4xf32>
    %451 = arith.addf %448, %450 : vector<8x4xf32>
    %c0_246 = arith.constant 0 : index
    %c0_247 = arith.constant 0 : index
    %452 = vector.load %arg14[%c0_246, %c0_247] : memref<8x4xf32, #tpu.memory_space<vmem>>, vector<8x4xf32>
    tpu.vector_store %arg14[%c0_246, %c0_247], %451 {strides = array<i32>} : memref<8x4xf32, #tpu.memory_space<vmem>>, vector<8x4xf32>,
    return
  }
  func.func @transform_0(%arg0: i32) -> (i32, i32, i32, i32) {
    %c0_i32 = arith.constant 0 : i32
    %c0_i32_0 = arith.constant 0 : i32
    %c0_i32_1 = arith.constant 0 : i32
    %c0_i32_2 = arith.constant 0 : i32
    return %arg0, %c0_i32, %c0_i32_0, %c0_i32_1 : i32, i32, i32, i32
  }
  func.func @transform_1(%arg0: i32) -> (i32, i32) {
    %c0_i32 = arith.constant 0 : i32
    %c0_i32_0 = arith.constant 0 : i32
    %c0_i32_1 = arith.constant 0 : i32
    return %c0_i32, %c0_i32_0 : i32, i32
  }
  func.func @transform_2(%arg0: i32) -> (i32, i32) {
    %c0_i32 = arith.constant 0 : i32
    %c0_i32_0 = arith.constant 0 : i32
    %c0_i32_1 = arith.constant 0 : i32
    return %c0_i32, %c0_i32_0 : i32, i32
  }
  func.func @transform_3(%arg0: i32) -> (i32, i32) {
    %c0_i32 = arith.constant 0 : i32
    %c0_i32_0 = arith.constant 0 : i32
    %c0_i32_1 = arith.constant 0 : i32
    return %c0_i32, %c0_i32_0 : i32, i32
  }
  func.func @transform_4(%arg0: i32) -> (i32, i32) {
    %c0_i32 = arith.constant 0 : i32
    %c0_i32_0 = arith.constant 0 : i32
    %c0_i32_1 = arith.constant 0 : i32
    return %c0_i32, %c0_i32_0 : i32, i32
  }
  func.func @transform_5(%arg0: i32) -> (i32, i32, i32) {
    %c0_i32 = arith.constant 0 : i32
    %c0_i32_0 = arith.constant 0 : i32
    %c0_i32_1 = arith.constant 0 : i32
    %c0_i32_2 = arith.constant 0 : i32
    return %c0_i32, %c0_i32_0, %c0_i32_1 : i32, i32, i32
  }
  func.func @transform_6(%arg0: i32) -> (i32, i32) {
    %c0_i32 = arith.constant 0 : i32
    %c0_i32_0 = arith.constant 0 : i32
    %c0_i32_1 = arith.constant 0 : i32
    return %c0_i32, %c0_i32_0 : i32, i32
  }
  func.func @transform_7(%arg0: i32) -> (i32, i32) {
    %c0_i32 = arith.constant 0 : i32
    %c0_i32_0 = arith.constant 0 : i32
    %c0_i32_1 = arith.constant 0 : i32
    return %c0_i32, %c0_i32_0 : i32, i32
  }
  func.func @transform_8(%arg0: i32) -> (i32, i32) {
    %c0_i32 = arith.constant 0 : i32
    %c0_i32_0 = arith.constant 0 : i32
    %c0_i32_1 = arith.constant 0 : i32
    return %c0_i32, %c0_i32_0 : i32, i32
  }
  func.func @transform_9(%arg0: i32) -> (i32, i32, i32) {
    %c0_i32 = arith.constant 0 : i32
    %c0_i32_0 = arith.constant 0 : i32
    %c0_i32_1 = arith.constant 0 : i32
    %c0_i32_2 = arith.constant 0 : i32
    return %c0_i32, %c0_i32_0, %c0_i32_1 : i32, i32, i32
  }
  func.func @transform_10(%arg0: i32) -> (i32, i32) {
    %c0_i32 = arith.constant 0 : i32
    %c0_i32_0 = arith.constant 0 : i32
    %c0_i32_1 = arith.constant 0 : i32
    return %c0_i32, %c0_i32_0 : i32, i32
  }
  func.func @transform_11(%arg0: i32) -> (i32, i32) {
    %c0_i32 = arith.constant 0 : i32
    %c0_i32_0 = arith.constant 0 : i32
    %c0_i32_1 = arith.constant 0 : i32
    return %c0_i32, %c0_i32_0 : i32, i32
  }
  func.func @transform_12(%arg0: i32) -> (i32, i32) {
    %c0_i32 = arith.constant 0 : i32
    %c0_i32_0 = arith.constant 0 : i32
    %c0_i32_1 = arith.constant 0 : i32
    return %c0_i32, %c0_i32_0 : i32, i32
  }
  func.func @transform_13(%arg0: i32) -> (i32, i32) {
    %c0_i32 = arith.constant 0 : i32
    %c0_i32_0 = arith.constant 0 : i32
    return %arg0, %c0_i32 : i32, i32
  }
}

</mosaic_0001>

<bundles_post_ra>
// kernel: motion_1dcnn_forward.1
= control target key start
LH: loop header
LB: loop body
LE: loop exit
PB: predicated region body
PF: predicated region fallthrough
CT: control target
= control target key end

     0   :  { %vm119_vm0 = vcmask 146432   ;;  %vm312_vm1 = vcmask 1041408   ;;  %vm1822_vm2 = vcmask 523264   ;;  %vm12363_vm3 = vmmov 0   ;;  %s15872_s1 = inlined_call_operand.vmem [shape: f32[18,64], index: 1, kind: input, shape index: {}]   ;;  %s15873_s0 = inlined_call_operand.vmem [shape: f32[1,2,512,18], index: 0, kind: input, shape index: {}]   ;;  %s15874_s5 = inlined_call_operand.vmem [shape: f32[3,64,64], index: 5, kind: input, shape index: {}]   ;;  %s15875_s2 = inlined_call_operand.vmem [shape: f32[1,64], index: 2, kind: input, shape index: {}]   ;;  %s15876_s3 = inlined_call_operand.vmem [shape: f32[1,64], index: 3, kind: input, shape index: {}]   ;;  %s15877_s4 = inlined_call_operand.vmem [shape: f32[1,64], index: 4, kind: input, shape index: {}]   ;;  %s15878_s9 = inlined_call_operand.vmem [shape: bf16[64,64,128], index: 9, kind: input, shape index: {}]   ;;  %s15879_s6 = inlined_call_operand.vmem [shape: f32[1,64], index: 6, kind: input, shape index: {}]   ;;  %s15880_s7 = inlined_call_operand.vmem [shape: f32[1,64], index: 7, kind: input, shape index: {}]   ;;  %s15881_s8 = inlined_call_operand.vmem [shape: f32[1,64], index: 8, kind: input, shape index: {}]   ;;  %s15882_s11 = inlined_call_operand.vmem [shape: f32[128,4], index: 11, kind: input, shape index: {}]   ;;  %s15883_s10 = inlined_call_operand.vmem [shape: f32[1,128], index: 10, kind: input, shape index: {}]   ;;  %s15884_s12 = inlined_call_operand.vmem [shape: f32[1,4], index: 12, kind: input, shape index: {}]   ;;  %s15885_s13 = inlined_call_operand.vmem [shape: f32[8,4], index: 13, kind: output, shape index: {}]  }
   0x1   :  { %v45_v0 = vld [vmem:[%s15872_s1] sm:$0xff]  ;;  %v46_v1 = vld [vmem:[%s15872_s1 + $0x8] sm:$0xff]  ;;  %v106_v3 = vld [vmem:[%s15873_s0 + $0x1d0] sm:$0xff]  ;;  %vm8614_vm4 = vcmask 31744  }
   0x2   :  { %v11882_v2 = vpack.c.bf16 %v46_v1, %v45_v0  ;;  %v47_v4 = vld [vmem:[%s15872_s1 + $0x10] sm:$0x3]  ;;  %10632 = vmatprep.mubr.msk.f32.mxu1 %vm119_vm0, %v106_v3  ;;  %v48_v5 = vld [vmem:[%s15873_s0] sm:$0xff]  ;;  %v107_v6 = vld [vmem:[%s15873_s0 + $0x1d8] sm:$0xff] }
   0x3   :  { %10545 = vmatprep.mubr.msk.f32.mxu0 %vm119_vm0, %v48_v5  ;;  %v108_v7 = vld [vmem:[%s15873_s0 + $0x1e0] sm:$0xff]  ;;  %v49_v8 = vld [vmem:[%s15873_s0 + $0x8] sm:$0xff]  ;;  %v50_v9 = vld [vmem:[%s15873_s0 + $0x10] sm:$0xff] }
   0x4   :  { %11962 = vmatprep.subr.bf16.mxu1 %v11882_v2  ;;  %11883 = vmatprep.subr.bf16.mxu0 %v11882_v2  ;;  %v109_v10 = vld [vmem:[%s15873_s0 + $0x1e8] sm:$0xff]  ;;  %v110_v11 = vld [vmem:[%s15873_s0 + $0x1f0] sm:$0xff]  ;;  %v51_v12 = vld [vmem:[%s15873_s0 + $0x18] sm:$0xff] }
   0x5   :  { %11964 = vmatpush3.bf16.msra.mxu1 %v11882_v2  ;;  %11885 = vmatpush3.bf16.msra.mxu0 %v11882_v2  ;;  %v52_v13 = vld [vmem:[%s15873_s0 + $0x20] sm:$0xff]  ;;  %v111_v14 = vld [vmem:[%s15873_s0 + $0x1f8] sm:$0xff]  ;;  %v53_v16 = vld [vmem:[%s15873_s0 + $0x28] sm:$0xff] }
   0x6   :  { %11963 = vmatprep.subr.msk.mxu1 %vm312_vm1, %v47_v4  ;;  %10543 = vmatprep.subr.msk.mxu0 %vm312_vm1, %v47_v4  ;;  %v8688_v15 = vld [vmem:[%s15873_s0 + $0x200] sm:$0xff]  ;;  %v54_v17 = vld [vmem:[%s15873_s0 + $0x30] sm:$0xff]  ;;  %v8689_v18 = vld [vmem:[%s15873_s0 + $0x208] sm:$0xff] }
   0x7   :  { %v8690_v19 = vld [vmem:[%s15873_s0 + $0x210] sm:$0xff]  ;;  %v55_v20 = vld [vmem:[%s15873_s0 + $0x38] sm:$0xff]  ;;  %v56_v21 = vld [vmem:[%s15873_s0 + $0x40] sm:$0xff] }
   0x8   :  { %v8691_v22 = vld [vmem:[%s15873_s0 + $0x218] sm:$0xff]  ;;  %v8692_v23 = vld [vmem:[%s15873_s0 + $0x220] sm:$0xff]  ;;  %v57_v24 = vld [vmem:[%s15873_s0 + $0x48] sm:$0xff] }
   0x9   :  { %11965 = vmatpush3.msk.msra.mxu1 %vm312_vm1, %v47_v4  ;;  %10544 = vmatpush3.msk.msra.mxu0 %vm312_vm1, %v47_v4  ;;  %v58_v25 = vld [vmem:[%s15873_s0 + $0x50] sm:$0xff]  ;;  %v8693_v26 = vld [vmem:[%s15873_s0 + $0x228] sm:$0xff]  ;;  %v59_v28 = vld [vmem:[%s15873_s0 + $0x58] sm:$0xff] }
   0xa   :  { %10633 = vmatmul.mubr.msk.f32.vlgmr.msra.gmra.mrb[0].mxu1 %vm119_vm0, %v107_v6  ;;  %11887 = vmatprep.subr.bf16.mxu1 %v11882_v2  ;;  %v8694_v27 = vld [vmem:[%s15873_s0 + $0x230] sm:$0xff]  ;;  %v60_v29 = vld [vmem:[%s15873_s0 + $0x60] sm:$0xff]  ;;  %v8695_v30 = vld [vmem:[%s15873_s0 + $0x238] sm:$0xff] }
   0xb   :  { %11889 = vmatpush3.bf16.msra.mxu1 %v11882_v2  ;;  %10635 = vmatprep.mubr.msk.f32.mxu1 %vm119_vm0, %v108_v7  ;;  %v8696_v31 = vld [vmem:[%s15873_s0 + $0x240] sm:$0xff]  ;;  %v61_v32 = vld [vmem:[%s15873_s0 + $0x68] sm:$0xff]  ;;  %v62_v33 = vld [vmem:[%s15873_s0 + $0x70] sm:$0xff] }
   0xc   :  { %10645 = vmatprep.subr.msk.mxu1 %vm312_vm1, %v47_v4  ;;  %10546 = vmatmul.mubr.msk.f32.vlgmr.msra.gmra.mrb[0].mxu0 %vm119_vm0, %v49_v8  ;;  %v8697_v34 = vld [vmem:[%s15873_s0 + $0x248] sm:$0xff]  ;;  %v8698_v35 = vld [vmem:[%s15873_s0 + $0x250] sm:$0xff]  ;;  %v63_v36 = vld [vmem:[%s15873_s0 + $0x78] sm:$0xff] }
   0xd   :  { %10548 = vmatprep.mubr.msk.f32.mxu0 %vm119_vm0, %v50_v9  ;;  %v64_v37 = vld [vmem:[%s15873_s0 + $0x80] sm:$0xff]  ;;  %v8699_v38 = vld [vmem:[%s15873_s0 + $0x258] sm:$0xff]  ;;  %v65_v40 = vld [vmem:[%s15873_s0 + $0x88] sm:$0xff] }
   0xe   :  { %10636 = vmatmul.mubr.msk.f32.gmra.mrb[2].mxu1 %vm119_vm0, %v109_v10  ;;  %v8700_v39 = vld [vmem:[%s15873_s0 + $0x260] sm:$0xff]  ;;  %v8818_v42 = vld [vmem:[%s15874_s5 + $0x48] sm:$0xff]  ;;  %v66_v43 = vld [vmem:[%s15873_s0 + $0x90] sm:$0xff] }
   0xf   :  { %10638 = vmatprep.mubr.msk.f32.mxu1 %vm119_vm0, %v110_v11  ;;  %10646 = vmatpush3.msk.msra.mxu1 %vm312_vm1, %v47_v4  ;;  %v8817_v41 = vld [vmem:[%s15874_s5 + $0x40] sm:$0xff]  ;;  %v8701_v45 = vld [vmem:[%s15873_s0 + $0x268] sm:$0xff]  ;;  %v8702_v46 = vld [vmem:[%s15873_s0 + $0x270] sm:$0xff] }
  0x10   :  { %10549 = vmatmul.mubr.msk.f32.gmra.mrb[2].mxu0 %vm119_vm0, %v51_v12  ;;  %v11890_v44 = vpack.c.bf16 %v8818_v42, %v8817_v41  ;;  %v67_v47 = vld [vmem:[%s15873_s0 + $0x98] sm:$0xff]  ;;  %v8819_v48 = vld [vmem:[%s15874_s5 + $0x50] sm:$0xff]  ;;  %v68_v50 = vld [vmem:[%s15873_s0 + $0xa0] sm:$0xff] }
  0x11   :  { %10551 = vmatprep.mubr.msk.f32.mxu0 %vm119_vm0, %v52_v13  ;;  %v8820_v49 = vld [vmem:[%s15874_s5 + $0x58] sm:$0xff]  ;;  %v8821_v52 = vld [vmem:[%s15874_s5 + $0x60] sm:$0xff]  ;;  %v8822_v53 = vld [vmem:[%s15874_s5 + $0x68] sm:$0xff] }
  0x12   :  { %10639 = vmatmul.mubr.msk.f32.gmra.mrb[4].mxu1 %vm119_vm0, %v111_v14  ;;  %11891 = vmatprep.subr.bf16.mxu0 %v11890_v44  ;;  %v11894_v51 = vpack.c.bf16 %v8820_v49, %v8819_v48  ;;  %v8703_v54 = vld [vmem:[%s15873_s0 + $0x278] sm:$0xff]  ;;  %v11898_v55 = vpack.c.bf16 %v8822_v53, %v8821_v52  ;;  %v8823_v56 = vld [vmem:[%s15874_s5 + $0x70] sm:$0xff]  ;;  %v8704_v58 = vld [vmem:[%s15873_s0 + $0x280] sm:$0xff] }
  0x13   :  { %10647 = vmatprep.mubr.msk.f32.mxu1 %vm119_vm0, %v8688_v15  ;;  %11893 = vmatpush3.bf16.msra.mxu0 %v11890_v44  ;;  %v8824_v57 = vld [vmem:[%s15874_s5 + $0x78] sm:$0xff]  ;;  %v69_v59 = vld [vmem:[%s15873_s0 + $0xa8] sm:$0xff]  ;;  %v70_v60 = vld [vmem:[%s15873_s0 + $0xb0] sm:$0xff] }
  0x14   :  { %10552 = vmatmul.mubr.msk.f32.gmra.mrb[4].mxu0 %vm119_vm0, %v53_v16  ;;  %11895 = vmatprep.subr.bf16.mxu0 %v11894_v51  ;;  %v11902_v61 = vpack.c.bf16 %v8824_v57, %v8823_v56  ;;  %v8705_v62 = vld [vmem:[%s15873_s0 + $0x288] sm:$0xff]  ;;  %v8706_v63 = vld [vmem:[%s15873_s0 + $0x290] sm:$0xff]  ;;  %v71_v0 = vld [vmem:[%s15873_s0 + $0xb8] sm:$0xff] }
  0x15   :  { %10554 = vmatprep.mubr.msk.f32.mxu0 %vm119_vm0, %v54_v17  ;;  %v72_v1 = vld [vmem:[%s15873_s0 + $0xc0] sm:$0xff]  ;;  %v8707_v2 = vld [vmem:[%s15873_s0 + $0x298] sm:$0xff]  ;;  %v73_v4 = vld [vmem:[%s15873_s0 + $0xc8] sm:$0xff] }
  0x16   :  { %10648 = vmatmul.mubr.msk.f32.vlgmr.msra.gmra.mrb[6].mxu1 %vm119_vm0, %v8689_v18  ;;  %v8708_v3 = vld [vmem:[%s15873_s0 + $0x2a0] sm:$0xff]  ;;  %v74_v5 = vld [vmem:[%s15873_s0 + $0xd0] sm:$0xff]  ;;  %v8709_v6 = vld [vmem:[%s15873_s0 + $0x2a8] sm:$0xff] }
  0x17   :  { %10650 = vmatprep.mubr.msk.f32.mxu1 %vm119_vm0, %v8690_v19  ;;  %11897 = vmatpush3.bf16.msra.mxu0 %v11894_v51  ;;  %v8710_v7 = vld [vmem:[%s15873_s0 + $0x2b0] sm:$0xff]  ;;  %v75_v8 = vld [vmem:[%s15873_s0 + $0xd8] sm:$0xff]  ;;  %v76_v9 = vld [vmem:[%s15873_s0 + $0xe0] sm:$0xff] }
  0x18   :  { %10555 = vmatmul.mubr.msk.f32.gmra.mrb[6].mxu0 %vm119_vm0, %v55_v20  ;;  %11899 = vmatprep.subr.bf16.mxu0 %v11898_v55  ;;  %v8711_v10 = vld [vmem:[%s15873_s0 + $0x2b8] sm:$0xff]  ;;  %v8712_v11 = vld [vmem:[%s15873_s0 + $0x2c0] sm:$0xff]  ;;  %v77_v12 = vld [vmem:[%s15873_s0 + $0xe8] sm:$0xff] }
  0x19   :  { %10557 = vmatprep.mubr.msk.f32.mxu0 %vm119_vm0, %v56_v21  ;;  %v78_v13 = vld [vmem:[%s15873_s0 + $0xf0] sm:$0xff]  ;;  %v8713_v14 = vld [vmem:[%s15873_s0 + $0x2c8] sm:$0xff]  ;;  %v79_v16 = vld [vmem:[%s15873_s0 + $0xf8] sm:$0xff] }
  0x1a   :  { %10651 = vmatmul.mubr.msk.f32.gmra.mrb[8].mxu1 %vm119_vm0, %v8691_v22  ;;  %v8714_v15 = vld [vmem:[%s15873_s0 + $0x2d0] sm:$0xff]  ;;  %v80_v17 = vld [vmem:[%s15873_s0 + $0x100] sm:$0xff]  ;;  %v8715_v18 = vld [vmem:[%s15873_s0 + $0x2d8] sm:$0xff] }
  0x1b   :  { %10653 = vmatprep.mubr.msk.f32.mxu1 %vm119_vm0, %v8692_v23  ;;  %11901 = vmatpush3.bf16.msra.mxu0 %v11898_v55  ;;  %v8716_v19 = vld [vmem:[%s15873_s0 + $0x2e0] sm:$0xff]  ;;  %v81_v20 = vld [vmem:[%s15873_s0 + $0x108] sm:$0xff]  ;;  %v82_v21 = vld [vmem:[%s15873_s0 + $0x110] sm:$0xff] }
  0x1c   :  { %10558 = vmatmul.mubr.msk.f32.gmra.mrb[8].mxu0 %vm119_vm0, %v57_v24  ;;  %11903 = vmatprep.subr.bf16.mxu0 %v11902_v61  ;;  %v8717_v22 = vld [vmem:[%s15873_s0 + $0x2e8] sm:$0xff]  ;;  %v8718_v23 = vld [vmem:[%s15873_s0 + $0x2f0] sm:$0xff]  ;;  %v83_v24 = vld [vmem:[%s15873_s0 + $0x118] sm:$0xff] }
  0x1d   :  { %10560 = vmatprep.mubr.msk.f32.mxu0 %vm119_vm0, %v58_v25  ;;  %v84_v25 = vld [vmem:[%s15873_s0 + $0x120] sm:$0xff]  ;;  %v8727_v42 = vld [vmem:[%s15873_s0 + $0x338] sm:$0xff]  ;;  %v93_v44 = vld [vmem:[%s15873_s0 + $0x168] sm:$0xff] }
  0x1e   :  { %10654 = vmatmul.mubr.msk.f32.gmra.mrb[10].mxu1 %vm119_vm0, %v8693_v26  ;;  %v8719_v26 = vld [vmem:[%s15873_s0 + $0x2f8] sm:$0xff]  ;;  %v92_v41 = vld [vmem:[%s15873_s0 + $0x160] sm:$0xff]  ;;  %v97_v52 = vld [vmem:[%s15873_s0 + $0x188] sm:$0xff] }
  0x1f   :  { %10656 = vmatprep.mubr.msk.f32.mxu1 %vm119_vm0, %v8694_v27  ;;  %11905 = vmatpush3.bf16.msra.mxu0 %v11902_v61  ;;  %v8720_v27 = vld [vmem:[%s15873_s0 + $0x300] sm:$0xff]  ;;  %v95_v48 = vld [vmem:[%s15873_s0 + $0x178] sm:$0xff]  ;;  %v98_v53 = vld [vmem:[%s15873_s0 + $0x190] sm:$0xff] }
  0x20   :  { %10561 = vmatmul.mubr.msk.f32.gmra.mrb[10].mxu0 %vm119_vm0, %v59_v28  ;;  %v85_v28 = vld [vmem:[%s15873_s0 + $0x128] sm:$0xff]  ;;  %v96_v49 = vld [vmem:[%s15873_s0 + $0x180] sm:$0xff]  ;;  %v8734_v55 = vld [vmem:[%s15873_s0 + $0x370] sm:$0xff] }
  0x21   :  { %10563 = vmatprep.mubr.msk.f32.mxu0 %vm119_vm0, %v60_v29  ;;  %v86_v29 = vld [vmem:[%s15873_s0 + $0x130] sm:$0xff]  ;;  %v8732_v51 = vld [vmem:[%s15873_s0 + $0x360] sm:$0xff]  ;;  %v99_v56 = vld [vmem:[%s15873_s0 + $0x198] sm:$0xff] }
  0x22   :  { %10657 = vmatmul.mubr.msk.f32.gmra.mrb[12].mxu1 %vm119_vm0, %v8695_v30  ;;  %v8721_v30 = vld [vmem:[%s15873_s0 + $0x308] sm:$0xff]  ;;  %v100_v57 = vld [vmem:[%s15873_s0 + $0x1a0] sm:$0xff]  ;;  %v102_v61 = vld [vmem:[%s15873_s0 + $0x1b0] sm:$0xff] }
  0x23   :  { %10659 = vmatprep.mubr.msk.f32.mxu1 %vm119_vm0, %v8696_v31  ;;  %v8722_v31 = vld [vmem:[%s15873_s0 + $0x310] sm:$0xff] }
  0x24   :  { %10564 = vmatmul.mubr.msk.f32.gmra.mrb[12].mxu0 %vm119_vm0, %v61_v32  ;;  %v87_v32 = vld [vmem:[%s15873_s0 + $0x138] sm:$0xff] }
  0x25   :  { %10566 = vmatprep.mubr.msk.f32.mxu0 %vm119_vm0, %v62_v33  ;;  %v88_v33 = vld [vmem:[%s15873_s0 + $0x140] sm:$0xff] }
  0x26   :  { %10660 = vmatmul.mubr.msk.f32.gmra.mrb[14].mxu1 %vm119_vm0, %v8697_v34  ;;  %v8723_v34 = vld [vmem:[%s15873_s0 + $0x318] sm:$0xff] }
  0x27   :  { %10662 = vmatprep.mubr.msk.f32.mxu1 %vm119_vm0, %v8698_v35  ;;  %v8724_v35 = vld [vmem:[%s15873_s0 + $0x320] sm:$0xff] }
  0x28   :  { %10567 = vmatmul.mubr.msk.f32.gmra.mrb[14].mxu0 %vm119_vm0, %v63_v36  ;;  %v89_v36 = vld [vmem:[%s15873_s0 + $0x148] sm:$0xff] }
  0x29   :  { %10569 = vmatprep.mubr.msk.f32.mxu0 %vm119_vm0, %v64_v37  ;;  %v90_v37 = vld [vmem:[%s15873_s0 + $0x150] sm:$0xff] }
  0x2a   :  { %10663 = vmatmul.mubr.msk.f32.gmra.mrb[16].mxu1 %vm119_vm0, %v8699_v38  ;;  %v8725_v38 = vld [vmem:[%s15873_s0 + $0x328] sm:$0xff] }
  0x2b   :  { %10665 = vmatprep.mubr.msk.f32.mxu1 %vm119_vm0, %v8700_v39  ;;  %v8726_v39 = vld [vmem:[%s15873_s0 + $0x330] sm:$0xff] }
  0x2c   :  { %10570 = vmatmul.mubr.msk.f32.gmra.mrb[16].mxu0 %vm119_vm0, %v65_v40  ;;  %v91_v40 = vld [vmem:[%s15873_s0 + $0x158] sm:$0xff] }
  0x2d   :  { %10572 = vmatprep.mubr.msk.f32.mxu0 %vm119_vm0, %v66_v43  ;;  %v8728_v43 = vld [vmem:[%s15873_s0 + $0x340] sm:$0xff] }
  0x2e   :  { %10666 = vmatmul.mubr.msk.f32.gmra.mrb[18].mxu1 %vm119_vm0, %v8701_v45  ;;  %v94_v45 = vld [vmem:[%s15873_s0 + $0x170] sm:$0xff] }
  0x2f   :  { %10668 = vmatprep.mubr.msk.f32.mxu1 %vm119_vm0, %v8702_v46  ;;  %v8729_v46 = vld [vmem:[%s15873_s0 + $0x348] sm:$0xff] }
  0x30   :  { %10573 = vmatmul.mubr.msk.f32.gmra.mrb[18].mxu0 %vm119_vm0, %v67_v47  ;;  %v8730_v47 = vld [vmem:[%s15873_s0 + $0x350] sm:$0xff] }
  0x31   :  { %10575 = vmatprep.mubr.msk.f32.mxu0 %vm119_vm0, %v68_v50  ;;  %v8731_v50 = vld [vmem:[%s15873_s0 + $0x358] sm:$0xff] }
  0x32   :  { %10669 = vmatmul.mubr.msk.f32.gmra.mrb[20].mxu1 %vm119_vm0, %v8703_v54  ;;  %v8733_v54 = vld [vmem:[%s15873_s0 + $0x368] sm:$0xff] }
  0x33   :  { %10671 = vmatprep.mubr.msk.f32.mxu1 %vm119_vm0, %v8704_v58  ;;  %v8735_v58 = vld [vmem:[%s15873_s0 + $0x378] sm:$0xff] }
  0x34   :  { %10576 = vmatmul.mubr.msk.f32.gmra.mrb[20].mxu0 %vm119_vm0, %v69_v59  ;;  %v8736_v59 = vld [vmem:[%s15873_s0 + $0x380] sm:$0xff] }
  0x35   :  { %10578 = vmatprep.mubr.msk.f32.mxu0 %vm119_vm0, %v70_v60  ;;  %v101_v60 = vld [vmem:[%s15873_s0 + $0x1a8] sm:$0xff] }
  0x36   :  { %10672 = vmatmul.mubr.msk.f32.gmra.mrb[22].mxu1 %vm119_vm0, %v8705_v62  ;;  %v8737_v62 = vld [vmem:[%s15873_s0 + $0x388] sm:$0xff] }
  0x37   :  { %10674 = vmatprep.mubr.msk.f32.mxu1 %vm119_vm0, %v8706_v63  ;;  %v8738_v63 = vld [vmem:[%s15873_s0 + $0x390] sm:$0xff] }
  0x38   :  { %10579 = vmatmul.mubr.msk.f32.gmra.mrb[22].mxu0 %vm119_vm0, %v71_v0  ;;  %v103_v0 = vld [vmem:[%s15873_s0 + $0x1b8] sm:$0xff] }
  0x39   :  { %10581 = vmatprep.mubr.msk.f32.mxu0 %vm119_vm0, %v72_v1  ;;  %v104_v1 = vld [vmem:[%s15873_s0 + $0x1c0] sm:$0xff] }
  0x3a   :  { %10675 = vmatmul.mubr.msk.f32.gmra.mrb[24].mxu1 %vm119_vm0, %v8707_v2  ;;  %v8739_v2 = vld [vmem:[%s15873_s0 + $0x398] sm:$0xff] }
  0x3b   :  { %10677 = vmatprep.mubr.msk.f32.mxu1 %vm119_vm0, %v8708_v3  ;;  %v8740_v3 = vld [vmem:[%s15873_s0 + $0x3a0] sm:$0xff] }
  0x3c   :  { %10582 = vmatmul.mubr.msk.f32.gmra.mrb[24].mxu0 %vm119_vm0, %v73_v4  ;;  %v105_v4 = vld [vmem:[%s15873_s0 + $0x1c8] sm:$0xff] }
  0x3d   :  { %10584 = vmatprep.mubr.msk.f32.mxu0 %vm119_vm0, %v74_v5  ;;  %v8741_v5 = vld [vmem:[%s15873_s0 + $0x3a8] sm:$0xff] }
  0x3e   :  { %10678 = vmatmul.mubr.msk.f32.gmra.mrb[26].mxu1 %vm119_vm0, %v8709_v6  ;;  %v8742_v6 = vld [vmem:[%s15873_s0 + $0x3b0] sm:$0xff] }
  0x3f   :  { %10680 = vmatprep.mubr.msk.f32.mxu1 %vm119_vm0, %v8710_v7  ;;  %v8743_v7 = vld [vmem:[%s15873_s0 + $0x3b8] sm:$0xff] }
  0x40   :  { %10585 = vmatmul.mubr.msk.f32.gmra.mrb[26].mxu0 %vm119_vm0, %v75_v8  ;;  %v1805_v8 = vld [vmem:[%s15874_s5] sm:$0xff] }
  0x41   :  { %10587 = vmatprep.mubr.msk.f32.mxu0 %vm119_vm0, %v76_v9  ;;  %v1806_v9 = vld [vmem:[%s15874_s5 + $0x8] sm:$0xff] }
  0x42   :  { %10681 = vmatmul.mubr.msk.f32.gmra.mrb[28].mxu1 %vm119_vm0, %v8711_v10  ;;  %v8744_v10 = vld [vmem:[%s15873_s0 + $0x3c0] sm:$0xff] }
  0x43   :  { %10683 = vmatprep.mubr.msk.f32.mxu1 %vm119_vm0, %v8712_v11  ;;  %v12962_v11 = vpack.c.bf16 %v1806_v9, %v1805_v8 }
  0x44   :  { %10588 = vmatmul.mubr.msk.f32.gmra.mrb[28].mxu0 %vm119_vm0, %v77_v12  ;;  %v8745_v12 = vld [vmem:[%s15873_s0 + $0x3c8] sm:$0xff] }
  0x45   :  { %10590 = vmatprep.mubr.msk.f32.mxu0 %vm119_vm0, %v78_v13  ;;  %11907 = vmatprep.subr.bf16.mxu0 %v12962_v11  ;;  %v8746_v13 = vld [vmem:[%s15873_s0 + $0x3d0] sm:$0xff] }
  0x46   :  { %10684 = vmatmul.mubr.msk.f32.gmra.mrb[30].mxu1 %vm119_vm0, %v8713_v14  ;;  %v8747_v14 = vld [vmem:[%s15873_s0 + $0x3d8] sm:$0xff] }
  0x47   :  { %10686 = vmatprep.mubr.msk.f32.mxu1 %vm119_vm0, %v8714_v15  ;;  %v8748_v15 = vld [vmem:[%s15873_s0 + $0x3e0] sm:$0xff] }
  0x48   :  { %10591 = vmatmul.mubr.msk.f32.gmra.mrb[30].mxu0 %vm119_vm0, %v79_v16  ;;  %v8749_v16 = vld [vmem:[%s15873_s0 + $0x3e8] sm:$0xff] }
  0x49   :  { %10593 = vmatprep.mubr.msk.f32.mxu0 %vm119_vm0, %v80_v17  ;;  %v8750_v17 = vld [vmem:[%s15873_s0 + $0x3f0] sm:$0xff] }
  0x4a   :  { %10687 = vmatmul.mubr.msk.f32.gmra.mrb[32].mxu1 %vm119_vm0, %v8715_v18  ;;  %v8751_v18 = vld [vmem:[%s15873_s0 + $0x3f8] sm:$0xff] }
  0x4b   :  { %10689 = vmatprep.mubr.msk.f32.mxu1 %vm119_vm0, %v8716_v19  ;;  %v12998_v19 = vld [vmem:[%s15875_s2] ss:$0 sm:$0xff] }
  0x4c   :  { %10594 = vmatmul.mubr.msk.f32.gmra.mrb[32].mxu0 %vm119_vm0, %v81_v20 }
  0x4d   :  { %10596 = vmatprep.mubr.msk.f32.mxu0 %vm119_vm0, %v82_v21  ;;  %v13003_v21 = vld [vmem:[%s15876_s3] ss:$0 sm:$0xff] }
  0x4e   :  { %10690 = vmatmul.mubr.msk.f32.gmra.mrb[34].mxu1 %vm119_vm0, %v8717_v22 }
  0x4f   :  { %10692 = vmatprep.mubr.msk.f32.mxu1 %vm119_vm0, %v8718_v23 }
  0x50   :  { %10597 = vmatmul.mubr.msk.f32.gmra.mrb[34].mxu0 %vm119_vm0, %v83_v24 }
  0x51   :  { %10599 = vmatprep.mubr.msk.f32.mxu0 %vm119_vm0, %v84_v25 }
  0x52   :  { %10693 = vmatmul.mubr.msk.f32.gmra.mrb[36].mxu1 %vm119_vm0, %v8719_v26 }
  0x53   :  { %10695 = vmatprep.mubr.msk.f32.mxu1 %vm119_vm0, %v8720_v27  ;;  %v13011_v27 = vld [vmem:[%s15877_s4] ss:$0 sm:$0xff] }
  0x54   :  { %10600 = vmatmul.mubr.msk.f32.gmra.mrb[36].mxu0 %vm119_vm0, %v85_v28 }
  0x55   :  { %10602 = vmatprep.mubr.msk.f32.mxu0 %vm119_vm0, %v86_v29 }
  0x56   :  { %10696 = vmatmul.mubr.msk.f32.gmra.mrb[38].mxu1 %vm119_vm0, %v8721_v30 }
  0x57   :  { %10698 = vmatprep.mubr.msk.f32.mxu1 %vm119_vm0, %v8722_v31 }
  0x58   :  { %10603 = vmatmul.mubr.msk.f32.gmra.mrb[38].mxu0 %vm119_vm0, %v87_v32 }
  0x59   :  { %10605 = vmatprep.mubr.msk.f32.mxu0 %vm119_vm0, %v88_v33  ;;  %v1807_v33 = vld [vmem:[%s15874_s5 + $0x10] sm:$0xff] }
  0x5a   :  { %10699 = vmatmul.mubr.msk.f32.gmra.mrb[40].mxu1 %vm119_vm0, %v8723_v34 }
  0x5b   :  { %10701 = vmatprep.mubr.msk.f32.mxu1 %vm119_vm0, %v8724_v35 }
  0x5c   :  { %10606 = vmatmul.mubr.msk.f32.gmra.mrb[40].mxu0 %vm119_vm0, %v89_v36 }
  0x5d   :  { %10608 = vmatprep.mubr.msk.f32.mxu0 %vm119_vm0, %v90_v37  ;;  %v1808_v37 = vld [vmem:[%s15874_s5 + $0x18] sm:$0xff] }
  0x5e   :  { %10702 = vmatmul.mubr.msk.f32.gmra.mrb[42].mxu1 %vm119_vm0, %v8725_v38  ;;  %v1809_v38 = vld [vmem:[%s15874_s5 + $0x20] sm:$0xff] }
  0x5f   :  { %10704 = vmatprep.mubr.msk.f32.mxu1 %vm119_vm0, %v8726_v39  ;;  %v1810_v39 = vld [vmem:[%s15874_s5 + $0x28] sm:$0xff] }
  0x60   :  { %10609 = vmatmul.mubr.msk.f32.gmra.mrb[42].mxu0 %vm119_vm0, %v91_v40 }
  0x61   :  { %10611 = vmatprep.mubr.msk.f32.mxu0 %vm119_vm0, %v92_v41 }
  0x62   :  { %10705 = vmatmul.mubr.msk.f32.gmra.mrb[44].mxu1 %vm119_vm0, %v8727_v42 }
  0x63   :  { %10707 = vmatprep.mubr.msk.f32.mxu1 %vm119_vm0, %v8728_v43 }
  0x64   :  { %10612 = vmatmul.mubr.msk.f32.gmra.mrb[44].mxu0 %vm119_vm0, %v93_v44 }
  0x65   :  { %10614 = vmatprep.mubr.msk.f32.mxu0 %vm119_vm0, %v94_v45 }
  0x66   :  { %10708 = vmatmul.mubr.msk.f32.gmra.mrb[46].mxu1 %vm119_vm0, %v8729_v46 }
  0x67   :  { %10710 = vmatprep.mubr.msk.f32.mxu1 %vm119_vm0, %v8730_v47 }
  0x68   :  { %10615 = vmatmul.mubr.msk.f32.gmra.mrb[46].mxu0 %vm119_vm0, %v95_v48 }
  0x69   :  { %10617 = vmatprep.mubr.msk.f32.mxu0 %vm119_vm0, %v96_v49 }
  0x6a   :  { %10711 = vmatmul.mubr.msk.f32.gmra.mrb[48].mxu1 %vm119_vm0, %v8731_v50 }
  0x6b   :  { %10713 = vmatprep.mubr.msk.f32.mxu1 %vm119_vm0, %v8732_v51 }
  0x6c   :  { %10618 = vmatmul.mubr.msk.f32.gmra.mrb[48].mxu0 %vm119_vm0, %v97_v52  ;;  %v13045_v52 = vpack.c.bf16 %v1808_v37, %v1807_v33 }
  0x6d   :  { %10620 = vmatprep.mubr.msk.f32.mxu0 %vm119_vm0, %v98_v53  ;;  %v13047_v53 = vpack.c.bf16 %v1810_v39, %v1809_v38 }
  0x6e   :  { %10714 = vmatmul.mubr.msk.f32.gmra.mrb[50].mxu1 %vm119_vm0, %v8733_v54 }
  0x6f   :  { %10716 = vmatprep.mubr.msk.f32.mxu1 %vm119_vm0, %v8734_v55 }
  0x70   :  { %10621 = vmatmul.mubr.msk.f32.gmra.mrb[50].mxu0 %vm119_vm0, %v99_v56 }
  0x71   :  { %10623 = vmatprep.mubr.msk.f32.mxu0 %vm119_vm0, %v100_v57 }
  0x72   :  { %10717 = vmatmul.mubr.msk.f32.gmra.mrb[52].mxu1 %vm119_vm0, %v8735_v58 }
  0x73   :  { %10719 = vmatprep.mubr.msk.f32.mxu1 %vm119_vm0, %v8736_v59 }
  0x74   :  { %10624 = vmatmul.mubr.msk.f32.gmra.mrb[52].mxu0 %vm119_vm0, %v101_v60 }
  0x75   :  { %10626 = vmatprep.mubr.msk.f32.mxu0 %vm119_vm0, %v102_v61 }
  0x76   :  { %10720 = vmatmul.mubr.msk.f32.gmra.mrb[54].mxu1 %vm119_vm0, %v8737_v62 }
  0x77   :  { %10722 = vmatprep.mubr.msk.f32.mxu1 %vm119_vm0, %v8738_v63 }
  0x78   :  { %10627 = vmatmul.mubr.msk.f32.gmra.mrb[54].mxu0 %vm119_vm0, %v103_v0 }
  0x79   :  { %10629 = vmatprep.mubr.msk.f32.mxu0 %vm119_vm0, %v104_v1 }
  0x7a   :  { %10723 = vmatmul.mubr.msk.f32.gmra.mrb[56].mxu1 %vm119_vm0, %v8739_v2 }
  0x7b   :  { %10725 = vmatprep.mubr.msk.f32.mxu1 %vm119_vm0, %v8740_v3 }
  0x7c   :  { %10630 = vmatmul.mubr.msk.f32.gmra.mrb[56].mxu0 %vm119_vm0, %v105_v4 }
  0x7e   :  { %10726 = vmatmul.mubr.msk.f32.gmra.mrb[58].mxu1 %vm119_vm0, %v8741_v5 }
  0x7f   :  { %10728 = vmatprep.mubr.msk.f32.mxu1 %vm119_vm0, %v8742_v6 }
  0x82   :  { %10729 = vmatmul.mubr.msk.f32.gmra.mrb[60].mxu1 %vm119_vm0, %v8743_v7 }
  0x83   :  { %10731 = vmatprep.mubr.msk.f32.mxu1 %vm119_vm0, %v8744_v10 }
  0x86   :  { %10732 = vmatmul.mubr.msk.f32.gmra.mrb[62].mxu1 %vm119_vm0, %v8745_v12 }
  0x87   :  { %10734 = vmatprep.mubr.msk.f32.mxu1 %vm119_vm0, %v8746_v13 }
  0x8a   :  { %10735 = vmatmul.mubr.msk.f32.gmra.mrb[64].mxu1 %vm119_vm0, %v8747_v14 }
  0x8b   :  { %10737 = vmatprep.mubr.msk.f32.mxu1 %vm119_vm0, %v8748_v15 }
  0x8e   :  { %10738 = vmatmul.mubr.msk.f32.gmra.mrb[66].mxu1 %vm119_vm0, %v8749_v16 }
  0x8f   :  { %10740 = vmatprep.mubr.msk.f32.mxu1 %vm119_vm0, %v8750_v17 }
  0x92   :  { %10741 = vmatmul.mubr.msk.f32.gmra.mrb[68].mxu1 %vm119_vm0, %v8751_v18 }
  0xdd   :  { %v10634_v20 = vpop.f32.mrb[0].mxu1 }
  0xde   :  { %v678_v22 = vadd.f32 %v10634_v20, %v12998_v19  ;;  %v672_v23 = vpop.f32.mrb[1].mxu1 }
  0xdf   :  { %v673_v24 = vadd.f32 %v12998_v19, %v672_v23  ;;  %v10547_v25 = vpop.f32.mrb[0].mxu0 }
  0xe0   :  { %v767_v26 = vmul.f32 %v13003_v21, %v678_v22  ;;  %v388_v28 = vadd.f32 %v10547_v25, %v12998_v19  ;;  %v382_v29 = vpop.f32.mrb[1].mxu0 }
  0xe1   :  { %v766_v30 = vmul.f32 %v13003_v21, %v673_v24  ;;  %v10637_v31 = vpop.f32.mrb[2].mxu1  ;;  %v383_v32 = vadd.f32 %v12998_v19, %v382_v29 }
  0xe2   :  { %v688_v34 = vadd.f32 %v10637_v31, %v12998_v19  ;;  %v682_v35 = vpop.f32.mrb[3].mxu1  ;;  %v709_v36 = vmul.f32 %v13003_v21, %v388_v28  ;;  %v13031_v40 = vadd.f32 %v13011_v27, %v767_v26 }
  0xe3   :  { %v13034_v41 = vadd.f32 %v13011_v27, %v766_v30  ;;  %v683_v42 = vadd.f32 %v12998_v19, %v682_v35  ;;  %v708_v43 = vmul.f32 %v13003_v21, %v383_v32  ;;  %v10550_v44 = vpop.f32.mrb[2].mxu0 }
  0xe4   :  { %v769_v45 = vmul.f32 %v13003_v21, %v688_v34  ;;  %v13040_v46 = vadd.f32 %v13011_v27, %v709_v36  ;;  %v398_v47 = vadd.f32 %v10550_v44, %v12998_v19  ;;  %v392_v48 = vpop.f32.mrb[3].mxu0 }
  0xe5   :  { %v768_v49 = vmul.f32 %v13003_v21, %v683_v42  ;;  %v10640_v50 = vpop.f32.mrb[4].mxu1  ;;  %v393_v51 = vadd.f32 %v12998_v19, %v392_v48  ;;  %v13054_v57 = vadd.f32 %v13011_v27, %v708_v43 }
  0xe6   :  { %v13050_v54 = vadd.f32 %v13011_v27, %v769_v45  ;;  %v698_v55 = vadd.f32 %v10640_v50, %v12998_v19  ;;  %v692_v56 = vpop.f32.mrb[5].mxu1  ;;  %v711_v58 = vmul.f32 %v13003_v21, %v398_v47  ;;  %v844_v1 = vmax.f32 %v13040_v46, 0.0 }
  0xe7   :  { %v693_v61 = vadd.f32 %v12998_v19, %v692_v56  ;;  %v710_v62 = vmul.f32 %v13003_v21, %v393_v51  ;;  %v10553_v63 = vpop.f32.mrb[4].mxu0  ;;  %v13068_v5 = vadd.f32 %v13011_v27, %v768_v49  ;;  %v843_v13 = vmax.f32 %v13054_v57, 0.0 }
  0xe8   :  { %v771_v0 = vmul.f32 %v13003_v21, %v698_v55  ;;  %v13064_v2 = vadd.f32 %v13011_v27, %v711_v58  ;;  %v408_v3 = vadd.f32 %v10553_v63, %v12998_v19  ;;  %v402_v4 = vpop.f32.mrb[5].mxu0 }
  0xe9   :  { %v770_v6 = vmul.f32 %v13003_v21, %v693_v61  ;;  %v10649_v7 = vpop.f32.mrb[6].mxu1  ;;  %v13072_v8 = vadd.f32 %v13011_v27, %v710_v62  ;;  %v403_v9 = vadd.f32 %v12998_v19, %v402_v4 }
  0xea   :  { %v1236_v12 = vadd.f32 %v10649_v7, %v12998_v19  ;;  %v1230_v14 = vpop.f32.mrb[7].mxu1  ;;  %v713_v15 = vmul.f32 %v13003_v21, %v408_v3  ;;  %v13080_v16 = vadd.f32 %v13011_v27, %v771_v0  ;;  %v846_v18 = vmax.f32 %v13064_v2, 0.0 }
  0xeb   :  { %v1231_v17 = vadd.f32 %v12998_v19, %v1230_v14  ;;  %v712_v20 = vmul.f32 %v13003_v21, %v403_v9  ;;  %v10556_v22 = vpop.f32.mrb[6].mxu0  ;;  %v13086_v23 = vadd.f32 %v13011_v27, %v770_v6  ;;  %v845_v31 = vmax.f32 %v13072_v8, 0.0 }
  0xec   :  { %v1550_v24 = vmul.f32 %v13003_v21, %v1236_v12  ;;  %v13090_v25 = vadd.f32 %v13011_v27, %v713_v15  ;;  %v418_v26 = vadd.f32 %v10556_v22, %v12998_v19  ;;  %v412_v28 = vpop.f32.mrb[7].mxu0 }
  0xed   :  { %v1549_v29 = vmul.f32 %v13003_v21, %v1231_v17  ;;  %v10652_v30 = vpop.f32.mrb[8].mxu1  ;;  %v13096_v32 = vadd.f32 %v13011_v27, %v712_v20  ;;  %v413_v33 = vadd.f32 %v12998_v19, %v412_v28 }
  0xee   :  { %v1614_v34 = vadd.f32 %v13011_v27, %v1550_v24  ;;  %v1246_v35 = vadd.f32 %v10652_v30, %v12998_v19  ;;  %v1240_v36 = vpop.f32.mrb[9].mxu1  ;;  %v848_v37 = vmax.f32 %v13090_v25, 0.0  ;;  %v715_v38 = vmul.f32 %v13003_v21, %v418_v26 }
  0xef   :  { %v1613_v39 = vadd.f32 %v13011_v27, %v1549_v29  ;;  %v1241_v42 = vadd.f32 %v12998_v19, %v1240_v36  ;;  %v847_v43 = vmax.f32 %v13096_v32, 0.0  ;;  %v714_v44 = vmul.f32 %v13003_v21, %v413_v33  ;;  %v10559_v45 = vpop.f32.mrb[8].mxu0 }
  0xf0   :  { %v1678_v46 = vmax.f32 %v1614_v34, 0.0  ;;  %v1552_v47 = vmul.f32 %v13003_v21, %v1246_v35  ;;  %v13109_v48 = vadd.f32 %v13011_v27, %v715_v38  ;;  %v428_v49 = vadd.f32 %v10559_v45, %v12998_v19  ;;  %v422_v50 = vpop.f32.mrb[9].mxu0 }
  0xf1   :  { %v1677_v51 = vmax.f32 %v1613_v39, 0.0  ;;  %v1551_v55 = vmul.f32 %v13003_v21, %v1241_v42  ;;  %v10655_v56 = vpop.f32.mrb[10].mxu1  ;;  %v13114_v57 = vadd.f32 %v13011_v27, %v714_v44  ;;  %v423_v58 = vadd.f32 %v12998_v19, %v422_v50 }
  0xf2   :  { %v13117_v61 = vmax.f32 %v844_v1, %v1678_v46  ;;  %v1616_v62 = vadd.f32 %v13011_v27, %v1552_v47  ;;  %v1256_v63 = vadd.f32 %v10655_v56, %v12998_v19  ;;  %v1250_v0 = vpop.f32.mrb[11].mxu1  ;;  %v850_v2 = vmax.f32 %v13109_v48, 0.0 }
  0xf3   :  { %v13122_v3 = vmax.f32 %v843_v13, %v1677_v51  ;;  %v1615_v4 = vadd.f32 %v13011_v27, %v1551_v55  ;;  %v1251_v6 = vadd.f32 %v12998_v19, %v1250_v0  ;;  %v849_v7 = vmax.f32 %v13114_v57, 0.0  ;;  %v10562_v8 = vpop.f32.mrb[10].mxu0 }
  0xf4   :  { %v1680_v9 = vmax.f32 %v1616_v62, 0.0  ;;  %v1554_v1 = vmul.f32 %v13003_v21, %v1256_v63  ;;  %v717_v12 = vmul.f32 %v13003_v21, %v428_v49  ;;  %v716_v14 = vmul.f32 %v13003_v21, %v423_v58  ;;  %v432_v15 = vpop.f32.mrb[11].mxu0 }
  0xf5   :  { %v1679_v17 = vmax.f32 %v1615_v4, 0.0  ;;  %v1553_v20 = vmul.f32 %v13003_v21, %v1251_v6  ;;  %v10658_v13 = vpop.f32.mrb[12].mxu1  ;;  %10759 = vmatprep.mubr.msk.f32.mxu0 %vm1822_vm2, %v13122_v3  ;;  %v438_v22 = vadd.f32 %v10562_v8, %v12998_v19  ;;  %v433_v24 = vadd.f32 %v12998_v19, %v432_v15 }
  0xf6   :  { %v13135_v25 = vmax.f32 %v846_v18, %v1680_v9  ;;  %v1618_v26 = vadd.f32 %v13011_v27, %v1554_v1  ;;  %v1266_v28 = vadd.f32 %v10658_v13, %v12998_v19  ;;  %v1260_v29 = vpop.f32.mrb[13].mxu1  ;;  %10760 = vmatmul.mubr.msk.f32.vlgmr.msra.gmra.mrb[58].mxu0 %vm1822_vm2, %v13117_v61  ;;  %v13142_v30 = vadd.f32 %v13011_v27, %v717_v12 }
  0xf7   :  { %v13144_v33 = vmax.f32 %v845_v31, %v1679_v17  ;;  %v1617_v34 = vadd.f32 %v13011_v27, %v1553_v20  ;;  %v1261_v35 = vadd.f32 %v12998_v19, %v1260_v29  ;;  %11909 = vmatpush3.bf16.msra.mxu0 %v12962_v11  ;;  %v13150_v18 = vadd.f32 %v13011_v27, %v716_v14  ;;  %v10565_v36 = vpop.f32.mrb[12].mxu0 }
  0xf8   :  { %v1682_v38 = vmax.f32 %v1618_v26, 0.0  ;;  %v1556_v39 = vmul.f32 %v13003_v21, %v1266_v28  ;;  %v852_v42 = vmax.f32 %v13142_v30, 0.0  ;;  %v719_v44 = vmul.f32 %v13003_v21, %v438_v22  ;;  %v442_v45 = vpop.f32.mrb[13].mxu0  ;;  %11911 = vmatprep.subr.bf16.mxu0 %v13045_v52 }
  0xf9   :  { %v1681_v31 = vmax.f32 %v1617_v34, 0.0  ;;  %v1555_v46 = vmul.f32 %v13003_v21, %v1261_v35  ;;  %v10661_v47 = vpop.f32.mrb[14].mxu1  ;;  %10762 = vmatprep.mubr.msk.f32.mxu0 %vm1822_vm2, %v13144_v33  ;;  %v851_v11 = vmax.f32 %v13150_v18, 0.0  ;;  %v718_v49 = vmul.f32 %v13003_v21, %v433_v24 }
  0xfa   :  { %v13161_v50 = vmax.f32 %v848_v37, %v1682_v38  ;;  %v1620_v51 = vadd.f32 %v13011_v27, %v1556_v39  ;;  %v1276_v55 = vadd.f32 %v10661_v47, %v12998_v19  ;;  %v1270_v56 = vpop.f32.mrb[15].mxu1  ;;  %10763 = vmatmul.mubr.msk.f32.gmra.mrb[60].mxu0 %vm1822_vm2, %v13135_v25  ;;  %v13168_v58 = vadd.f32 %v13011_v27, %v719_v44 }
  0xfb   :  { %v13172_v62 = vmax.f32 %v847_v43, %v1681_v31  ;;  %v1619_v63 = vadd.f32 %v13011_v27, %v1555_v46  ;;  %v1271_v37 = vadd.f32 %v12998_v19, %v1270_v56  ;;  %v13177_v0 = vadd.f32 %v13011_v27, %v718_v49  ;;  %v10568_v4 = vpop.f32.mrb[14].mxu0  ;;  %11913 = vmatpush3.bf16.msra.mxu0 %v13045_v52 }
  0xfc   :  { %v1684_v6 = vmax.f32 %v1620_v51, 0.0  ;;  %v1558_v8 = vmul.f32 %v13003_v21, %v1276_v55  ;;  %v854_v9 = vmax.f32 %v13168_v58, 0.0  ;;  %v448_v1 = vadd.f32 %v10565_v36, %v12998_v19  ;;  %v452_v32 = vpop.f32.mrb[15].mxu0  ;;  %11915 = vmatprep.subr.bf16.mxu0 %v13047_v53 }
  0xfd   :  { %v1683_v43 = vmax.f32 %v1619_v63, 0.0  ;;  %v1557_v12 = vmul.f32 %v13003_v21, %v1271_v37  ;;  %v10664_v14 = vpop.f32.mrb[16].mxu1  ;;  %10765 = vmatprep.mubr.msk.f32.mxu0 %vm1822_vm2, %v13172_v62  ;;  %v853_v15 = vmax.f32 %v13177_v0, 0.0  ;;  %v443_v52 = vadd.f32 %v12998_v19, %v442_v45 }
  0xfe   :  { %v13191_v17 = vmax.f32 %v850_v2, %v1684_v6  ;;  %v1622_v20 = vadd.f32 %v13011_v27, %v1558_v8  ;;  %v1286_v13 = vadd.f32 %v10664_v14, %v12998_v19  ;;  %v1280_v22 = vpop.f32.mrb[17].mxu1  ;;  %10766 = vmatmul.mubr.msk.f32.gmra.mrb[62].mxu0 %vm1822_vm2, %v13161_v50  ;;  %v721_v24 = vmul.f32 %v13003_v21, %v448_v1 }
  0xff   :  { %v13200_v26 = vmax.f32 %v849_v7, %v1683_v43  ;;  %v1621_v28 = vadd.f32 %v13011_v27, %v1557_v12  ;;  %v1281_v48 = vadd.f32 %v12998_v19, %v1280_v22  ;;  %v720_v2 = vmul.f32 %v13003_v21, %v443_v52  ;;  %v10571_v29 = vpop.f32.mrb[16].mxu0  ;;  %11917 = vmatpush3.bf16.msra.mxu0 %v13047_v53 }
 0x100   :  { %v1686_v30 = vmax.f32 %v1622_v20, 0.0  ;;  %v1560_v34 = vmul.f32 %v13003_v21, %v1286_v13  ;;  %v792_v35 = vadd.f32 %v13011_v27, %v721_v24  ;;  %v458_v18 = vadd.f32 %v10568_v4, %v12998_v19  ;;  %v462_v36 = vpop.f32.mrb[17].mxu0 }
 0x101   :  { %v1685_v57 = vmax.f32 %v1621_v28, 0.0  ;;  %v1559_v7 = vmul.f32 %v13003_v21, %v1281_v48  ;;  %v10667_v38 = vpop.f32.mrb[18].mxu1  ;;  %10768 = vmatprep.mubr.msk.f32.mxu0 %vm1822_vm2, %v13200_v26  ;;  %v791_v39 = vadd.f32 %v13011_v27, %v720_v2  ;;  %v453_v44 = vadd.f32 %v12998_v19, %v452_v32 }
 0x102   :  { %v13214_v53 = vmax.f32 %v852_v42, %v1686_v30  ;;  %v1624_v45 = vadd.f32 %v13011_v27, %v1560_v34  ;;  %v856_v31 = vmax.f32 %v792_v35, 0.0  ;;  %v1296_v46 = vadd.f32 %v10667_v38, %v12998_v19  ;;  %v1290_v47 = vpop.f32.mrb[19].mxu1  ;;  %10769 = vmatmul.mubr.msk.f32.gmra.mrb[64].mxu0 %vm1822_vm2, %v13191_v17 }
 0x103   :  { %v13220_v49 = vmax.f32 %v851_v11, %v1685_v57  ;;  %v1623_v51 = vadd.f32 %v13011_v27, %v1559_v7  ;;  %v855_v55 = vmax.f32 %v791_v39, 0.0  ;;  %v1291_v56 = vadd.f32 %v12998_v19, %v1290_v47  ;;  %v10574_v58 = vpop.f32.mrb[18].mxu0 }
 0x104   :  { %v1688_v63 = vmax.f32 %v1624_v45, 0.0  ;;  %v1562_v42 = vmul.f32 %v13003_v21, %v1296_v46  ;;  %v723_v37 = vmul.f32 %v13003_v21, %v458_v18  ;;  %v722_v0 = vmul.f32 %v13003_v21, %v453_v44  ;;  %v472_v4 = vpop.f32.mrb[19].mxu0 }
 0x105   :  { %v1687_v6 = vmax.f32 %v1623_v51, 0.0  ;;  %v1561_v8 = vmul.f32 %v13003_v21, %v1291_v56  ;;  %v10670_v1 = vpop.f32.mrb[20].mxu1  ;;  %10771 = vmatprep.mubr.msk.f32.mxu0 %vm1822_vm2, %v13220_v49  ;;  %v468_v11 = vadd.f32 %v10571_v29, %v12998_v19  ;;  %v463_v32 = vadd.f32 %v12998_v19, %v462_v36 }
 0x106   :  { %v13232_v43 = vmax.f32 %v854_v9, %v1688_v63  ;;  %v1626_v12 = vadd.f32 %v13011_v27, %v1562_v42  ;;  %v794_v14 = vadd.f32 %v13011_v27, %v723_v37  ;;  %v1306_v52 = vadd.f32 %v10670_v1, %v12998_v19  ;;  %v1300_v20 = vpop.f32.mrb[21].mxu1  ;;  %10772 = vmatmul.mubr.msk.f32.gmra.mrb[66].mxu0 %vm1822_vm2, %v13214_v53 }
 0x107   :  { %v13239_v13 = vmax.f32 %v853_v15, %v1687_v6  ;;  %v1625_v22 = vadd.f32 %v13011_v27, %v1561_v8  ;;  %v793_v24 = vadd.f32 %v13011_v27, %v722_v0  ;;  %v1301_v28 = vadd.f32 %v12998_v19, %v1300_v20  ;;  %v10577_v9 = vpop.f32.mrb[20].mxu0 }
 0x108   :  { %v1690_v48 = vmax.f32 %v1626_v12, 0.0  ;;  %v858_v2 = vmax.f32 %v794_v14, 0.0  ;;  %v1564_v29 = vmul.f32 %v13003_v21, %v1306_v52  ;;  %v725_v30 = vmul.f32 %v13003_v21, %v468_v11  ;;  %v482_v34 = vpop.f32.mrb[21].mxu0 }
 0x109   :  { %v1689_v35 = vmax.f32 %v1625_v22, 0.0  ;;  %v857_v18 = vmax.f32 %v793_v24, 0.0  ;;  %v1563_v36 = vmul.f32 %v13003_v21, %v1301_v28  ;;  %v10673_v15 = vpop.f32.mrb[22].mxu1  ;;  %10774 = vmatprep.mubr.msk.f32.mxu0 %vm1822_vm2, %v13239_v13  ;;  %v724_v57 = vmul.f32 %v13003_v21, %v463_v32 }
 0x10a   :  { %v13250_v7 = vmax.f32 %v856_v31, %v1690_v48  ;;  %v1628_v38 = vadd.f32 %v13011_v27, %v1564_v29  ;;  %v796_v39 = vadd.f32 %v13011_v27, %v725_v30  ;;  %v1316_v44 = vadd.f32 %v10673_v15, %v12998_v19  ;;  %v1310_v45 = vpop.f32.mrb[23].mxu1  ;;  %10775 = vmatmul.mubr.msk.f32.gmra.mrb[68].mxu0 %vm1822_vm2, %v13232_v43 }
 0x10b   :  { %v13257_v46 = vmax.f32 %v855_v55, %v1689_v35  ;;  %v1627_v47 = vadd.f32 %v13011_v27, %v1563_v36  ;;  %v795_v51 = vadd.f32 %v13011_v27, %v724_v57  ;;  %v1311_v56 = vadd.f32 %v12998_v19, %v1310_v45  ;;  %v10580_v31 = vpop.f32.mrb[22].mxu0 }
 0x10c   :  { %v1692_v63 = vmax.f32 %v1628_v38, 0.0  ;;  %v860_v42 = vmax.f32 %v796_v39, 0.0  ;;  %v1566_v37 = vmul.f32 %v13003_v21, %v1316_v44  ;;  %v478_v0 = vadd.f32 %v10574_v58, %v12998_v19  ;;  %v492_v6 = vpop.f32.mrb[23].mxu0 }
 0x10d   :  { %v1691_v8 = vmax.f32 %v1627_v47, 0.0  ;;  %v859_v1 = vmax.f32 %v795_v51, 0.0  ;;  %v1565_v11 = vmul.f32 %v13003_v21, %v1311_v56  ;;  %v10676_v55 = vpop.f32.mrb[24].mxu1  ;;  %10777 = vmatprep.mubr.msk.f32.mxu0 %vm1822_vm2, %v13257_v46  ;;  %v473_v32 = vadd.f32 %v12998_v19, %v472_v4 }
 0x10e   :  { %v13268_v12 = vmax.f32 %v858_v2, %v1692_v63  ;;  %v1630_v14 = vadd.f32 %v13011_v27, %v1566_v37  ;;  %v727_v52 = vmul.f32 %v13003_v21, %v478_v0  ;;  %v1326_v20 = vadd.f32 %v10676_v55, %v12998_v19  ;;  %v1320_v58 = vpop.f32.mrb[25].mxu1  ;;  %10778 = vmatmul.mubr.msk.f32.gmra.mrb[70].mxu0 %vm1822_vm2, %v13250_v7 }
 0x10f   :  { %v13275_v22 = vmax.f32 %v857_v18, %v1691_v8  ;;  %v1629_v24 = vadd.f32 %v13011_v27, %v1565_v11  ;;  %v726_v28 = vmul.f32 %v13003_v21, %v473_v32  ;;  %v1321_v4 = vadd.f32 %v12998_v19, %v1320_v58  ;;  %v10583_v48 = vpop.f32.mrb[24].mxu0 }
 0x110   :  { %v1694_v2 = vmax.f32 %v1630_v14, 0.0  ;;  %v798_v29 = vadd.f32 %v13011_v27, %v727_v52  ;;  %v1568_v30 = vmul.f32 %v13003_v21, %v1326_v20  ;;  %v488_v35 = vadd.f32 %v10577_v9, %v12998_v19  ;;  %v13283_v36 = vpop.f32.mrb[25].mxu0 }
 0x111   :  { %v1693_v15 = vmax.f32 %v1629_v24, 0.0  ;;  %v797_v18 = vadd.f32 %v13011_v27, %v726_v28  ;;  %v1567_v57 = vmul.f32 %v13003_v21, %v1321_v4  ;;  %v10679_v38 = vpop.f32.mrb[26].mxu1  ;;  %10780 = vmatprep.mubr.msk.f32.mxu0 %vm1822_vm2, %v13275_v22  ;;  %v483_v39 = vadd.f32 %v12998_v19, %v482_v34 }
 0x112   :  { %v13290_v44 = vmax.f32 %v860_v42, %v1694_v2  ;;  %v862_v45 = vmax.f32 %v798_v29, 0.0  ;;  %v1632_v47 = vadd.f32 %v13011_v27, %v1568_v30  ;;  %v729_v9 = vmul.f32 %v13003_v21, %v488_v35  ;;  %v1330_v51 = vpop.f32.mrb[27].mxu1  ;;  %10781 = vmatmul.mubr.msk.f32.gmra.mrb[72].mxu0 %vm1822_vm2, %v13268_v12 }
 0x113   :  { %v13296_v56 = vmax.f32 %v859_v1, %v1693_v15  ;;  %v861_v63 = vmax.f32 %v797_v18, 0.0  ;;  %v1631_v37 = vadd.f32 %v13011_v27, %v1567_v57  ;;  %v1336_v0 = vadd.f32 %v10679_v38, %v12998_v19  ;;  %v10586_v8 = vpop.f32.mrb[26].mxu0 }
 0x114   :  { %v1696_v34 = vmax.f32 %v1632_v47, 0.0  ;;  %v800_v42 = vadd.f32 %v13011_v27, %v729_v9  ;;  %v728_v11 = vmul.f32 %v13003_v21, %v483_v39  ;;  %v1331_v55 = vadd.f32 %v12998_v19, %v1330_v51  ;;  %v13303_v32 = vpop.f32.mrb[27].mxu0 }
 0x115   :  { %v1695_v14 = vmax.f32 %v1631_v37, 0.0  ;;  %v1570_v52 = vmul.f32 %v13003_v21, %v1336_v0  ;;  %v498_v1 = vadd.f32 %v10580_v31, %v12998_v19  ;;  %v10682_v20 = vpop.f32.mrb[28].mxu1  ;;  %10783 = vmatprep.mubr.msk.f32.mxu0 %vm1822_vm2, %v13296_v56  ;;  %v493_v58 = vadd.f32 %v12998_v19, %v492_v6 }
 0x116   :  { %v13310_v24 = vmax.f32 %v862_v45, %v1696_v34  ;;  %v864_v28 = vmax.f32 %v800_v42, 0.0  ;;  %v799_v4 = vadd.f32 %v13011_v27, %v728_v11  ;;  %v1569_v2 = vmul.f32 %v13003_v21, %v1331_v55  ;;  %v1340_v29 = vpop.f32.mrb[29].mxu1  ;;  %10784 = vmatmul.mubr.msk.f32.gmra.mrb[74].mxu0 %vm1822_vm2, %v13290_v44 }
 0x117   :  { %v13316_v30 = vmax.f32 %v861_v63, %v1695_v14  ;;  %v1634_v31 = vadd.f32 %v13011_v27, %v1570_v52  ;;  %v731_v35 = vmul.f32 %v13003_v21, %v498_v1  ;;  %v1346_v15 = vadd.f32 %v10682_v20, %v12998_v19  ;;  %v10589_v6 = vpop.f32.mrb[28].mxu0 }
 0x118   :  { %v863_v18 = vmax.f32 %v799_v4, 0.0  ;;  %v1633_v57 = vadd.f32 %v13011_v27, %v1569_v2  ;;  %v730_v38 = vmul.f32 %v13003_v21, %v493_v58  ;;  %v1341_v39 = vadd.f32 %v12998_v19, %v1340_v29  ;;  %v13324_v45 = vpop.f32.mrb[29].mxu0 }
 0x119   :  { %v1698_v47 = vmax.f32 %v1634_v31, 0.0  ;;  %v802_v9 = vadd.f32 %v13011_v27, %v731_v35  ;;  %v1572_v51 = vmul.f32 %v13003_v21, %v1346_v15  ;;  %v508_v63 = vadd.f32 %v10583_v48, %v12998_v19  ;;  %v10685_v37 = vpop.f32.mrb[30].mxu1  ;;  %10786 = vmatprep.mubr.msk.f32.mxu0 %vm1822_vm2, %v13316_v30 }
 0x11a   :  { %v1697_v0 = vmax.f32 %v1633_v57, 0.0  ;;  %v801_v34 = vadd.f32 %v13011_v27, %v730_v38  ;;  %v1571_v42 = vmul.f32 %v13003_v21, %v1341_v39  ;;  %v1356_v11 = vadd.f32 %v10685_v37, %v12998_v19  ;;  %v1350_v55 = vpop.f32.mrb[31].mxu1  ;;  %10787 = vmatmul.mubr.msk.f32.gmra.mrb[76].mxu0 %vm1822_vm2, %v13310_v24 }
 0x11b   :  { %v13336_v14 = vmax.f32 %v864_v28, %v1698_v47  ;;  %v866_v52 = vmax.f32 %v802_v9, 0.0  ;;  %v1636_v48 = vadd.f32 %v13011_v27, %v1572_v51  ;;  %v733_v1 = vmul.f32 %v13003_v21, %v508_v63  ;;  %v13340_v20 = vpop.f32.mrb[30].mxu0 }
 0x11c   :  { %v13342_v58 = vmax.f32 %v863_v18, %v1697_v0  ;;  %v865_v4 = vmax.f32 %v801_v34, 0.0  ;;  %v1635_v2 = vadd.f32 %v13011_v27, %v1571_v42  ;;  %v1574_v29 = vmul.f32 %v13003_v21, %v1356_v11  ;;  %v13346_v31 = vpop.f32.mrb[31].mxu0 }
 0x11d   :  { %v1700_v35 = vmax.f32 %v1636_v48, 0.0  ;;  %v804_v28 = vadd.f32 %v13011_v27, %v733_v1  ;;  %v503_v15 = vadd.f32 %v12998_v19, %v13283_v36  ;;  %v1351_v57 = vadd.f32 %v12998_v19, %v1350_v55  ;;  %v10688_v38 = vpop.f32.mrb[32].mxu1 }
 0x11e   :  { %v1699_v39 = vmax.f32 %v1635_v2, 0.0  ;;  %v1638_v18 = vadd.f32 %v13011_v27, %v1574_v29  ;;  %v518_v47 = vadd.f32 %v10586_v8, %v12998_v19  ;;  %v1366_v9 = vadd.f32 %v10688_v38, %v12998_v19  ;;  %10789 = vmatprep.mubr.msk.f32.mxu0 %vm1822_vm2, %v13342_v58  ;;  %v1360_v51 = vpop.f32.mrb[33].mxu1 }
 0x11f   :  { %v13357_v63 = vmax.f32 %v866_v52, %v1700_v35  ;;  %v868_v37 = vmax.f32 %v804_v28, 0.0  ;;  %v732_v0 = vmul.f32 %v13003_v21, %v503_v15  ;;  %v1573_v36 = vmul.f32 %v13003_v21, %v1351_v57  ;;  %10790 = vmatmul.mubr.msk.f32.gmra.mrb[78].mxu0 %vm1822_vm2, %v13336_v14  ;;  %v13363_v34 = vpop.f32.mrb[32].mxu0 }
 0x120   :  { %v13365_v42 = vmax.f32 %v865_v4, %v1699_v39  ;;  %v1702_v8 = vmax.f32 %v1638_v18, 0.0  ;;  %v735_v11 = vmul.f32 %v13003_v21, %v518_v47  ;;  %v1576_v55 = vmul.f32 %v13003_v21, %v1366_v9  ;;  %v13369_v48 = vpop.f32.mrb[33].mxu0 }
 0x121   :  { %15939 = vst [vmem:[#allocation2_spill] sm:$0xff] %v13357_v63  ;;  %v803_v52 = vadd.f32 %v13011_v27, %v732_v0  ;;  %v1637_v1 = vadd.f32 %v13011_v27, %v1573_v36  ;;  %v513_v2 = vadd.f32 %v12998_v19, %v13303_v32  ;;  %v1361_v29 = vadd.f32 %v12998_v19, %v1360_v51  ;;  %v10691_v35 = vpop.f32.mrb[34].mxu1 }
 0x122   :  { %15940 = vst [vmem:[#allocation3_spill] sm:$0xff] %v13365_v42  ;;  %v13376_v28 = vmax.f32 %v868_v37, %v1702_v8  ;;  %v806_v4 = vadd.f32 %v13011_v27, %v735_v11  ;;  %v1640_v15 = vadd.f32 %v13011_v27, %v1576_v55  ;;  %v528_v57 = vadd.f32 %v10589_v6, %v12998_v19  ;;  %v1370_v38 = vpop.f32.mrb[35].mxu1 }
 0x123   :  { %10792 = vmatprep.mubr.msk.f32.mxu0 %vm1822_vm2, %v13365_v42  ;;  %v867_v39 = vmax.f32 %v803_v52, 0.0  ;;  %v1701_v18 = vmax.f32 %v1637_v1, 0.0  ;;  %v734_v47 = vmul.f32 %v13003_v21, %v513_v2  ;;  %v1575_v32 = vmul.f32 %v13003_v21, %v1361_v29  ;;  %v13387_v9 = vpop.f32.mrb[34].mxu0 }
 0x124   :  { %15941 = vst [vmem:[#allocation4_spill] sm:$0xff] %v13376_v28  ;;  %10793 = vmatmul.mubr.msk.f32.gmra.mrb[80].mxu0 %vm1822_vm2, %v13357_v63  ;;  %v870_v51 = vmax.f32 %v806_v4, 0.0  ;;  %v1704_v37 = vmax.f32 %v1640_v15, 0.0  ;;  %v737_v0 = vmul.f32 %v13003_v21, %v528_v57  ;;  %v1376_v6 = vadd.f32 %v10691_v35, %v12998_v19  ;;  %v13391_v36 = vpop.f32.mrb[35].mxu0 }
 0x125   :  { %v13393_v8 = vmax.f32 %v867_v39, %v1701_v18  ;;  %v805_v11 = vadd.f32 %v13011_v27, %v734_v47  ;;  %v1639_v55 = vadd.f32 %v13011_v27, %v1575_v32  ;;  %v523_v52 = vadd.f32 %v12998_v19, %v13324_v45  ;;  %v10694_v1 = vpop.f32.mrb[36].mxu1 }
 0x126   :  { %v13399_v2 = vmax.f32 %v870_v51, %v1704_v37  ;;  %v808_v29 = vadd.f32 %v13011_v27, %v737_v0  ;;  %v1578_v4 = vmul.f32 %v13003_v21, %v1376_v6  ;;  %v1371_v35 = vadd.f32 %v12998_v19, %v1370_v38  ;;  %v1380_v15 = vpop.f32.mrb[37].mxu1 }
 0x127   :  { %15942 = vst [vmem:[#allocation5_spill] sm:$0xff] %v13393_v8  ;;  %v869_v57 = vmax.f32 %v805_v11, 0.0  ;;  %v1703_v39 = vmax.f32 %v1639_v55, 0.0  ;;  %v736_v18 = vmul.f32 %v13003_v21, %v523_v52  ;;  %v538_v47 = vadd.f32 %v13340_v20, %v12998_v19  ;;  %10795 = vmatprep.mubr.msk.f32.mxu0 %vm1822_vm2, %v13393_v8  ;;  %v13409_v45 = vpop.f32.mrb[36].mxu0 }
 0x128   :  { %15943 = vst [vmem:[#allocation6_spill] sm:$0xff] %v13399_v2  ;;  %v872_v32 = vmax.f32 %v808_v29, 0.0  ;;  %v1642_v51 = vadd.f32 %v13011_v27, %v1578_v4  ;;  %v1577_v37 = vmul.f32 %v13003_v21, %v1371_v35  ;;  %v1386_v38 = vadd.f32 %v10694_v1, %v12998_v19  ;;  %10796 = vmatmul.mubr.msk.f32.gmra.mrb[82].mxu0 %vm1822_vm2, %v13376_v28  ;;  %v13416_v0 = vpop.f32.mrb[37].mxu0 }
 0x129   :  { %v13418_v6 = vmax.f32 %v869_v57, %v1703_v39  ;;  %v807_v20 = vadd.f32 %v13011_v27, %v736_v18  ;;  %v739_v11 = vmul.f32 %v13003_v21, %v538_v47  ;;  %v533_v55 = vadd.f32 %v12998_v19, %v13346_v31  ;;  %v10697_v52 = vpop.f32.mrb[38].mxu1 }
 0x12a   :  { %v1706_v29 = vmax.f32 %v1642_v51, 0.0  ;;  %v1641_v4 = vadd.f32 %v13011_v27, %v1577_v37  ;;  %v1580_v1 = vmul.f32 %v13003_v21, %v1386_v38  ;;  %v1381_v35 = vadd.f32 %v12998_v19, %v1380_v15  ;;  %v1390_v10 = vpop.f32.mrb[39].mxu1 }
 0x12b   :  { %15944 = vst [vmem:[#allocation7_spill] sm:$0xff] %v13418_v6  ;;  %v871_v60 = vmax.f32 %v807_v20, 0.0  ;;  %v810_v57 = vadd.f32 %v13011_v27, %v739_v11  ;;  %v738_v39 = vmul.f32 %v13003_v21, %v533_v55  ;;  %v548_v18 = vadd.f32 %v13363_v34, %v12998_v19  ;;  %10798 = vmatprep.mubr.msk.f32.mxu0 %vm1822_vm2, %v13418_v6  ;;  %v13433_v31 = vpop.f32.mrb[38].mxu0 }
 0x12c   :  { %v13435_v47 = vmax.f32 %v872_v32, %v1706_v29  ;;  %v1705_v51 = vmax.f32 %v1641_v4, 0.0  ;;  %v1644_v37 = vadd.f32 %v13011_v27, %v1580_v1  ;;  %v1579_v15 = vmul.f32 %v13003_v21, %v1381_v35  ;;  %10799 = vmatmul.mubr.msk.f32.gmra.mrb[84].mxu0 %vm1822_vm2, %v13399_v2  ;;  %v13441_v38 = vpop.f32.mrb[39].mxu0 }
 0x12d   :  { %v874_v20 = vmax.f32 %v810_v57, 0.0  ;;  %v809_v34 = vadd.f32 %v13011_v27, %v738_v39  ;;  %v741_v11 = vmul.f32 %v13003_v21, %v548_v18  ;;  %v1396_v55 = vadd.f32 %v10697_v52, %v12998_v19  ;;  %v10700_v59 = vpop.f32.mrb[40].mxu1 }
 0x12e   :  { %15945 = vst [vmem:[#allocation8_spill] sm:$0xff] %v13435_v47  ;;  %v13446_v32 = vmax.f32 %v871_v60, %v1705_v51  ;;  %v1708_v29 = vmax.f32 %v1644_v37, 0.0  ;;  %v1643_v4 = vadd.f32 %v13011_v27, %v1579_v15  ;;  %v543_v1 = vadd.f32 %v12998_v19, %v13369_v48  ;;  %v1400_v35 = vpop.f32.mrb[41].mxu1 }
 0x12f   :  { %v873_v2 = vmax.f32 %v809_v34, 0.0  ;;  %v812_v6 = vadd.f32 %v13011_v27, %v741_v11  ;;  %v1582_v57 = vmul.f32 %v13003_v21, %v1396_v55  ;;  %v1391_v39 = vadd.f32 %v12998_v19, %v1390_v10  ;;  %v13454_v18 = vpop.f32.mrb[40].mxu0 }
 0x130   :  { %15946 = vst [vmem:[#allocation9_spill] sm:$0xff] %v13446_v32  ;;  %v13456_v52 = vmax.f32 %v874_v20, %v1708_v29  ;;  %v1707_v60 = vmax.f32 %v1643_v4, 0.0  ;;  %v740_v51 = vmul.f32 %v13003_v21, %v543_v1  ;;  %v558_v37 = vadd.f32 %v13387_v9, %v12998_v19  ;;  %10801 = vmatprep.mubr.msk.f32.mxu0 %vm1822_vm2, %v13446_v32  ;;  %v13463_v48 = vpop.f32.mrb[41].mxu0 }
 0x131   :  { %v876_v15 = vmax.f32 %v812_v6, 0.0  ;;  %v1646_v34 = vadd.f32 %v13011_v27, %v1582_v57  ;;  %v1581_v10 = vmul.f32 %v13003_v21, %v1391_v39  ;;  %v1406_v11 = vadd.f32 %v10700_v59, %v12998_v19  ;;  %10802 = vmatmul.mubr.msk.f32.gmra.mrb[86].mxu0 %vm1822_vm2, %v13435_v47  ;;  %v10703_v20 = vpop.f32.mrb[42].mxu1 }
 0x132   :  { %15947 = vst [vmem:[#allocation10_spill] sm:$0xff] %v13456_v52  ;;  %v13470_v55 = vmax.f32 %v873_v2, %v1707_v60  ;;  %v811_v9 = vadd.f32 %v13011_v27, %v740_v51  ;;  %v743_v29 = vmul.f32 %v13003_v21, %v558_v37  ;;  %v553_v4 = vadd.f32 %v12998_v19, %v13391_v36  ;;  %v1410_v6 = vpop.f32.mrb[43].mxu1 }
 0x133   :  { %v1710_v1 = vmax.f32 %v1646_v34, 0.0  ;;  %v1645_v57 = vadd.f32 %v13011_v27, %v1581_v10  ;;  %v1584_v39 = vmul.f32 %v13003_v21, %v1406_v11  ;;  %v1401_v59 = vadd.f32 %v12998_v19, %v1400_v35  ;;  %v13479_v32 = vpop.f32.mrb[42].mxu0 }
 0x134   :  { %15948 = vst [vmem:[#allocation11_spill] sm:$0xff] %v13470_v55  ;;  %v875_v47 = vmax.f32 %v811_v9, 0.0  ;;  %v814_v2 = vadd.f32 %v13011_v27, %v743_v29  ;;  %v742_v60 = vmul.f32 %v13003_v21, %v553_v4  ;;  %v568_v51 = vadd.f32 %v13409_v45, %v12998_v19  ;;  %10804 = vmatprep.mubr.msk.f32.mxu0 %vm1822_vm2, %v13470_v55  ;;  %v13487_v36 = vpop.f32.mrb[43].mxu0 }
 0x135   :  { %v13489_v37 = vmax.f32 %v876_v15, %v1710_v1  ;;  %v1709_v34 = vmax.f32 %v1645_v57, 0.0  ;;  %v1648_v35 = vadd.f32 %v13011_v27, %v1584_v39  ;;  %v1583_v10 = vmul.f32 %v13003_v21, %v1401_v59  ;;  %10805 = vmatmul.mubr.msk.f32.gmra.mrb[88].mxu0 %vm1822_vm2, %v13456_v52  ;;  %v10706_v11 = vpop.f32.mrb[44].mxu1 }
 0x136   :  { %v878_v9 = vmax.f32 %v814_v2, 0.0  ;;  %v813_v29 = vadd.f32 %v13011_v27, %v742_v60  ;;  %v745_v45 = vmul.f32 %v13003_v21, %v568_v51  ;;  %v1416_v4 = vadd.f32 %v10703_v20, %v12998_v19  ;;  %v1420_v55 = vpop.f32.mrb[45].mxu1 }
 0x137   :  { %15949 = vst [vmem:[#allocation12_spill] sm:$0xff] %v13489_v37  ;;  %v13498_v28 = vmax.f32 %v875_v47, %v1709_v34  ;;  %v1712_v15 = vmax.f32 %v1648_v35, 0.0  ;;  %v1647_v1 = vadd.f32 %v13011_v27, %v1583_v10  ;;  %v563_v57 = vadd.f32 %v12998_v19, %v13416_v0  ;;  %v13503_v39 = vpop.f32.mrb[44].mxu0 }
 0x138   :  { %v877_v59 = vmax.f32 %v813_v29, 0.0  ;;  %v816_v2 = vadd.f32 %v13011_v27, %v745_v45  ;;  %v1586_v60 = vmul.f32 %v13003_v21, %v1416_v4  ;;  %v1411_v51 = vadd.f32 %v12998_v19, %v1410_v6  ;;  %v13508_v52 = vpop.f32.mrb[45].mxu0 }
 0x139   :  { %15950 = vst [vmem:[#allocation13_spill] sm:$0xff] %v13498_v28  ;;  %v13510_v20 = vmax.f32 %v878_v9, %v1712_v15  ;;  %v1711_v47 = vmax.f32 %v1647_v1, 0.0  ;;  %v744_v34 = vmul.f32 %v13003_v21, %v563_v57  ;;  %v578_v35 = vadd.f32 %v13433_v31, %v12998_v19  ;;  %10807 = vmatprep.mubr.msk.f32.mxu0 %vm1822_vm2, %v13498_v28  ;;  %v10709_v0 = vpop.f32.mrb[46].mxu1 }
 0x13a   :  { %v880_v10 = vmax.f32 %v816_v2, 0.0  ;;  %v1650_v29 = vadd.f32 %v13011_v27, %v1586_v60  ;;  %v1585_v45 = vmul.f32 %v13003_v21, %v1411_v51  ;;  %v1426_v6 = vadd.f32 %v10706_v11, %v12998_v19  ;;  %10808 = vmatmul.mubr.msk.f32.gmra.mrb[90].mxu0 %vm1822_vm2, %v13489_v37  ;;  %v1430_v9 = vpop.f32.mrb[47].mxu1 }
 0x13b   :  { %15951 = vst [vmem:[#allocation14_spill] sm:$0xff] %v13510_v20  ;;  %v13522_v4 = vmax.f32 %v877_v59, %v1711_v47  ;;  %v815_v15 = vadd.f32 %v13011_v27, %v744_v34  ;;  %v747_v31 = vmul.f32 %v13003_v21, %v578_v35  ;;  %v573_v1 = vadd.f32 %v12998_v19, %v13441_v38  ;;  %v13528_v57 = vpop.f32.mrb[46].mxu0  ;;  %v13540_v38 = vld [vmem:[%s15875_s2] ss:$0 sm:$0xff] }
 0x13c   :  { %v1714_v2 = vmax.f32 %v1650_v29, 0.0  ;;  %v1649_v60 = vadd.f32 %v13011_v27, %v1585_v45  ;;  %v1588_v11 = vmul.f32 %v13003_v21, %v1426_v6  ;;  %v1421_v51 = vadd.f32 %v12998_v19, %v1420_v55  ;;  %v13533_v37 = vpop.f32.mrb[47].mxu0 }
 0x13d   :  { %15952 = vst [vmem:[#allocation15_spill] sm:$0xff] %v13522_v4  ;;  %v879_v59 = vmax.f32 %v815_v15, 0.0  ;;  %v818_v47 = vadd.f32 %v13011_v27, %v747_v31  ;;  %v746_v34 = vmul.f32 %v13003_v21, %v573_v1  ;;  %v588_v35 = vadd.f32 %v13540_v38, %v13454_v18  ;;  %10810 = vmatprep.mubr.msk.f32.mxu0 %vm1822_vm2, %v13522_v4  ;;  %v10712_v29 = vpop.f32.mrb[48].mxu1  ;;  %v13552_v21 = vld [vmem:[%s15876_s3] ss:$0 sm:$0xff] }
 0x13e   :  { %v13546_v19 = vmax.f32 %v880_v10, %v1714_v2  ;;  %v1713_v55 = vmax.f32 %v1649_v60, 0.0  ;;  %v1652_v45 = vadd.f32 %v13011_v27, %v1588_v11  ;;  %v1587_v6 = vmul.f32 %v13552_v21, %v1421_v51  ;;  %10811 = vmatmul.mubr.msk.f32.gmra.mrb[92].mxu0 %vm1822_vm2, %v13510_v20  ;;  %v1440_v18 = vpop.f32.mrb[49].mxu1  ;;  %v13560_v10 = vld [vmem:[%s15877_s4] ss:$0 sm:$0xff] }
 0x13f   :  { %v882_v15 = vmax.f32 %v818_v47, 0.0  ;;  %v817_v31 = vadd.f32 %v13560_v10, %v746_v34  ;;  %v749_v27 = vmul.f32 %v13552_v21, %v588_v35  ;;  %v1436_v1 = vadd.f32 %v13540_v38, %v10709_v0  ;;  %v13565_v2 = vpop.f32.mrb[48].mxu0 }
 0x140   :  { %15953 = vst [vmem:[#allocation16_spill] sm:$0xff] %v13546_v19  ;;  %v13567_v60 = vmax.f32 %v879_v59, %v1713_v55  ;;  %v1716_v11 = vmax.f32 %v1652_v45, 0.0  ;;  %v1651_v51 = vadd.f32 %v13560_v10, %v1587_v6  ;;  %v583_v47 = vadd.f32 %v13540_v38, %v13463_v48  ;;  %v13572_v20 = vpop.f32.mrb[49].mxu0 }
 0x141   :  { %v881_v4 = vmax.f32 %v817_v31, 0.0  ;;  %v820_v28 = vadd.f32 %v13560_v10, %v749_v27  ;;  %v1590_v34 = vmul.f32 %v13552_v21, %v1436_v1  ;;  %v1431_v35 = vadd.f32 %v13540_v38, %v1430_v9  ;;  %v10715_v0 = vpop.f32.mrb[50].mxu1 }
 0x142   :  { %15954 = vst [vmem:[#allocation17_spill] sm:$0xff] %v13567_v60  ;;  %v13577_v8 = vmax.f32 %v882_v15, %v1716_v11  ;;  %v1715_v59 = vmax.f32 %v1651_v51, 0.0  ;;  %v748_v55 = vmul.f32 %v13552_v21, %v583_v47  ;;  %v598_v45 = vadd.f32 %v13540_v38, %v13479_v32  ;;  %10813 = vmatprep.mubr.msk.f32.mxu0 %vm1822_vm2, %v13567_v60  ;;  %v1450_v48 = vpop.f32.mrb[51].mxu1 }
 0x143   :  { %v884_v6 = vmax.f32 %v820_v28, 0.0  ;;  %v1654_v31 = vadd.f32 %v13560_v10, %v1590_v34  ;;  %v1589_v27 = vmul.f32 %v13552_v21, %v1431_v35  ;;  %v1446_v9 = vadd.f32 %v13540_v38, %v10712_v29  ;;  %10814 = vmatmul.mubr.msk.f32.gmra.mrb[94].mxu0 %vm1822_vm2, %v13546_v19  ;;  %v13589_v15 = vpop.f32.mrb[50].mxu0 }
 0x144   :  { %15955 = vst [vmem:[#allocation18_spill] sm:$0xff] %v13577_v8  ;;  %v13591_v1 = vmax.f32 %v881_v4, %v1715_v59  ;;  %v819_v32 = vadd.f32 %v13560_v10, %v748_v55  ;;  %v751_v11 = vmul.f32 %v13552_v21, %v598_v45  ;;  %v593_v28 = vadd.f32 %v13540_v38, %v13487_v36  ;;  %v13597_v51 = vpop.f32.mrb[51].mxu0 }
 0x145   :  { %v1718_v47 = vmax.f32 %v1654_v31, 0.0  ;;  %v1653_v34 = vadd.f32 %v13560_v10, %v1589_v27  ;;  %v1592_v29 = vmul.f32 %v13552_v21, %v1446_v9  ;;  %v1441_v35 = vadd.f32 %v13540_v38, %v1440_v18  ;;  %v10718_v19 = vpop.f32.mrb[52].mxu1 }
 0x146   :  { %15956 = vst [vmem:[#allocation19_spill] sm:$0xff] %v13591_v1  ;;  %v883_v60 = vmax.f32 %v819_v32, 0.0  ;;  %v822_v4 = vadd.f32 %v13560_v10, %v751_v11  ;;  %v750_v59 = vmul.f32 %v13552_v21, %v593_v28  ;;  %v608_v55 = vadd.f32 %v13540_v38, %v13503_v39  ;;  %10816 = vmatprep.mubr.msk.f32.mxu0 %vm1822_vm2, %v13591_v1  ;;  %v1460_v36 = vpop.f32.mrb[53].mxu1 }
 0x147   :  { %v13608_v45 = vmax.f32 %v884_v6, %v1718_v47  ;;  %v1717_v31 = vmax.f32 %v1653_v34, 0.0  ;;  %v1656_v27 = vadd.f32 %v13560_v10, %v1592_v29  ;;  %v1591_v18 = vmul.f32 %v13552_v21, %v1441_v35  ;;  %10817 = vmatmul.mubr.msk.f32.gmra.mrb[96].mxu0 %vm1822_vm2, %v13577_v8  ;;  %v13614_v9 = vpop.f32.mrb[52].mxu0 }
 0x148   :  { %v886_v32 = vmax.f32 %v822_v4, 0.0  ;;  %v821_v11 = vadd.f32 %v13560_v10, %v750_v59  ;;  %v753_v39 = vmul.f32 %v13552_v21, %v608_v55  ;;  %v1456_v28 = vadd.f32 %v13540_v38, %v10715_v0  ;;  %v13619_v1 = vpop.f32.mrb[53].mxu0 }
 0x149   :  { %15957 = vst [vmem:[#allocation20_spill] sm:$0xff] %v13608_v45  ;;  %v13621_v6 = vmax.f32 %v883_v60, %v1717_v31  ;;  %v1720_v47 = vmax.f32 %v1656_v27, 0.0  ;;  %v1655_v34 = vadd.f32 %v13560_v10, %v1591_v18  ;;  %v603_v29 = vadd.f32 %v13540_v38, %v13508_v52  ;;  %v10721_v35 = vpop.f32.mrb[54].mxu1 }
 0x14a   :  { %v885_v8 = vmax.f32 %v821_v11, 0.0  ;;  %v824_v4 = vadd.f32 %v13560_v10, %v753_v39  ;;  %v1594_v59 = vmul.f32 %v13552_v21, %v1456_v28  ;;  %v1451_v55 = vadd.f32 %v13540_v38, %v1450_v48  ;;  %v1470_v63 = vpop.f32.mrb[55].mxu1 }
 0x14b   :  { %15958 = vst [vmem:[#allocation21_spill] sm:$0xff] %v13621_v6  ;;  %v13629_v0 = vmax.f32 %v886_v32, %v1720_v47  ;;  %v1719_v42 = vmax.f32 %v1655_v34, 0.0  ;;  %v752_v60 = vmul.f32 %v13552_v21, %v603_v29  ;;  %v618_v31 = vadd.f32 %v13540_v38, %v13528_v57  ;;  %10819 = vmatprep.mubr.msk.f32.mxu0 %vm1822_vm2, %v13621_v6  ;;  %v13636_v52 = vpop.f32.mrb[54].mxu0 }
 0x14c   :  { %v888_v27 = vmax.f32 %v824_v4, 0.0  ;;  %v1658_v18 = vadd.f32 %v13560_v10, %v1594_v59  ;;  %v1593_v11 = vmul.f32 %v13552_v21, %v1451_v55  ;;  %v1466_v48 = vadd.f32 %v13540_v38, %v10718_v19  ;;  %10820 = vmatmul.mubr.msk.f32.gmra.mrb[98].mxu0 %vm1822_vm2, %v13608_v45  ;;  %v13643_v32 = vpop.f32.mrb[55].mxu0 }
 0x14d   :  { %15959 = vst [vmem:[#allocation22_spill] sm:$0xff] %v13629_v0  ;;  %v13645_v39 = vmax.f32 %v885_v8, %v1719_v42  ;;  %v823_v57 = vadd.f32 %v13560_v10, %v752_v60  ;;  %v755_v28 = vmul.f32 %v13552_v21, %v618_v31  ;;  %v613_v47 = vadd.f32 %v13540_v38, %v13533_v37  ;;  %v10724_v34 = vpop.f32.mrb[56].mxu1 }
 0x14e   :  { %v1722_v29 = vmax.f32 %v1658_v18, 0.0  ;;  %v1657_v4 = vadd.f32 %v13560_v10, %v1593_v11  ;;  %v1596_v19 = vmul.f32 %v13552_v21, %v1466_v48  ;;  %v1461_v59 = vadd.f32 %v13540_v38, %v1460_v36  ;;  %v1480_v55 = vpop.f32.mrb[57].mxu1 }
 0x14f   :  { %15960 = vst [vmem:[#allocation23_spill] sm:$0xff] %v13645_v39  ;;  %v887_v45 = vmax.f32 %v823_v57, 0.0  ;;  %v826_v42 = vadd.f32 %v13560_v10, %v755_v28  ;;  %v754_v8 = vmul.f32 %v13552_v21, %v613_v47  ;;  %v628_v60 = vadd.f32 %v13540_v38, %v13565_v2  ;;  %10822 = vmatprep.mubr.msk.f32.mxu0 %vm1822_vm2, %v13645_v39  ;;  %v13660_v37 = vpop.f32.mrb[56].mxu0 }
 0x150   :  { %v13662_v31 = vmax.f32 %v888_v27, %v1722_v29  ;;  %v1721_v18 = vmax.f32 %v1657_v4, 0.0  ;;  %v1660_v11 = vadd.f32 %v13560_v10, %v1596_v19  ;;  %v1595_v36 = vmul.f32 %v13552_v21, %v1461_v59  ;;  %10823 = vmatmul.mubr.msk.f32.gmra.mrb[100].mxu0 %vm1822_vm2, %v13629_v0  ;;  %v13668_v48 = vpop.f32.mrb[57].mxu0 }
 0x151   :  { %v890_v57 = vmax.f32 %v826_v42, 0.0  ;;  %v825_v2 = vadd.f32 %v13560_v10, %v754_v8  ;;  %v757_v28 = vmul.f32 %v13552_v21, %v628_v60  ;;  %v1476_v47 = vadd.f32 %v13540_v38, %v10721_v35  ;;  %v10727_v39 = vpop.f32.mrb[58].mxu1 }
 0x152   :  { %v13673_v27 = vmax.f32 %v887_v45, %v1721_v18  ;;  %v1724_v29 = vmax.f32 %v1660_v11, 0.0  ;;  %v1659_v4 = vadd.f32 %v13560_v10, %v1595_v36  ;;  %v623_v19 = vadd.f32 %v13540_v38, %v13572_v20  ;;  %v1490_v59 = vpop.f32.mrb[59].mxu1 }
 0x153   :  { %v889_v0 = vmax.f32 %v825_v2, 0.0  ;;  %v828_v6 = vadd.f32 %v13560_v10, %v757_v28  ;;  %v1598_v42 = vmul.f32 %v13552_v21, %v1476_v47  ;;  %v1471_v8 = vadd.f32 %v13540_v38, %v1470_v63 }
 0x154   :  { %v13681_v60 = vmax.f32 %v890_v57, %v1724_v29  ;;  %v1723_v35 = vmax.f32 %v1659_v4, 0.0  ;;  %v756_v45 = vmul.f32 %v13552_v21, %v623_v19  ;;  %v638_v18 = vadd.f32 %v13540_v38, %v13589_v15  ;;  %10825 = vmatprep.mubr.msk.f32.mxu0 %vm1822_vm2, %v13673_v27 }
 0x155   :  { %v892_v20 = vmax.f32 %v828_v6, 0.0  ;;  %v1662_v11 = vadd.f32 %v13560_v10, %v1598_v42  ;;  %v1597_v36 = vmul.f32 %v13552_v21, %v1471_v8  ;;  %v1486_v2 = vadd.f32 %v13540_v38, %v10724_v34  ;;  %10826 = vmatmul.mubr.msk.f32.gmra.mrb[102].mxu0 %vm1822_vm2, %v13662_v31  ;;  %v10730_v63 = vpop.f32.mrb[60].mxu1 }
 0x156   :  { %15961 = vst [vmem:[#allocation24_spill] sm:$0xff] %v13681_v60  ;;  %v13693_v57 = vmax.f32 %v889_v0, %v1723_v35  ;;  %v827_v28 = vadd.f32 %v13560_v10, %v756_v45  ;;  %v759_v15 = vmul.f32 %v13552_v21, %v638_v18  ;;  %v633_v47 = vadd.f32 %v13540_v38, %v13597_v51  ;;  %v1500_v6 = vpop.f32.mrb[61].mxu1 }
 0x157   :  { %v1726_v29 = vmax.f32 %v1662_v11, 0.0  ;;  %v1661_v4 = vadd.f32 %v13560_v10, %v1597_v36  ;;  %v1600_v19 = vmul.f32 %v13552_v21, %v1486_v2  ;;  %v1481_v34 = vadd.f32 %v13540_v38, %v1480_v55 }
 0x158   :  { %v891_v42 = vmax.f32 %v827_v28, 0.0  ;;  %v830_v8 = vadd.f32 %v13560_v10, %v759_v15  ;;  %v758_v0 = vmul.f32 %v13552_v21, %v633_v47  ;;  %v648_v35 = vadd.f32 %v13540_v38, %v13614_v9  ;;  %10828 = vmatprep.mubr.msk.f32.mxu0 %vm1822_vm2, %v13693_v57 }
 0x159   :  { %v13708_v51 = vmax.f32 %v892_v20, %v1726_v29  ;;  %v1725_v45 = vmax.f32 %v1661_v4, 0.0  ;;  %v1664_v18 = vadd.f32 %v13560_v10, %v1600_v19  ;;  %v1599_v11 = vmul.f32 %v13552_v21, %v1481_v34  ;;  %10829 = vmatmul.mubr.msk.f32.gmra.mrb[104].mxu0 %vm1822_vm2, %v13681_v60  ;;  %v10733_v55 = vpop.f32.mrb[62].mxu1 }
 0x15a   :  { %v894_v36 = vmax.f32 %v830_v8, 0.0  ;;  %v829_v2 = vadd.f32 %v13560_v10, %v758_v0  ;;  %v761_v28 = vmul.f32 %v13552_v21, %v648_v35  ;;  %v1496_v9 = vadd.f32 %v13540_v38, %v10727_v39  ;;  %v1510_v15 = vpop.f32.mrb[63].mxu1 }
 0x15b   :  { %15962 = vst [vmem:[#allocation25_spill] sm:$0xff] %v13708_v51  ;;  %v13717_v47 = vmax.f32 %v891_v42, %v1725_v45  ;;  %v1728_v20 = vmax.f32 %v1664_v18, 0.0  ;;  %v1663_v29 = vadd.f32 %v13560_v10, %v1599_v11  ;;  %v643_v4 = vadd.f32 %v13540_v38, %v13619_v1 }
 0x15c   :  { %v893_v19 = vmax.f32 %v829_v2, 0.0  ;;  %v832_v34 = vadd.f32 %v13560_v10, %v761_v28  ;;  %v1602_v8 = vmul.f32 %v13552_v21, %v1496_v9  ;;  %v1491_v0 = vadd.f32 %v13540_v38, %v1490_v59  ;;  %v1811_v59 = vld [vmem:[%s15874_s5 + $0x30] sm:$0xff] }
 0x15d   :  { %v13725_v60 = vmax.f32 %v894_v36, %v1728_v20  ;;  %v1727_v35 = vmax.f32 %v1663_v29, 0.0  ;;  %v760_v39 = vmul.f32 %v13552_v21, %v643_v4  ;;  %v658_v42 = vadd.f32 %v13540_v38, %v13636_v52  ;;  %10831 = vmatprep.mubr.msk.f32.mxu0 %vm1822_vm2, %v13717_v47  ;;  %v10736_v45 = vpop.f32.mrb[64].mxu1  ;;  %v1812_v52 = vld [vmem:[%s15874_s5 + $0x38] sm:$0xff] }
 0x15e   :  { %v896_v1 = vmax.f32 %v832_v34, 0.0  ;;  %v1666_v18 = vadd.f32 %v13560_v10, %v1602_v8  ;;  %v1601_v11 = vmul.f32 %v13552_v21, %v1491_v0  ;;  %v1506_v2 = vadd.f32 %v13540_v38, %v10730_v63  ;;  %10832 = vmatmul.mubr.msk.f32.gmra.mrb[106].mxu0 %vm1822_vm2, %v13708_v51  ;;  %v1520_v36 = vpop.f32.mrb[65].mxu1 }
 0x15f   :  { %v13743_v28 = vmax.f32 %v893_v19, %v1727_v35  ;;  %v831_v9 = vadd.f32 %v13560_v10, %v760_v39  ;;  %v763_v20 = vmul.f32 %v13552_v21, %v658_v42  ;;  %v653_v63 = vadd.f32 %v13540_v38, %v13643_v32 }
 0x160   :  { %v1730_v29 = vmax.f32 %v1666_v18, 0.0  ;;  %v1665_v4 = vadd.f32 %v13560_v10, %v1601_v11  ;;  %v1604_v34 = vmul.f32 %v13552_v21, %v1506_v2  ;;  %v1501_v8 = vadd.f32 %v13540_v38, %v1500_v6 }
 0x161   :  { %v895_v0 = vmax.f32 %v831_v9, 0.0  ;;  %v834_v51 = vadd.f32 %v13560_v10, %v763_v20  ;;  %v762_v19 = vmul.f32 %v13552_v21, %v653_v63  ;;  %v11918_v35 = vpack.c.bf16 %v1812_v52, %v1811_v59  ;;  %10834 = vmatprep.mubr.msk.f32.mxu0 %vm1822_vm2, %v13743_v28  ;;  %v10739_v39 = vpop.f32.mrb[66].mxu1 }
 0x162   :  { %v13756_v42 = vmax.f32 %v896_v1, %v1730_v29  ;;  %v1729_v32 = vmax.f32 %v1665_v4, 0.0  ;;  %v1668_v18 = vadd.f32 %v13560_v10, %v1604_v34  ;;  %v1603_v11 = vmul.f32 %v13552_v21, %v1501_v8  ;;  %10835 = vmatmul.mubr.msk.f32.gmra.mrb[108].mxu0 %vm1822_vm2, %v13725_v60  ;;  %v1530_v6 = vpop.f32.mrb[67].mxu1 }
 0x163   :  { %v898_v2 = vmax.f32 %v834_v51, 0.0  ;;  %v833_v9 = vadd.f32 %v13560_v10, %v762_v19  ;;  %11919 = vmatprep.subr.bf16.mxu0 %v11918_v35  ;;  %v668_v59 = vadd.f32 %v13540_v38, %v13660_v37  ;;  %v1516_v52 = vadd.f32 %v13540_v38, %v10733_v55 }
 0x164   :  { %v13766_v1 = vmax.f32 %v895_v0, %v1729_v32  ;;  %v1732_v20 = vmax.f32 %v1668_v18, 0.0  ;;  %v1667_v63 = vadd.f32 %v13560_v10, %v1603_v11  ;;  %11921 = vmatpush3.bf16.msra.mxu0 %v11918_v35  ;;  %v663_v29 = vadd.f32 %v13540_v38, %v13668_v48 }
 0x165   :  { %v897_v4 = vmax.f32 %v833_v9, 0.0  ;;  %v765_v51 = vmul.f32 %v13552_v21, %v668_v59  ;;  %v1606_v34 = vmul.f32 %v13552_v21, %v1516_v52  ;;  %v1511_v8 = vadd.f32 %v13540_v38, %v1510_v15  ;;  %v10742_v19 = vpop.f32.mrb[68].mxu1 }
 0x166   :  { %v13774_v37 = vmax.f32 %v898_v2, %v1732_v20  ;;  %v1731_v55 = vmax.f32 %v1667_v63, 0.0  ;;  %v764_v0 = vmul.f32 %v13552_v21, %v663_v29  ;;  %v1526_v32 = vadd.f32 %v13540_v38, %v10736_v45  ;;  %10837 = vmatprep.mubr.msk.f32.mxu0 %vm1822_vm2, %v13766_v1  ;;  %v1540_v35 = vpop.f32.mrb[69].mxu1 }
 0x167   :  { %v836_v48 = vadd.f32 %v13560_v10, %v765_v51  ;;  %v1670_v18 = vadd.f32 %v13560_v10, %v1606_v34  ;;  %v1605_v11 = vmul.f32 %v13552_v21, %v1511_v8  ;;  %v1521_v15 = vadd.f32 %v13540_v38, %v1520_v36  ;;  %10838 = vmatmul.mubr.msk.f32.gmra.mrb[110].mxu0 %vm1822_vm2, %v13756_v42 }
 0x168   :  { %v13786_v2 = vmax.f32 %v897_v4, %v1731_v55  ;;  %v835_v9 = vadd.f32 %v13560_v10, %v764_v0  ;;  %v1608_v45 = vmul.f32 %v13552_v21, %v1526_v32  ;;  %v1536_v59 = vadd.f32 %v13540_v38, %v10739_v39 }
 0x169   :  { %v900_v52 = vmax.f32 %v836_v48, 0.0  ;;  %v1734_v20 = vmax.f32 %v1670_v18, 0.0  ;;  %v1669_v63 = vadd.f32 %v13560_v10, %v1605_v11  ;;  %v1607_v29 = vmul.f32 %v13552_v21, %v1521_v15  ;;  %v8953_v15 = vld [vmem:[%s15874_s5 + $0x88] sm:$0xff] }
 0x16a   :  { %v899_v51 = vmax.f32 %v835_v9, 0.0  ;;  %v1672_v36 = vadd.f32 %v13560_v10, %v1608_v45  ;;  %v1610_v34 = vmul.f32 %v13552_v21, %v1536_v59  ;;  %10840 = vmatprep.mubr.msk.f32.mxu0 %vm1822_vm2, %v13786_v2  ;;  %v1531_v4 = vadd.f32 %v13540_v38, %v1530_v6  ;;  %v8952_v6 = vld [vmem:[%s15874_s5 + $0x80] sm:$0xff] }
 0x16b   :  { %v13798_v8 = vmax.f32 %v900_v52, %v1734_v20  ;;  %v1733_v55 = vmax.f32 %v1669_v63, 0.0  ;;  %v1671_v39 = vadd.f32 %v13560_v10, %v1607_v29  ;;  %10841 = vmatmul.mubr.msk.f32.gmra.mrb[112].mxu0 %vm1822_vm2, %v13774_v37  ;;  %v1546_v0 = vadd.f32 %v13540_v38, %v10742_v19 }
 0x16c   :  { %v1736_v32 = vmax.f32 %v1672_v36, 0.0  ;;  %v1674_v48 = vadd.f32 %v13560_v10, %v1610_v34  ;;  %v1609_v18 = vmul.f32 %v13552_v21, %v1531_v4  ;;  %v1541_v11 = vadd.f32 %v13540_v38, %v1540_v35 }
 0x16d   :  { %v13813_v9 = vmax.f32 %v899_v51, %v1733_v55  ;;  %v1735_v45 = vmax.f32 %v1671_v39, 0.0  ;;  %v1612_v19 = vmul.f32 %v13552_v21, %v1546_v0  ;;  %v15963_v59 = vmax.f32 %v13031_v40, 0.0 }
 0x16e   :  { %v1738_v20 = vmax.f32 %v1674_v48, 0.0  ;;  %v1673_v38 = vadd.f32 %v13560_v10, %v1609_v18  ;;  %v1611_v35 = vmul.f32 %v13552_v21, %v1541_v11  ;;  %v15934_v63 = vmov 0.0   ;;  %v8956_v11 = vld [vmem:[%s15874_s5 + $0xa0] sm:$0xff] }
 0x16f   :  { %v13818_v52 = vmax.f32 %v15963_v59, %v1736_v32  ;;  %11079 = vmatprep.subr.bf16.mxu1 %v15934_v63  ;;  %v15964_v29 = vmax.f32 %v13034_v41, 0.0  ;;  %v1676_v51 = vadd.f32 %v13560_v10, %v1612_v19  ;;  %10843 = vmatprep.mubr.msk.f32.mxu0 %vm1822_vm2, %v13813_v9  ;;  %v11922_v40 = vpack.c.bf16 %v8953_v15, %v8952_v6  ;;  %v8957_v6 = vld [vmem:[%s15874_s5 + $0xa8] sm:$0xff]  ;;  %v8959_v19 = vld [vmem:[%s15874_s5 + $0xb8] sm:$0xff] }
 0x170   :  { %v903_v34 = vmax.f32 %v13068_v5, 0.0  ;;  %v15966_v4 = vmax.f32 %v13050_v54, 0.0  ;;  %v1737_v21 = vmax.f32 %v1673_v38, 0.0  ;;  %v1675_v39 = vadd.f32 %v13560_v10, %v1611_v35  ;;  %10844 = vmatmul.mubr.msk.f32.gmra.mrb[114].mxu0 %vm1822_vm2, %v13798_v8  ;;  %v15969_v59 = vld [vmem:[#allocation3_spill] sm:$0xff]  ;;  %v15971_v38 = vld [vmem:[#allocation5_spill] sm:$0xff]  ;;  %v15972_v35 = vld [vmem:[#allocation4_spill] sm:$0xff] }
 0x171   :  { %v13825_v36 = vmax.f32 %v15964_v29, %v1735_v45  ;;  %v906_v41 = vmax.f32 %v13080_v16, 0.0  ;;  %v1740_v0 = vmax.f32 %v1676_v51, 0.0  ;;  %11923 = vmatprep.subr.bf16.mxu0 %v11922_v40  ;;  %v905_v32 = vmax.f32 %v13086_v23, 0.0  ;;  %v8954_v16 = vld [vmem:[%s15874_s5 + $0x90] sm:$0xff]  ;;  %v8955_v23 = vld [vmem:[%s15874_s5 + $0x98] sm:$0xff]  ;;  %v15973_v29 = vld [vmem:[#allocation7_spill] sm:$0xff] }
 0x172   :  { %v13833_v55 = vmax.f32 %v15966_v4, %v1738_v20  ;;  %v13842_v5 = vmax.f32 %v903_v34, %v1737_v21  ;;  %v1739_v54 = vmax.f32 %v1675_v39, 0.0  ;;  %v11926_v10 = vpack.c.bf16 %v8955_v23, %v8954_v16  ;;  %v8958_v45 = vld [vmem:[%s15874_s5 + $0xb0] sm:$0xff]  ;;  %v15970_v20 = vld [vmem:[#allocation2_spill] sm:$0xff]  ;;  %v15977_v4 = vld [vmem:[#allocation11_spill] sm:$0xff] }
 0x173   :  { %15965 = vst [vmem:[#allocation26_spill] sm:$0xff] %v13825_v36  ;;  %10846 = vmatprep.mubr.msk.f32.mxu0 %vm1822_vm2, %v13825_v36  ;;  %v13844_v48 = vmax.f32 %v906_v41, %v1740_v0  ;;  %v11930_v15 = vpack.c.bf16 %v8957_v6, %v8956_v11  ;;  %v15974_v51 = vld [vmem:[#allocation6_spill] sm:$0xff]  ;;  %v15976_v34 = vld [vmem:[#allocation8_spill] sm:$0xff]  ;;  %v15979_v39 = vld [vmem:[#allocation13_spill] sm:$0xff] }
 0x174   :  { %v13846_v18 = vmax.f32 %v905_v32, %v1739_v54  ;;  %10847 = vmatmul.mubr.msk.f32.gmra.mrb[116].mxu0 %vm1822_vm2, %v13818_v52  ;;  %v15978_v21 = vld [vmem:[#allocation10_spill] sm:$0xff]  ;;  %v15980_v41 = vld [vmem:[#allocation12_spill] sm:$0xff]  ;;  %v15981_v0 = vld [vmem:[#allocation15_spill] sm:$0xff] }
 0x175   :  { %15967 = vst [vmem:[#allocation27_spill] sm:$0xff] %v13844_v48  ;;  %10849 = vmatprep.mubr.msk.f32.mxu0 %vm1822_vm2, %v13842_v5  ;;  %v15982_v32 = vld [vmem:[#allocation14_spill] sm:$0xff]  ;;  %v15983_v54 = vld [vmem:[#allocation17_spill] sm:$0xff]  ;;  %v15984_v16 = vld [vmem:[#allocation16_spill] sm:$0xff] }
 0x176   :  { %15968 = vst [vmem:[#allocation28_spill] sm:$0xff] %v13846_v18  ;;  %v15985_v23 = vld [vmem:[#allocation19_spill] sm:$0xff]  ;;  %v15987_v11 = vld [vmem:[#allocation21_spill] sm:$0xff]  ;;  %v15988_v6 = vld [vmem:[#allocation20_spill] sm:$0xff] }
 0x178   :  { %10850 = vmatmul.mubr.msk.f32.gmra.mrb[118].mxu0 %vm1822_vm2, %v13833_v55 }
 0x179   :  { %10852 = vmatprep.mubr.msk.f32.mxu0 %vm1822_vm2, %v13846_v18 }
 0x17c   :  { %10853 = vmatmul.mubr.msk.f32.gmra.mrb[120].mxu0 %vm1822_vm2, %v13844_v48  ;;  %v15993_v48 = vmov 0.0  }
 0x17d   :  { %10871 = vmatprep.mubr.f32.mxu0 %v15934_v63  ;;  %11087 = vmatprep.mubr.msk.bf16.mxu1 %vm12363_vm3, %v15993_v48 }
 0x180   :  { %10872 = vmatmul.mubr.msk.f32.vlgmr.msra.gmra.mrb[58].mxu0 %vm1822_vm2, %v13122_v3  ;;  %v11934_v3 = vpack.c.bf16 %v8959_v19, %v8958_v45  ;;  %v15990_v45 = vld [vmem:[#allocation22_spill] sm:$0xff]  ;;  %v15991_v19 = vld [vmem:[#allocation24_spill] sm:$0xff] }
 0x181   :  { %10874 = vmatprep.mubr.msk.f32.mxu0 %vm1822_vm2, %v13117_v61  ;;  %11925 = vmatpush3.bf16.msra.mxu0 %v11922_v40  ;;  %v15975_v40 = vld [vmem:[#allocation9_spill] sm:$0xff] }
 0x182   :  { %11927 = vmatprep.subr.bf16.mxu0 %v11926_v10 }
 0x184   :  { %10875 = vmatmul.mubr.msk.f32.gmra.mrb[60].mxu0 %vm1822_vm2, %v13144_v33 }
 0x185   :  { %10877 = vmatprep.mubr.msk.f32.mxu0 %vm1822_vm2, %v13135_v25  ;;  %11929 = vmatpush3.bf16.msra.mxu0 %v11926_v10  ;;  %v15986_v10 = vld [vmem:[#allocation18_spill] sm:$0xff] }
 0x186   :  { %11931 = vmatprep.subr.bf16.mxu0 %v11930_v15 }
 0x188   :  { %10878 = vmatmul.mubr.msk.f32.gmra.mrb[62].mxu0 %vm1822_vm2, %v13172_v62 }
 0x189   :  { %10880 = vmatprep.mubr.msk.f32.mxu0 %vm1822_vm2, %v13161_v50  ;;  %11933 = vmatpush3.bf16.msra.mxu0 %v11930_v15  ;;  %v15989_v15 = vld [vmem:[#allocation23_spill] sm:$0xff] }
 0x18a   :  { %11935 = vmatprep.subr.bf16.mxu0 %v11934_v3 }
 0x18c   :  { %10881 = vmatmul.mubr.msk.f32.gmra.mrb[64].mxu0 %vm1822_vm2, %v13200_v26 }
 0x18d   :  { %10883 = vmatprep.mubr.msk.f32.mxu0 %vm1822_vm2, %v13191_v17  ;;  %11937 = vmatpush3.bf16.msra.mxu0 %v11934_v3  ;;  %v12097_v3 = vld [vmem:[%s15878_s9 + $0x20] sm:$0xff]  }
 0x18e   :  { %11367 = vmatprep.subr.bf16.mxu0 %v15934_v63  ;;  %11080 = vmatpush3.bf16.msra.mxu1 %v12097_v3  ;;  %v15992_v63 = vld [vmem:[#allocation25_spill] sm:$0xff]  ;;  %v12098_v3 = vld [vmem:[%s15878_s9 + $0x28] sm:$0xff]  }
 0x18f   :  { %11081 = vmatprep.subr.bf16.mxu1 %v15993_v48 }
 0x190   :  { %10884 = vmatmul.mubr.msk.f32.gmra.mrb[66].mxu0 %vm1822_vm2, %v13220_v49 }
 0x191   :  { %10886 = vmatprep.mubr.msk.f32.mxu0 %vm1822_vm2, %v13214_v53 }
 0x192   :  { %11082 = vmatpush3.bf16.msra.mxu1 %v12098_v3  ;;  %v12113_v3 = vld [vmem:[%s15878_s9 + $0x70] sm:$0xff]  }
 0x193   :  { %11083 = vmatprep.subr.bf16.mxu1 %v15993_v48 }
 0x194   :  { %10887 = vmatmul.mubr.msk.f32.gmra.mrb[68].mxu0 %vm1822_vm2, %v13239_v13 }
 0x195   :  { %10889 = vmatprep.mubr.msk.f32.mxu0 %vm1822_vm2, %v13232_v43 }
 0x198   :  { %10890 = vmatmul.mubr.msk.f32.gmra.mrb[70].mxu0 %vm1822_vm2, %v13257_v46 }
 0x199   :  { %10892 = vmatprep.mubr.msk.f32.mxu0 %vm1822_vm2, %v13250_v7 }
 0x19c   :  { %10893 = vmatmul.mubr.msk.f32.gmra.mrb[72].mxu0 %vm1822_vm2, %v13275_v22 }
 0x19d   :  { %10895 = vmatprep.mubr.msk.f32.mxu0 %vm1822_vm2, %v13268_v12 }
 0x1a0   :  { %10896 = vmatmul.mubr.msk.f32.gmra.mrb[74].mxu0 %vm1822_vm2, %v13296_v56 }
 0x1a1   :  { %10898 = vmatprep.mubr.msk.f32.mxu0 %vm1822_vm2, %v13290_v44 }
 0x1a4   :  { %10899 = vmatmul.mubr.msk.f32.gmra.mrb[76].mxu0 %vm1822_vm2, %v13316_v30 }
 0x1a5   :  { %10901 = vmatprep.mubr.msk.f32.mxu0 %vm1822_vm2, %v13310_v24 }
 0x1a8   :  { %10902 = vmatmul.mubr.msk.f32.gmra.mrb[78].mxu0 %vm1822_vm2, %v13342_v58 }
 0x1a9   :  { %10904 = vmatprep.mubr.msk.f32.mxu0 %vm1822_vm2, %v13336_v14 }
 0x1ac   :  { %10905 = vmatmul.mubr.msk.f32.gmra.mrb[80].mxu0 %vm1822_vm2, %v15969_v59 }
 0x1ad   :  { %10907 = vmatprep.mubr.msk.f32.mxu0 %vm1822_vm2, %v15970_v20 }
 0x1b0   :  { %10908 = vmatmul.mubr.msk.f32.gmra.mrb[82].mxu0 %vm1822_vm2, %v15971_v38 }
 0x1b1   :  { %10910 = vmatprep.mubr.msk.f32.mxu0 %vm1822_vm2, %v15972_v35 }
 0x1b4   :  { %10911 = vmatmul.mubr.msk.f32.gmra.mrb[84].mxu0 %vm1822_vm2, %v15973_v29 }
 0x1b5   :  { %10913 = vmatprep.mubr.msk.f32.mxu0 %vm1822_vm2, %v15974_v51 }
 0x1b8   :  { %10914 = vmatmul.mubr.msk.f32.gmra.mrb[86].mxu0 %vm1822_vm2, %v15975_v40 }
 0x1b9   :  { %10916 = vmatprep.mubr.msk.f32.mxu0 %vm1822_vm2, %v15976_v34 }
 0x1bc   :  { %10917 = vmatmul.mubr.msk.f32.gmra.mrb[88].mxu0 %vm1822_vm2, %v15977_v4 }
 0x1bd   :  { %10919 = vmatprep.mubr.msk.f32.mxu0 %vm1822_vm2, %v15978_v21 }
 0x1c0   :  { %10920 = vmatmul.mubr.msk.f32.gmra.mrb[90].mxu0 %vm1822_vm2, %v15979_v39 }
 0x1c1   :  { %10922 = vmatprep.mubr.msk.f32.mxu0 %vm1822_vm2, %v15980_v41 }
 0x1c4   :  { %10923 = vmatmul.mubr.msk.f32.gmra.mrb[92].mxu0 %vm1822_vm2, %v15981_v0 }
 0x1c5   :  { %10925 = vmatprep.mubr.msk.f32.mxu0 %vm1822_vm2, %v15982_v32 }
 0x1c8   :  { %10926 = vmatmul.mubr.msk.f32.gmra.mrb[94].mxu0 %vm1822_vm2, %v15983_v54 }
 0x1c9   :  { %10928 = vmatprep.mubr.msk.f32.mxu0 %vm1822_vm2, %v15984_v16 }
 0x1cc   :  { %10929 = vmatmul.mubr.msk.f32.gmra.mrb[96].mxu0 %vm1822_vm2, %v15985_v23 }
 0x1cd   :  { %10931 = vmatprep.mubr.msk.f32.mxu0 %vm1822_vm2, %v15986_v10 }
 0x1d0   :  { %10932 = vmatmul.mubr.msk.f32.gmra.mrb[98].mxu0 %vm1822_vm2, %v15987_v11 }
 0x1d1   :  { %10934 = vmatprep.mubr.msk.f32.mxu0 %vm1822_vm2, %v15988_v6 }
 0x1d4   :  { %10935 = vmatmul.mubr.msk.f32.gmra.mrb[100].mxu0 %vm1822_vm2, %v15989_v15 }
 0x1d5   :  { %10937 = vmatprep.mubr.msk.f32.mxu0 %vm1822_vm2, %v15990_v45 }
 0x1d8   :  { %10938 = vmatmul.mubr.msk.f32.gmra.mrb[102].mxu0 %vm1822_vm2, %v13673_v27 }
 0x1d9   :  { %10940 = vmatprep.mubr.msk.f32.mxu0 %vm1822_vm2, %v13662_v31 }
 0x1dc   :  { %10941 = vmatmul.mubr.msk.f32.gmra.mrb[104].mxu0 %vm1822_vm2, %v13693_v57 }
 0x1dd   :  { %10943 = vmatprep.mubr.msk.f32.mxu0 %vm1822_vm2, %v15991_v19 }
 0x1e0   :  { %10944 = vmatmul.mubr.msk.f32.gmra.mrb[106].mxu0 %vm1822_vm2, %v13717_v47 }
 0x1e1   :  { %10946 = vmatprep.mubr.msk.f32.mxu0 %vm1822_vm2, %v15992_v63 }
 0x1e4   :  { %10947 = vmatmul.mubr.msk.f32.gmra.mrb[108].mxu0 %vm1822_vm2, %v13743_v28 }
 0x1e5   :  { %10949 = vmatprep.mubr.msk.f32.mxu0 %vm1822_vm2, %v13725_v60 }
 0x1e8   :  { %10950 = vmatmul.mubr.msk.f32.gmra.mrb[110].mxu0 %vm1822_vm2, %v13766_v1 }
 0x1e9   :  { %10952 = vmatprep.mubr.msk.f32.mxu0 %vm1822_vm2, %v13756_v42 }
 0x1ec   :  { %10953 = vmatmul.mubr.msk.f32.gmra.mrb[112].mxu0 %vm1822_vm2, %v13786_v2 }
 0x1ed   :  { %10955 = vmatprep.mubr.msk.f32.mxu0 %vm1822_vm2, %v13774_v37 }
 0x1f0   :  { %10956 = vmatmul.mubr.msk.f32.gmra.mrb[114].mxu0 %vm1822_vm2, %v13813_v9 }
 0x1f1   :  { %10958 = vmatprep.mubr.msk.f32.mxu0 %vm1822_vm2, %v13798_v8 }
 0x1f4   :  { %10959 = vmatmul.mubr.msk.f32.gmra.mrb[116].mxu0 %vm1822_vm2, %v13825_v36  ;;  %v12099_v36 = vld [vmem:[%s15878_s9 + $0x30] sm:$0xff]  }
 0x1f5   :  { %10961 = vmatprep.mubr.msk.f32.mxu0 %vm1822_vm2, %v13818_v52  ;;  %11084 = vmatpush3.bf16.msra.mxu1 %v12099_v36 }
 0x1f6   :  { %11085 = vmatprep.subr.bf16.mxu1 %v15993_v48 }
 0x1f8   :  { %10962 = vmatmul.mubr.msk.f32.gmra.mrb[118].mxu0 %vm1822_vm2, %v13842_v5 }
 0x1f9   :  { %10964 = vmatprep.mubr.msk.f32.mxu0 %vm1822_vm2, %v13833_v55 }
 0x1fc   :  { %10965 = vmatmul.mubr.msk.f32.gmra.mrb[120].mxu0 %vm1822_vm2, %v13846_v18  ;;  %v12100_v18 = vld [vmem:[%s15878_s9 + $0x38] sm:$0xff]  }
 0x1fd   :  { %10983 = vmatprep.mubr.msk.f32.mxu0 %vm1822_vm2, %v13117_v61  ;;  %11086 = vmatpush3.bf16.msra.mxu1 %v12100_v18  ;;  %v15994_v61 = vld [vmem:[#allocation26_spill] sm:$0xff] }
 0x1fe   :  { %11091 = vmatprep.subr.bf16.mxu1 %v15993_v48 }
 0x200   :  { %10984 = vmatmul.mubr.msk.f32.vlgmr.msra.gmra.mrb[58].mxu0 %vm1822_vm2, %v13144_v33  ;;  %v15996_v33 = vld [vmem:[#allocation27_spill] sm:$0xff] }
 0x201   :  { %10986 = vmatprep.mubr.msk.f32.mxu0 %vm1822_vm2, %v13135_v25  ;;  %v15995_v25 = vld [vmem:[#allocation28_spill] sm:$0xff] }
 0x204   :  { %10987 = vmatmul.mubr.msk.f32.gmra.mrb[60].mxu0 %vm1822_vm2, %v13172_v62  ;;  %v12112_v62 = vld [vmem:[%s15878_s9 + $0x308] sm:$0xff]  }
 0x205   :  { %10989 = vmatprep.mubr.msk.f32.mxu0 %vm1822_vm2, %v13161_v50  ;;  %v12110_v50 = vld [vmem:[%s15878_s9 + $0x300] sm:$0xff]  }
 0x206   :  { %11368 = vmatpush3.bf16.msra.mxu0 %v12110_v50 }
 0x207   :  { %11369 = vmatprep.subr.bf16.mxu0 %v15993_v48 }
 0x208   :  { %10990 = vmatmul.mubr.msk.f32.gmra.mrb[62].mxu0 %vm1822_vm2, %v13200_v26  ;;  %v12116_v26 = vld [vmem:[%s15878_s9 + $0x318] sm:$0xff]  }
 0x209   :  { %10992 = vmatprep.mubr.msk.f32.mxu0 %vm1822_vm2, %v13191_v17  ;;  %v12114_v17 = vld [vmem:[%s15878_s9 + $0x310] sm:$0xff]  }
 0x20a   :  { %11370 = vmatpush3.bf16.msra.mxu0 %v12112_v62 }
 0x20b   :  { %11371 = vmatprep.subr.bf16.mxu0 %v15993_v48 }
 0x20c   :  { %10993 = vmatmul.mubr.msk.f32.gmra.mrb[64].mxu0 %vm1822_vm2, %v13220_v49 }
 0x20d   :  { %10995 = vmatprep.mubr.msk.f32.mxu0 %vm1822_vm2, %v13214_v53  ;;  %v14170_v53 = vld [vmem:[%s15879_s6] ss:$0 sm:$0xff] }
 0x20e   :  { %11372 = vmatpush3.bf16.msra.mxu0 %v12114_v17  ;;  %v12115_v17 = vld [vmem:[%s15878_s9 + $0x78] sm:$0xff]  }
 0x20f   :  { %11373 = vmatprep.subr.bf16.mxu0 %v15993_v48 }
 0x210   :  { %10996 = vmatmul.mubr.msk.f32.gmra.mrb[66].mxu0 %vm1822_vm2, %v13239_v13 }
 0x211   :  { %10998 = vmatprep.mubr.msk.f32.mxu0 %vm1822_vm2, %v13232_v43  ;;  %v14175_v43 = vld [vmem:[%s15880_s7] ss:$0 sm:$0xff] }
 0x212   :  { %11374 = vmatpush3.bf16.msra.mxu0 %v12116_v26 }
 0x213   :  { %11391 = vmatprep.subr.bf16.mxu0 %v15993_v48 }
 0x214   :  { %10999 = vmatmul.mubr.msk.f32.gmra.mrb[68].mxu0 %vm1822_vm2, %v13257_v46  ;;  %v14181_v46 = vld [vmem:[%s15881_s8] ss:$0 sm:$0xff] }
 0x215   :  { %11001 = vmatprep.mubr.msk.f32.mxu0 %vm1822_vm2, %v13250_v7 }
 0x218   :  { %11002 = vmatmul.mubr.msk.f32.gmra.mrb[70].mxu0 %vm1822_vm2, %v13275_v22 }
 0x219   :  { %11004 = vmatprep.mubr.msk.f32.mxu0 %vm1822_vm2, %v13268_v12 }
 0x21c   :  { %11005 = vmatmul.mubr.msk.f32.gmra.mrb[72].mxu0 %vm1822_vm2, %v13296_v56 }
 0x21d   :  { %11007 = vmatprep.mubr.msk.f32.mxu0 %vm1822_vm2, %v13290_v44 }
 0x220   :  { %11008 = vmatmul.mubr.msk.f32.gmra.mrb[74].mxu0 %vm1822_vm2, %v13316_v30 }
 0x221   :  { %11010 = vmatprep.mubr.msk.f32.mxu0 %vm1822_vm2, %v13310_v24 }
 0x224   :  { %11011 = vmatmul.mubr.msk.f32.gmra.mrb[76].mxu0 %vm1822_vm2, %v13342_v58 }
 0x225   :  { %11013 = vmatprep.mubr.msk.f32.mxu0 %vm1822_vm2, %v13336_v14  ;;  %v12101_v14 = vld [vmem:[%s15878_s9] sm:$0xff]  }
 0x228   :  { %11014 = vmatmul.mubr.msk.f32.gmra.mrb[78].mxu0 %vm1822_vm2, %v15969_v59 }
 0x229   :  { %11016 = vmatprep.mubr.msk.f32.mxu0 %vm1822_vm2, %v15970_v20 }
 0x22c   :  { %11017 = vmatmul.mubr.msk.f32.gmra.mrb[80].mxu0 %vm1822_vm2, %v15971_v38  ;;  %v12106_v38 = vld [vmem:[%s15878_s9 + $0x48] sm:$0xff]  }
 0x22d   :  { %11019 = vmatprep.mubr.msk.f32.mxu0 %vm1822_vm2, %v15972_v35 }
 0x230   :  { %11020 = vmatmul.mubr.msk.f32.gmra.mrb[82].mxu0 %vm1822_vm2, %v15973_v29 }
 0x231   :  { %11022 = vmatprep.mubr.msk.f32.mxu0 %vm1822_vm2, %v15974_v51 }
 0x234   :  { %11023 = vmatmul.mubr.msk.f32.gmra.mrb[84].mxu0 %vm1822_vm2, %v15975_v40  ;;  %v12107_v40 = vld [vmem:[%s15878_s9 + $0x50] sm:$0xff]  }
 0x235   :  { %11025 = vmatprep.mubr.msk.f32.mxu0 %vm1822_vm2, %v15976_v34 }
 0x238   :  { %11026 = vmatmul.mubr.msk.f32.gmra.mrb[86].mxu0 %vm1822_vm2, %v15977_v4 }
 0x239   :  { %11028 = vmatprep.mubr.msk.f32.mxu0 %vm1822_vm2, %v15978_v21 }
 0x23c   :  { %11029 = vmatmul.mubr.msk.f32.gmra.mrb[88].mxu0 %vm1822_vm2, %v15979_v39  ;;  %v12108_v39 = vld [vmem:[%s15878_s9 + $0x58] sm:$0xff]  }
 0x23d   :  { %11031 = vmatprep.mubr.msk.f32.mxu0 %vm1822_vm2, %v15980_v41 }
 0x240   :  { %11032 = vmatmul.mubr.msk.f32.gmra.mrb[90].mxu0 %vm1822_vm2, %v15981_v0 }
 0x241   :  { %11034 = vmatprep.mubr.msk.f32.mxu0 %vm1822_vm2, %v15982_v32 }
 0x244   :  { %11035 = vmatmul.mubr.msk.f32.gmra.mrb[92].mxu0 %vm1822_vm2, %v15983_v54  ;;  %v12109_v54 = vld [vmem:[%s15878_s9 + $0x60] sm:$0xff]  }
 0x245   :  { %11037 = vmatprep.mubr.msk.f32.mxu0 %vm1822_vm2, %v15984_v16 }
 0x248   :  { %11038 = vmatmul.mubr.msk.f32.gmra.mrb[94].mxu0 %vm1822_vm2, %v15985_v23 }
 0x249   :  { %11040 = vmatprep.mubr.msk.f32.mxu0 %vm1822_vm2, %v15986_v10 }
 0x24c   :  { %11041 = vmatmul.mubr.msk.f32.gmra.mrb[96].mxu0 %vm1822_vm2, %v15987_v11 }
 0x24d   :  { %11043 = vmatprep.mubr.msk.f32.mxu0 %vm1822_vm2, %v15988_v6  ;;  %v12111_v6 = vld [vmem:[%s15878_s9 + $0x68] sm:$0xff]  }
 0x250   :  { %11044 = vmatmul.mubr.msk.f32.gmra.mrb[98].mxu0 %vm1822_vm2, %v15989_v15 }
 0x251   :  { %11046 = vmatprep.mubr.msk.f32.mxu0 %vm1822_vm2, %v15990_v45 }
 0x254   :  { %11047 = vmatmul.mubr.msk.f32.gmra.mrb[100].mxu0 %vm1822_vm2, %v13673_v27 }
 0x255   :  { %11049 = vmatprep.mubr.msk.f32.mxu0 %vm1822_vm2, %v13662_v31 }
 0x258   :  { %11050 = vmatmul.mubr.msk.f32.gmra.mrb[102].mxu0 %vm1822_vm2, %v13693_v57  ;;  %v12102_v57 = vld [vmem:[%s15878_s9 + $0x8] sm:$0xff]  }
 0x259   :  { %11052 = vmatprep.mubr.msk.f32.mxu0 %vm1822_vm2, %v15991_v19 }
 0x25c   :  { %11053 = vmatmul.mubr.msk.f32.gmra.mrb[104].mxu0 %vm1822_vm2, %v13717_v47 }
 0x25d   :  { %11055 = vmatprep.mubr.msk.f32.mxu0 %vm1822_vm2, %v15992_v63 }
 0x260   :  { %11056 = vmatmul.mubr.msk.f32.gmra.mrb[106].mxu0 %vm1822_vm2, %v13743_v28 }
 0x261   :  { %11058 = vmatprep.mubr.msk.f32.mxu0 %vm1822_vm2, %v13725_v60 }
 0x264   :  { %11059 = vmatmul.mubr.msk.f32.gmra.mrb[108].mxu0 %vm1822_vm2, %v13766_v1  ;;  %v12103_v1 = vld [vmem:[%s15878_s9 + $0x10] sm:$0xff]  }
 0x265   :  { %11061 = vmatprep.mubr.msk.f32.mxu0 %vm1822_vm2, %v13756_v42 }
 0x268   :  { %11062 = vmatmul.mubr.msk.f32.gmra.mrb[110].mxu0 %vm1822_vm2, %v13786_v2 }
 0x269   :  { %11064 = vmatprep.mubr.msk.f32.mxu0 %vm1822_vm2, %v13774_v37 }
 0x26c   :  { %11065 = vmatmul.mubr.msk.f32.gmra.mrb[112].mxu0 %vm1822_vm2, %v13813_v9  ;;  %v12104_v9 = vld [vmem:[%s15878_s9 + $0x18] sm:$0xff]  }
 0x26d   :  { %11067 = vmatprep.mubr.msk.f32.mxu0 %vm1822_vm2, %v13798_v8 }
 0x270   :  { %11068 = vmatmul.mubr.msk.f32.gmra.mrb[114].mxu0 %vm1822_vm2, %v15994_v61 }
 0x271   :  { %11070 = vmatprep.mubr.msk.f32.mxu0 %vm1822_vm2, %v13818_v52 }
 0x274   :  { %11071 = vmatmul.mubr.msk.f32.gmra.mrb[116].mxu0 %vm1822_vm2, %v13842_v5 }
 0x275   :  { %11073 = vmatprep.mubr.msk.f32.mxu0 %vm1822_vm2, %v13833_v55  ;;  %v12105_v55 = vld [vmem:[%s15878_s9 + $0x40] sm:$0xff]  }
 0x278   :  { %11074 = vmatmul.mubr.msk.f32.gmra.mrb[118].mxu0 %vm1822_vm2, %v15995_v25 }
 0x279   :  { %11076 = vmatprep.mubr.msk.f32.mxu0 %vm1822_vm2, %v15996_v33 }
 0x27c   :  { %11077 = vmatmul.mubr.f32.gmra.mrb[120].mxu0 %v15993_v48 }
 0x27d   :  { %11375 = vmatprep.mubr.msk.bf16.mxu0 %vm12363_vm3, %v15993_v48 }
 0x2d3   :  { %v10985_v49 = vpop.f32.mrb[58].mxu0 }
 0x2d4   :  { %v3254_v13 = vadd.f32 %v10985_v49, %v14170_v53  ;;  %v2863_v7 = vpop.f32.mrb[59].mxu0 }
 0x2d5   :  { %v3253_v31 = vadd.f32 %v14170_v53, %v2863_v7 }
 0x2d6   :  { %v3325_v12 = vmul.f32 %v14175_v43, %v3254_v13 }
 0x2d7   :  { %v10988_v22 = vpop.f32.mrb[60].mxu0  ;;  %v3324_v47 = vmul.f32 %v14175_v43, %v3253_v31 }
 0x2d8   :  { %v3396_v44 = vadd.f32 %v14181_v46, %v3325_v12  ;;  %v2873_v56 = vpop.f32.mrb[61].mxu0  ;;  %v3256_v16 = vadd.f32 %v10988_v22, %v14170_v53  ;;  %v12117_v22 = vld [vmem:[%s15878_s9 + $0x80] sm:$0xff]  }
 0x2d9   :  { %v3395_v37 = vadd.f32 %v14181_v46, %v3324_v47  ;;  %v3255_v18 = vadd.f32 %v14170_v53, %v2873_v56 }
 0x2da   :  { %v3460_v24 = vmax.f32 %v3396_v44, 0.0  ;;  %v3327_v15 = vmul.f32 %v14175_v43, %v3256_v16 }
 0x2db   :  { %v14185_v30 = vpop.f32.mrb[62].mxu0  ;;  %v3459_v52 = vmax.f32 %v3395_v37, 0.0  ;;  %v3326_v35 = vmul.f32 %v14175_v43, %v3255_v18  ;;  %v12120_v37 = vld [vmem:[%s15878_s9 + $0x348] sm:$0xff]  }
 0x2dc   :  { %v3532_v58 = vpack.c.bf16 %v3460_v24, %v3460_v24  ;;  %v14191_v27 = vpop.f32.mrb[63].mxu0  ;;  %v3398_v61 = vadd.f32 %v14181_v46, %v3327_v15  ;;  %v3258_v15 = vadd.f32 %v14185_v30, %v14170_v53 }
 0x2dd   :  { %v3523_v5 = vpack.c.bf16 %v3459_v52, %v3459_v52  ;;  %v3397_v34 = vadd.f32 %v14181_v46, %v3326_v35  ;;  %v3257_v56 = vadd.f32 %v14170_v53, %v14191_v27  ;;  %v12119_v27 = vld [vmem:[%s15878_s9 + $0x88] sm:$0xff]  }
 0x2de   :  { %11088 = vmatmul.mubr.msk.bf16.vlgmr.msra.gmra.mrb[72].mxu1 %vm1822_vm2, %v3532_v58  ;;  %v3462_v26 = vmax.f32 %v3398_v61, 0.0 }
 0x2df   :  { %11092 = vmatpush3.bf16.msra.mxu1 %v12101_v14  ;;  %v14194_v60 = vpop.f32.mrb[64].mxu0  ;;  %11099 = vmatprep.mubr.msk.bf16.mxu1 %vm12363_vm3, %v15993_v48  ;;  %v3461_v41 = vmax.f32 %v3397_v34, 0.0  ;;  %v12118_v14 = vld [vmem:[%s15878_s9 + $0x340] sm:$0xff]   ;;  %v3328_v47 = vmul.f32 %v14175_v43, %v3257_v56  ;;  %v12123_v34 = vld [vmem:[%s15878_s9 + $0x98] sm:$0xff]  }
 0x2e0   :  { %v14202_v28 = vpop.f32.mrb[65].mxu0  ;;  %11093 = vmatprep.subr.bf16.mxu1 %v15993_v48  ;;  %v3754_v44 = vpack.c.bf16 %v3462_v26, %v3462_v26  ;;  %v3329_v26 = vmul.f32 %v14175_v43, %v3258_v15  ;;  %v12135_v15 = vld [vmem:[%s15878_s9 + $0xc8] sm:$0xff]  }
 0x2e1   :  { %v3676_v23 = vpack.c.bf16 %v3461_v41, %v3461_v41 }
 0x2e2   :  { %v3400_v56 = vadd.f32 %v14181_v46, %v3329_v26 }
 0x2e3   :  { %11094 = vmatpush3.bf16.msra.mxu1 %v12102_v57  ;;  %v14205_v42 = vpop.f32.mrb[66].mxu0 }
 0x2e4   :  { %v14211_v2 = vpop.f32.mrb[67].mxu0  ;;  %11095 = vmatprep.subr.bf16.mxu1 %v15993_v48 }
 0x2e7   :  { %11096 = vmatpush3.bf16.msra.mxu1 %v12103_v1  ;;  %v14214_v8 = vpop.f32.mrb[68].mxu0 }
 0x2e8   :  { %v14219_v63 = vpop.f32.mrb[69].mxu0  ;;  %11097 = vmatprep.subr.bf16.mxu1 %v15993_v48 }
 0x2eb   :  { %11098 = vmatpush3.bf16.msra.mxu1 %v12104_v9  ;;  %v14222_v36 = vpop.f32.mrb[70].mxu0 }
 0x2ec   :  { %v14228_v59 = vpop.f32.mrb[71].mxu0  ;;  %11103 = vmatprep.subr.bf16.mxu1 %v15993_v48 }
 0x2ee   :  { %11100 = vmatmul.mubr.msk.bf16.vlgmr.msra.gmra.mrb[76].mxu1 %vm1822_vm2, %v3523_v5  ;;  %v3399_v5 = vadd.f32 %v14181_v46, %v3328_v47  ;;  %v3464_v47 = vmax.f32 %v3400_v56, 0.0 }
 0x2ef   :  { %11104 = vmatpush3.bf16.msra.mxu1 %v12105_v55  ;;  %v14232_v20 = vpop.f32.mrb[72].mxu0  ;;  %11111 = vmatprep.mubr.msk.bf16.mxu1 %vm12363_vm3, %v15993_v48  ;;  %v12121_v55 = vld [vmem:[%s15878_s9 + $0x90] sm:$0xff]  }
 0x2f0   :  { %v14240_v29 = vpop.f32.mrb[73].mxu0  ;;  %11105 = vmatprep.subr.bf16.mxu1 %v15993_v48 }
 0x2f3   :  { %11106 = vmatpush3.bf16.msra.mxu1 %v12106_v38  ;;  %v14243_v51 = vpop.f32.mrb[74].mxu0  ;;  %v12122_v38 = vld [vmem:[%s15878_s9 + $0x350] sm:$0xff]  }
 0x2f4   :  { %v14249_v4 = vpop.f32.mrb[75].mxu0  ;;  %11107 = vmatprep.subr.bf16.mxu1 %v15993_v48 }
 0x2f7   :  { %11108 = vmatpush3.bf16.msra.mxu1 %v12107_v40  ;;  %v14252_v21 = vpop.f32.mrb[76].mxu0 }
 0x2f8   :  { %v14257_v0 = vpop.f32.mrb[77].mxu0  ;;  %11109 = vmatprep.subr.bf16.mxu1 %v15993_v48 }
 0x2fb   :  { %11110 = vmatpush3.bf16.msra.mxu1 %v12108_v39  ;;  %v14260_v32 = vpop.f32.mrb[78].mxu0  ;;  %v3463_v39 = vmax.f32 %v3399_v5, 0.0 }
 0x2fc   :  { %v14266_v10 = vpop.f32.mrb[79].mxu0  ;;  %11115 = vmatprep.subr.bf16.mxu1 %v15993_v48 }
 0x2fe   :  { %11112 = vmatmul.mubr.msk.bf16.vlgmr.msra.gmra.mrb[80].mxu1 %vm1822_vm2, %v3676_v23 }
 0x2ff   :  { %11116 = vmatpush3.bf16.msra.mxu1 %v12109_v54  ;;  %v14270_v11 = vpop.f32.mrb[80].mxu0  ;;  %11123 = vmatprep.mubr.msk.bf16.mxu1 %vm12363_vm3, %v15993_v48  ;;  %v12124_v54 = vld [vmem:[%s15878_s9 + $0x358] sm:$0xff]  }
 0x300   :  { %v14278_v45 = vpop.f32.mrb[81].mxu0  ;;  %11117 = vmatprep.subr.bf16.mxu1 %v15993_v48 }
 0x303   :  { %11118 = vmatpush3.bf16.msra.mxu1 %v12111_v6  ;;  %v14281_v19 = vpop.f32.mrb[82].mxu0  ;;  %v12125_v6 = vld [vmem:[%s15878_s9 + $0xa0] sm:$0xff]  }
 0x304   :  { %v2983_v25 = vpop.f32.mrb[83].mxu0  ;;  %11119 = vmatprep.subr.bf16.mxu1 %v15993_v48 }
 0x305   :  { %v3277_v33 = vadd.f32 %v14170_v53, %v2983_v25  ;;  %v12126_v25 = vld [vmem:[%s15878_s9 + $0x380] sm:$0xff]  }
 0x307   :  { %v3348_v50 = vmul.f32 %v14175_v43, %v3277_v33  ;;  %11120 = vmatpush3.bf16.msra.mxu1 %v12113_v3  ;;  %v14290_v62 = vpop.f32.mrb[84].mxu0  ;;  %v3832_v3 = vpack.c.bf16 %v3463_v39, %v3463_v39 }
 0x308   :  { %v2993_v49 = vpop.f32.mrb[85].mxu0  ;;  %11121 = vmatprep.subr.bf16.mxu1 %v15993_v48 }
 0x309   :  { %v3419_v13 = vadd.f32 %v14181_v46, %v3348_v50  ;;  %v3279_v31 = vadd.f32 %v14170_v53, %v2993_v49 }
 0x30b   :  { %v3483_v7 = vmax.f32 %v3419_v13, 0.0  ;;  %11122 = vmatpush3.bf16.msra.mxu1 %v12115_v17  ;;  %v14297_v12 = vpop.f32.mrb[86].mxu0  ;;  %v3350_v9 = vmul.f32 %v14175_v43, %v3279_v31  ;;  %v12127_v17 = vld [vmem:[%s15878_s9 + $0xa8] sm:$0xff]  }
 0x30c   :  { %v3003_v24 = vpop.f32.mrb[87].mxu0  ;;  %11127 = vmatprep.subr.bf16.mxu1 %v15993_v48  ;;  %v12128_v13 = vld [vmem:[%s15878_s9 + $0x388] sm:$0xff]  }
 0x30d   :  { %v5392_v58 = vpack.c.bf16 %v3483_v7, %v3483_v7  ;;  %v3421_v35 = vadd.f32 %v14181_v46, %v3350_v9  ;;  %v3281_v50 = vadd.f32 %v14170_v53, %v3003_v24  ;;  %v12132_v9 = vld [vmem:[%s15878_s9 + $0x398] sm:$0xff]  }
 0x30e   :  { %11124 = vmatmul.mubr.msk.bf16.vlgmr.msra.gmra.mrb[84].mxu1 %vm1822_vm2, %v3754_v44  ;;  %v12129_v44 = vld [vmem:[%s15878_s9 + $0xb0] sm:$0xff]  }
 0x30f   :  { %11128 = vmatpush3.bf16.msra.mxu1 %v12117_v22  ;;  %v14310_v57 = vpop.f32.mrb[88].mxu0  ;;  %11376 = vmatmul.mubr.msk.bf16.vlgmr.msra.gmra.mrb[124].mxu0 %vm1822_vm2, %v5392_v58  ;;  %v3485_v16 = vmax.f32 %v3421_v35, 0.0  ;;  %v3352_v7 = vmul.f32 %v14175_v43, %v3281_v50  ;;  %v3910_v35 = vpack.c.bf16 %v3464_v47, %v3464_v47  ;;  %v12140_v47 = vld [vmem:[%s15878_s9 + $0x3d8] sm:$0xff]  }
 0x310   :  { %11392 = vmatpush3.bf16.msra.mxu0 %v12118_v14  ;;  %v14317_v1 = vpop.f32.mrb[89].mxu0  ;;  %11129 = vmatprep.subr.bf16.mxu1 %v15993_v48  ;;  %v12130_v14 = vld [vmem:[%s15878_s9 + $0x390] sm:$0xff]  }
 0x311   :  { %11393 = vmatprep.subr.bf16.mxu0 %v15993_v48  ;;  %11135 = vmatprep.mubr.msk.bf16.mxu1 %vm12363_vm3, %v15993_v48  ;;  %v5548_v33 = vpack.c.bf16 %v3485_v16, %v3485_v16  ;;  %v3423_v58 = vadd.f32 %v14181_v46, %v3352_v7  ;;  %v12138_v7 = vld [vmem:[%s15878_s9 + $0x3d0] sm:$0xff]  }
 0x312   :  { %11399 = vmatprep.mubr.msk.bf16.mxu0 %vm12363_vm3, %v15993_v48 }
 0x313   :  { %11130 = vmatpush3.bf16.msra.mxu1 %v12119_v27  ;;  %v14329_v52 = vpop.f32.mrb[90].mxu0  ;;  %v12131_v27 = vld [vmem:[%s15878_s9 + $0xb8] sm:$0xff]  }
 0x314   :  { %11394 = vmatpush3.bf16.msra.mxu0 %v12120_v37  ;;  %v14335_v18 = vpop.f32.mrb[91].mxu0  ;;  %11131 = vmatprep.subr.bf16.mxu1 %v15993_v48 }
 0x315   :  { %11395 = vmatprep.subr.bf16.mxu0 %v15993_v48 }
 0x317   :  { %11132 = vmatpush3.bf16.msra.mxu1 %v12121_v55  ;;  %v14343_v40 = vpop.f32.mrb[92].mxu0  ;;  %v3487_v55 = vmax.f32 %v3423_v58, 0.0 }
 0x318   :  { %11396 = vmatpush3.bf16.msra.mxu0 %v12122_v38  ;;  %v14348_v41 = vpop.f32.mrb[93].mxu0  ;;  %11133 = vmatprep.subr.bf16.mxu1 %v15993_v48  ;;  %v12133_v38 = vld [vmem:[%s15878_s9 + $0xc0] sm:$0xff]  }
 0x319   :  { %11397 = vmatprep.subr.bf16.mxu0 %v15993_v48  ;;  %v5704_v16 = vpack.c.bf16 %v3487_v55, %v3487_v55 }
 0x31b   :  { %11134 = vmatpush3.bf16.msra.mxu1 %v12123_v34  ;;  %v14355_v23 = vpop.f32.mrb[94].mxu0  ;;  %v3259_v34 = vadd.f32 %v14170_v53, %v14202_v28 }
 0x31c   :  { %11398 = vmatpush3.bf16.msra.mxu0 %v12124_v54  ;;  %v14362_v61 = vpop.f32.mrb[95].mxu0  ;;  %11139 = vmatprep.subr.bf16.mxu1 %v15993_v48  ;;  %v12134_v54 = vld [vmem:[%s15878_s9 + $0x3c0] sm:$0xff]  }
 0x31d   :  { %11415 = vmatprep.subr.bf16.mxu0 %v15993_v48 }
 0x31e   :  { %11136 = vmatmul.mubr.msk.bf16.vlgmr.msra.gmra.mrb[88].mxu1 %vm1822_vm2, %v3832_v3  ;;  %v3330_v3 = vmul.f32 %v14175_v43, %v3259_v34 }
 0x31f   :  { %11140 = vmatpush3.bf16.msra.mxu1 %v12125_v6  ;;  %11400 = vmatmul.mubr.msk.bf16.vlgmr.msra.gmra.mrb[128].mxu0 %vm1822_vm2, %v5548_v33  ;;  %v14372_v30 = vpop.f32.mrb[96].mxu0  ;;  %v3283_v6 = vadd.f32 %v14170_v53, %v14317_v1  ;;  %v12136_v1 = vld [vmem:[%s15878_s9 + $0x3c8] sm:$0xff]  }
 0x320   :  { %11416 = vmatpush3.bf16.msra.mxu0 %v12126_v25  ;;  %v14378_v49 = vpop.f32.mrb[97].mxu0  ;;  %11141 = vmatprep.subr.bf16.mxu1 %v15993_v48  ;;  %v3401_v26 = vadd.f32 %v14181_v46, %v3330_v3  ;;  %v12143_v3 = vld [vmem:[%s15878_s9 + $0xe8] sm:$0xff]  }
 0x321   :  { %11417 = vmatprep.subr.bf16.mxu0 %v15993_v48  ;;  %11147 = vmatprep.mubr.msk.bf16.mxu1 %vm12363_vm3, %v15993_v48  ;;  %v3354_v33 = vmul.f32 %v14175_v43, %v3283_v6 }
 0x322   :  { %11423 = vmatprep.mubr.msk.bf16.mxu0 %vm12363_vm3, %v15993_v48  ;;  %v3465_v58 = vmax.f32 %v3401_v26, 0.0 }
 0x323   :  { %11142 = vmatpush3.bf16.msra.mxu1 %v12127_v17  ;;  %v14390_v22 = vpop.f32.mrb[98].mxu0  ;;  %v12137_v17 = vld [vmem:[%s15878_s9 + $0xd0] sm:$0xff]  }
 0x324   :  { %11418 = vmatpush3.bf16.msra.mxu0 %v12128_v13  ;;  %v14396_v24 = vpop.f32.mrb[99].mxu0  ;;  %11143 = vmatprep.subr.bf16.mxu1 %v15993_v48  ;;  %v3988_v34 = vpack.c.bf16 %v3465_v58, %v3465_v58  ;;  %v12146_v58 = vld [vmem:[%s15878_s9 + $0x410] sm:$0xff]  }
 0x325   :  { %11419 = vmatprep.subr.bf16.mxu0 %v15993_v48 }
 0x327   :  { %11144 = vmatpush3.bf16.msra.mxu1 %v12129_v44  ;;  %v14404_v31 = vpop.f32.mrb[100].mxu0  ;;  %v3425_v44 = vadd.f32 %v14181_v46, %v3354_v33 }
 0x328   :  { %11420 = vmatpush3.bf16.msra.mxu0 %v12130_v14  ;;  %v14409_v37 = vpop.f32.mrb[101].mxu0  ;;  %11145 = vmatprep.subr.bf16.mxu1 %v15993_v48  ;;  %v12139_v14 = vld [vmem:[%s15878_s9 + $0xd8] sm:$0xff]  }
 0x329   :  { %11421 = vmatprep.subr.bf16.mxu0 %v15993_v48 }
 0x32b   :  { %11146 = vmatpush3.bf16.msra.mxu1 %v12131_v27  ;;  %v14416_v5 = vpop.f32.mrb[102].mxu0 }
 0x32c   :  { %11422 = vmatpush3.bf16.msra.mxu0 %v12132_v9  ;;  %v14423_v39 = vpop.f32.mrb[103].mxu0  ;;  %11151 = vmatprep.subr.bf16.mxu1 %v15993_v48  ;;  %v3489_v9 = vmax.f32 %v3425_v44, 0.0 }
 0x32d   :  { %11439 = vmatprep.subr.bf16.mxu0 %v15993_v48 }
 0x32e   :  { %11148 = vmatmul.mubr.msk.bf16.vlgmr.msra.gmra.mrb[92].mxu1 %vm1822_vm2, %v3910_v35  ;;  %v3260_v35 = vadd.f32 %v14194_v60, %v14170_v53  ;;  %v5860_v6 = vpack.c.bf16 %v3489_v9, %v3489_v9 }
 0x32f   :  { %11152 = vmatpush3.bf16.msra.mxu1 %v12133_v38  ;;  %11424 = vmatmul.mubr.msk.bf16.vlgmr.msra.gmra.mrb[132].mxu0 %vm1822_vm2, %v5704_v16  ;;  %v14434_v28 = vpop.f32.mrb[104].mxu0  ;;  %v12141_v38 = vld [vmem:[%s15878_s9 + $0xe0] sm:$0xff]  }
 0x330   :  { %11440 = vmatpush3.bf16.msra.mxu0 %v12134_v54  ;;  %v14440_v25 = vpop.f32.mrb[105].mxu0  ;;  %11153 = vmatprep.subr.bf16.mxu1 %v15993_v48  ;;  %v12142_v16 = vld [vmem:[%s15878_s9 + $0x400] sm:$0xff]  }
 0x331   :  { %11441 = vmatprep.subr.bf16.mxu0 %v15993_v48  ;;  %11159 = vmatprep.mubr.msk.bf16.mxu1 %vm12363_vm3, %v15993_v48 }
 0x332   :  { %11447 = vmatprep.mubr.msk.bf16.mxu0 %vm12363_vm3, %v15993_v48 }
 0x333   :  { %11154 = vmatpush3.bf16.msra.mxu1 %v12135_v15  ;;  %v14452_v50 = vpop.f32.mrb[106].mxu0  ;;  %v3285_v15 = vadd.f32 %v14170_v53, %v14335_v18  ;;  %v12144_v18 = vld [vmem:[%s15878_s9 + $0x408] sm:$0xff]  }
 0x334   :  { %11442 = vmatpush3.bf16.msra.mxu0 %v12136_v1  ;;  %v14458_v13 = vpop.f32.mrb[107].mxu0  ;;  %11155 = vmatprep.subr.bf16.mxu1 %v15993_v48  ;;  %v3331_v1 = vmul.f32 %v14175_v43, %v3260_v35 }
 0x335   :  { %11443 = vmatprep.subr.bf16.mxu0 %v15993_v48 }
 0x336   :  { %v3402_v44 = vadd.f32 %v14181_v46, %v3331_v1 }
 0x337   :  { %11156 = vmatpush3.bf16.msra.mxu1 %v12137_v17  ;;  %v14466_v56 = vpop.f32.mrb[108].mxu0  ;;  %v3356_v17 = vmul.f32 %v14175_v43, %v3285_v15 }
 0x338   :  { %11444 = vmatpush3.bf16.msra.mxu0 %v12138_v7  ;;  %v14471_v27 = vpop.f32.mrb[109].mxu0  ;;  %11157 = vmatprep.subr.bf16.mxu1 %v15993_v48  ;;  %v12145_v7 = vld [vmem:[%s15878_s9 + $0xf0] sm:$0xff]   ;;  %v3466_v35 = vmax.f32 %v3402_v44, 0.0 }
 0x339   :  { %11445 = vmatprep.subr.bf16.mxu0 %v15993_v48 }
 0x33a   :  { %v4066_v1 = vpack.c.bf16 %v3466_v35, %v3466_v35 }
 0x33b   :  { %11158 = vmatpush3.bf16.msra.mxu1 %v12139_v14  ;;  %v14478_v55 = vpop.f32.mrb[110].mxu0 }
 0x33c   :  { %11446 = vmatpush3.bf16.msra.mxu0 %v12140_v47  ;;  %v14485_v54 = vpop.f32.mrb[111].mxu0  ;;  %11163 = vmatprep.subr.bf16.mxu1 %v15993_v48  ;;  %v3427_v47 = vadd.f32 %v14181_v46, %v3356_v17 }
 0x33d   :  { %11463 = vmatprep.subr.bf16.mxu0 %v15993_v48 }
 0x33e   :  { %11160 = vmatmul.mubr.msk.bf16.vlgmr.msra.gmra.mrb[96].mxu1 %vm1822_vm2, %v3988_v34 }
 0x33f   :  { %11164 = vmatpush3.bf16.msra.mxu1 %v12141_v38  ;;  %11448 = vmatmul.mubr.msk.bf16.vlgmr.msra.gmra.mrb[136].mxu0 %vm1822_vm2, %v5860_v6  ;;  %v14496_v60 = vpop.f32.mrb[112].mxu0  ;;  %v12147_v38 = vld [vmem:[%s15878_s9 + $0xf8] sm:$0xff]   ;;  %v3491_v6 = vmax.f32 %v3427_v47, 0.0  ;;  %v12151_v47 = vld [vmem:[%s15878_s9 + $0x108] sm:$0xff]  }
 0x340   :  { %11464 = vmatpush3.bf16.msra.mxu0 %v12142_v16  ;;  %v14502_v33 = vpop.f32.mrb[113].mxu0  ;;  %11165 = vmatprep.subr.bf16.mxu1 %v15993_v48  ;;  %v12148_v16 = vld [vmem:[%s15878_s9 + $0x418] sm:$0xff]  }
 0x341   :  { %11465 = vmatprep.subr.bf16.mxu0 %v15993_v48  ;;  %11171 = vmatprep.mubr.msk.bf16.mxu1 %vm12363_vm3, %v15993_v48  ;;  %v6016_v44 = vpack.c.bf16 %v3491_v6, %v3491_v6  ;;  %v12153_v6 = vld [vmem:[%s15878_s9 + $0x110] sm:$0xff]  }
 0x342   :  { %11471 = vmatprep.mubr.msk.bf16.mxu0 %vm12363_vm3, %v15993_v48 }
 0x343   :  { %11166 = vmatpush3.bf16.msra.mxu1 %v12143_v3  ;;  %v14514_v26 = vpop.f32.mrb[114].mxu0  ;;  %v12149_v3 = vld [vmem:[%s15878_s9 + $0x100] sm:$0xff]  }
 0x344   :  { %11466 = vmatpush3.bf16.msra.mxu0 %v12144_v18  ;;  %v14520_v14 = vpop.f32.mrb[115].mxu0  ;;  %11167 = vmatprep.subr.bf16.mxu1 %v15993_v48  ;;  %v3261_v18 = vadd.f32 %v14170_v53, %v14211_v2 }
 0x345   :  { %11467 = vmatprep.subr.bf16.mxu0 %v15993_v48 }
 0x347   :  { %11168 = vmatpush3.bf16.msra.mxu1 %v12145_v7  ;;  %v14528_v9 = vpop.f32.mrb[116].mxu0  ;;  %v12150_v7 = vld [vmem:[%s15878_s9 + $0x440] sm:$0xff]  }
 0x348   :  { %11468 = vmatpush3.bf16.msra.mxu0 %v12146_v58  ;;  %v14533_v34 = vpop.f32.mrb[117].mxu0  ;;  %11169 = vmatprep.subr.bf16.mxu1 %v15993_v48  ;;  %v3287_v58 = vadd.f32 %v14170_v53, %v14348_v41  ;;  %v12152_v41 = vld [vmem:[%s15878_s9 + $0x448] sm:$0xff]  }
 0x349   :  { %11469 = vmatprep.subr.bf16.mxu0 %v15993_v48 }
 0x34b   :  { %11170 = vmatpush3.bf16.msra.mxu1 %v12147_v38  ;;  %v14540_v15 = vpop.f32.mrb[118].mxu0  ;;  %v3332_v38 = vmul.f32 %v14175_v43, %v3261_v18 }
 0x34c   :  { %11470 = vmatpush3.bf16.msra.mxu0 %v12148_v16  ;;  %v14547_v17 = vpop.f32.mrb[119].mxu0  ;;  %11175 = vmatprep.subr.bf16.mxu1 %v15993_v48  ;;  %v3358_v16 = vmul.f32 %v14175_v43, %v3287_v58  ;;  %v12156_v58 = vld [vmem:[%s15878_s9 + $0x458] sm:$0xff]  }
 0x34d   :  { %11487 = vmatprep.subr.bf16.mxu0 %v15993_v48 }
 0x34e   :  { %11172 = vmatmul.mubr.msk.bf16.vlgmr.msra.gmra.mrb[100].mxu1 %vm1822_vm2, %v4066_v1  ;;  %v12154_v1 = vld [vmem:[%s15878_s9 + $0x450] sm:$0xff]   ;;  %v3429_v18 = vadd.f32 %v14181_v46, %v3358_v16 }
 0x34f   :  { %11176 = vmatpush3.bf16.msra.mxu1 %v12149_v3  ;;  %11472 = vmatmul.mubr.msk.bf16.vlgmr.msra.gmra.mrb[140].mxu0 %vm1822_vm2, %v6016_v44  ;;  %v14558_v2 = vpop.f32.mrb[120].mxu0  ;;  %v3403_v3 = vadd.f32 %v14181_v46, %v3332_v38  ;;  %v12157_v38 = vld [vmem:[%s15878_s9 + $0x120] sm:$0xff]  }
 0x350   :  { %11488 = vmatpush3.bf16.msra.mxu0 %v12150_v7  ;;  %v14564_v35 = vpop.f32.mrb[121].mxu0  ;;  %11177 = vmatprep.subr.bf16.mxu1 %v15993_v48  ;;  %v12155_v7 = vld [vmem:[%s15878_s9 + $0x118] sm:$0xff]  }
 0x351   :  { %11489 = vmatprep.subr.bf16.mxu0 %v15993_v48  ;;  %11183 = vmatprep.mubr.msk.bf16.mxu1 %vm12363_vm3, %v15993_v48  ;;  %v3467_v44 = vmax.f32 %v3403_v3, 0.0 }
 0x352   :  { %11495 = vmatprep.mubr.msk.bf16.mxu0 %vm12363_vm3, %v15993_v48 }
 0x353   :  { %11178 = vmatpush3.bf16.msra.mxu1 %v12151_v47  ;;  %v3493_v47 = vmax.f32 %v3429_v18, 0.0  ;;  %v4144_v16 = vpack.c.bf16 %v3467_v44, %v3467_v44  ;;  %v12161_v44 = vld [vmem:[%s15878_s9 + $0x130] sm:$0xff]  }
 0x354   :  { %11490 = vmatpush3.bf16.msra.mxu0 %v12152_v41  ;;  %11179 = vmatprep.subr.bf16.mxu1 %v15993_v48  ;;  %v3262_v41 = vadd.f32 %v14205_v42, %v14170_v53  ;;  %v12159_v42 = vld [vmem:[%s15878_s9 + $0x128] sm:$0xff]  }
 0x355   :  { %11491 = vmatprep.subr.bf16.mxu0 %v15993_v48  ;;  %v6172_v3 = vpack.c.bf16 %v3493_v47, %v3493_v47  ;;  %v12162_v47 = vld [vmem:[%s15878_s9 + $0x490] sm:$0xff]  }
 0x356   :  { %v3333_v18 = vmul.f32 %v14175_v43, %v3262_v41  ;;  %v12163_v41 = vld [vmem:[%s15878_s9 + $0x138] sm:$0xff]  }
 0x357   :  { %11180 = vmatpush3.bf16.msra.mxu1 %v12153_v6  ;;  %v12158_v6 = vld [vmem:[%s15878_s9 + $0x480] sm:$0xff]  }
 0x358   :  { %11492 = vmatpush3.bf16.msra.mxu0 %v12154_v1  ;;  %11181 = vmatprep.subr.bf16.mxu1 %v15993_v48  ;;  %v3289_v1 = vadd.f32 %v14170_v53, %v14362_v61  ;;  %v12160_v61 = vld [vmem:[%s15878_s9 + $0x488] sm:$0xff]  }
 0x359   :  { %11493 = vmatprep.subr.bf16.mxu0 %v15993_v48 }
 0x35b   :  { %11182 = vmatpush3.bf16.msra.mxu1 %v12155_v7  ;;  %v3360_v7 = vmul.f32 %v14175_v43, %v3289_v1  ;;  %v12165_v1 = vld [vmem:[%s15878_s9 + $0x140] sm:$0xff]  }
 0x35c   :  { %11494 = vmatpush3.bf16.msra.mxu0 %v12156_v58  ;;  %11187 = vmatprep.subr.bf16.mxu1 %v15993_v48  ;;  %v3404_v58 = vadd.f32 %v14181_v46, %v3333_v18  ;;  %v3263_v18 = vadd.f32 %v14170_v53, %v14219_v63  ;;  %v12167_v63 = vld [vmem:[%s15878_s9 + $0x148] sm:$0xff]  }
 0x35d   :  { %11511 = vmatprep.subr.bf16.mxu0 %v15993_v48 }
 0x35e   :  { %11184 = vmatmul.mubr.msk.bf16.vlgmr.msra.gmra.mrb[104].mxu1 %vm1822_vm2, %v4144_v16  ;;  %v3468_v16 = vmax.f32 %v3404_v58, 0.0  ;;  %v3334_v58 = vmul.f32 %v14175_v43, %v3263_v18 }
 0x35f   :  { %11188 = vmatpush3.bf16.msra.mxu1 %v12157_v38  ;;  %11496 = vmatmul.mubr.msk.bf16.vlgmr.msra.gmra.mrb[144].mxu0 %vm1822_vm2, %v6172_v3  ;;  %v3431_v38 = vadd.f32 %v14181_v46, %v3360_v7 }
 0x360   :  { %11512 = vmatpush3.bf16.msra.mxu0 %v12158_v6  ;;  %11189 = vmatprep.subr.bf16.mxu1 %v15993_v48  ;;  %v12164_v6 = vld [vmem:[%s15878_s9 + $0x498] sm:$0xff]  }
 0x361   :  { %11513 = vmatprep.subr.bf16.mxu0 %v15993_v48  ;;  %11195 = vmatprep.mubr.msk.bf16.mxu1 %vm12363_vm3, %v15993_v48  ;;  %v3495_v3 = vmax.f32 %v3431_v38, 0.0  ;;  %v12169_v38 = vld [vmem:[%s15878_s9 + $0x150] sm:$0xff]  }
 0x362   :  { %11519 = vmatprep.mubr.msk.bf16.mxu0 %vm12363_vm3, %v15993_v48 }
 0x363   :  { %11190 = vmatpush3.bf16.msra.mxu1 %v12159_v42  ;;  %v4222_v42 = vpack.c.bf16 %v3468_v16, %v3468_v16  ;;  %v6328_v7 = vpack.c.bf16 %v3495_v3, %v3495_v3  ;;  %v12170_v16 = vld [vmem:[%s15878_s9 + $0x4d0] sm:$0xff]   ;;  %v12171_v3 = vld [vmem:[%s15878_s9 + $0x158] sm:$0xff]  }
 0x364   :  { %11514 = vmatpush3.bf16.msra.mxu0 %v12160_v61  ;;  %11191 = vmatprep.subr.bf16.mxu1 %v15993_v48  ;;  %v12166_v61 = vld [vmem:[%s15878_s9 + $0x4c0] sm:$0xff]  }
 0x365   :  { %11515 = vmatprep.subr.bf16.mxu0 %v15993_v48 }
 0x367   :  { %11192 = vmatpush3.bf16.msra.mxu1 %v12161_v44  ;;  %v3291_v44 = vadd.f32 %v14170_v53, %v14378_v49  ;;  %v12168_v49 = vld [vmem:[%s15878_s9 + $0x4c8] sm:$0xff]  }
 0x368   :  { %11516 = vmatpush3.bf16.msra.mxu0 %v12162_v47  ;;  %11193 = vmatprep.subr.bf16.mxu1 %v15993_v48 }
 0x369   :  { %11517 = vmatprep.subr.bf16.mxu0 %v15993_v48  ;;  %v3362_v47 = vmul.f32 %v14175_v43, %v3291_v44 }
 0x36b   :  { %11194 = vmatpush3.bf16.msra.mxu1 %v12163_v41  ;;  %v3405_v41 = vadd.f32 %v14181_v46, %v3334_v58 }
 0x36c   :  { %11518 = vmatpush3.bf16.msra.mxu0 %v12164_v6  ;;  %11199 = vmatprep.subr.bf16.mxu1 %v15993_v48  ;;  %v3433_v6 = vadd.f32 %v14181_v46, %v3362_v47 }
 0x36d   :  { %11535 = vmatprep.subr.bf16.mxu0 %v15993_v48 }
 0x36e   :  { %11196 = vmatmul.mubr.msk.bf16.vlgmr.msra.gmra.mrb[108].mxu1 %vm1822_vm2, %v4222_v42  ;;  %v12172_v42 = vld [vmem:[%s15878_s9 + $0x4d8] sm:$0xff]   ;;  %v3497_v18 = vmax.f32 %v3433_v6, 0.0  ;;  %v12178_v6 = vld [vmem:[%s15878_s9 + $0x510] sm:$0xff]  }
 0x36f   :  { %11200 = vmatpush3.bf16.msra.mxu1 %v12165_v1  ;;  %11520 = vmatmul.mubr.msk.bf16.vlgmr.msra.gmra.mrb[148].mxu0 %vm1822_vm2, %v6328_v7  ;;  %v3469_v1 = vmax.f32 %v3405_v41, 0.0  ;;  %v3264_v7 = vadd.f32 %v14214_v8, %v14170_v53  ;;  %v12175_v8 = vld [vmem:[%s15878_s9 + $0x168] sm:$0xff]   ;;  %v12177_v41 = vld [vmem:[%s15878_s9 + $0x170] sm:$0xff]  }
 0x370   :  { %11536 = vmatpush3.bf16.msra.mxu0 %v12166_v61  ;;  %11201 = vmatprep.subr.bf16.mxu1 %v15993_v48  ;;  %v12173_v61 = vld [vmem:[%s15878_s9 + $0x160] sm:$0xff]   ;;  %v6484_v58 = vpack.c.bf16 %v3497_v18, %v3497_v18  ;;  %v12180_v18 = vld [vmem:[%s15878_s9 + $0x518] sm:$0xff]  }
 0x371   :  { %11537 = vmatprep.subr.bf16.mxu0 %v15993_v48  ;;  %11207 = vmatprep.mubr.msk.bf16.mxu1 %vm12363_vm3, %v15993_v48  ;;  %v4300_v44 = vpack.c.bf16 %v3469_v1, %v3469_v1  ;;  %v3335_v47 = vmul.f32 %v14175_v43, %v3264_v7  ;;  %v12179_v1 = vld [vmem:[%s15878_s9 + $0x178] sm:$0xff]   ;;  %v12181_v7 = vld [vmem:[%s15878_s9 + $0x180] sm:$0xff]  }
 0x372   :  { %11543 = vmatprep.mubr.msk.bf16.mxu0 %vm12363_vm3, %v15993_v48 }
 0x373   :  { %11202 = vmatpush3.bf16.msra.mxu1 %v12167_v63  ;;  %v12174_v63 = vld [vmem:[%s15878_s9 + $0x500] sm:$0xff]  }
 0x374   :  { %11538 = vmatpush3.bf16.msra.mxu0 %v12168_v49  ;;  %11203 = vmatprep.subr.bf16.mxu1 %v15993_v48  ;;  %v3293_v49 = vadd.f32 %v14170_v53, %v14396_v24  ;;  %v12176_v24 = vld [vmem:[%s15878_s9 + $0x508] sm:$0xff]  }
 0x375   :  { %11539 = vmatprep.subr.bf16.mxu0 %v15993_v48 }
 0x377   :  { %11204 = vmatpush3.bf16.msra.mxu1 %v12169_v38  ;;  %v3364_v38 = vmul.f32 %v14175_v43, %v3293_v49 }
 0x378   :  { %11540 = vmatpush3.bf16.msra.mxu0 %v12170_v16  ;;  %11205 = vmatprep.subr.bf16.mxu1 %v15993_v48  ;;  %v3406_v16 = vadd.f32 %v14181_v46, %v3335_v47 }
 0x379   :  { %11541 = vmatprep.subr.bf16.mxu0 %v15993_v48 }
 0x37b   :  { %11206 = vmatpush3.bf16.msra.mxu1 %v12171_v3  ;;  %v3435_v3 = vadd.f32 %v14181_v46, %v3364_v38  ;;  %v12185_v38 = vld [vmem:[%s15878_s9 + $0x190] sm:$0xff]  }
 0x37c   :  { %11542 = vmatpush3.bf16.msra.mxu0 %v12172_v42  ;;  %11211 = vmatprep.subr.bf16.mxu1 %v15993_v48  ;;  %v3470_v42 = vmax.f32 %v3406_v16, 0.0  ;;  %v12186_v16 = vld [vmem:[%s15878_s9 + $0x550] sm:$0xff]  }
 0x37d   :  { %11559 = vmatprep.subr.bf16.mxu0 %v15993_v48 }
 0x37e   :  { %11208 = vmatmul.mubr.msk.bf16.vlgmr.msra.gmra.mrb[112].mxu1 %vm1822_vm2, %v4300_v44  ;;  %v4378_v44 = vpack.c.bf16 %v3470_v42, %v3470_v42  ;;  %v12188_v42 = vld [vmem:[%s15878_s9 + $0x558] sm:$0xff]  }
 0x37f   :  { %11212 = vmatpush3.bf16.msra.mxu1 %v12173_v61  ;;  %11544 = vmatmul.mubr.msk.bf16.vlgmr.msra.gmra.mrb[152].mxu0 %vm1822_vm2, %v6484_v58  ;;  %v3499_v61 = vmax.f32 %v3435_v3, 0.0  ;;  %v12182_v58 = vld [vmem:[%s15878_s9 + $0x540] sm:$0xff]   ;;  %v12187_v3 = vld [vmem:[%s15878_s9 + $0x198] sm:$0xff]  }
 0x380   :  { %11560 = vmatpush3.bf16.msra.mxu0 %v12174_v63  ;;  %11213 = vmatprep.subr.bf16.mxu1 %v15993_v48  ;;  %v3265_v63 = vadd.f32 %v14170_v53, %v14228_v59  ;;  %v12183_v59 = vld [vmem:[%s15878_s9 + $0x188] sm:$0xff]  }
 0x381   :  { %11561 = vmatprep.subr.bf16.mxu0 %v15993_v48  ;;  %11219 = vmatprep.mubr.msk.bf16.mxu1 %vm12363_vm3, %v15993_v48  ;;  %v6640_v49 = vpack.c.bf16 %v3499_v61, %v3499_v61  ;;  %v12189_v61 = vld [vmem:[%s15878_s9 + $0x1a0] sm:$0xff]  }
 0x382   :  { %11567 = vmatprep.mubr.msk.bf16.mxu0 %vm12363_vm3, %v15993_v48  ;;  %v3336_v47 = vmul.f32 %v14175_v43, %v3265_v63  ;;  %v12190_v63 = vld [vmem:[%s15878_s9 + $0x580] sm:$0xff]  }
 0x383   :  { %11214 = vmatpush3.bf16.msra.mxu1 %v12175_v8  ;;  %v3295_v8 = vadd.f32 %v14170_v53, %v14409_v37  ;;  %v12184_v37 = vld [vmem:[%s15878_s9 + $0x548] sm:$0xff]  }
 0x384   :  { %11562 = vmatpush3.bf16.msra.mxu0 %v12176_v24  ;;  %11215 = vmatprep.subr.bf16.mxu1 %v15993_v48 }
 0x385   :  { %11563 = vmatprep.subr.bf16.mxu0 %v15993_v48  ;;  %v3366_v24 = vmul.f32 %v14175_v43, %v3295_v8 }
 0x387   :  { %11216 = vmatpush3.bf16.msra.mxu1 %v12177_v41  ;;  %v3407_v41 = vadd.f32 %v14181_v46, %v3336_v47 }
 0x388   :  { %11564 = vmatpush3.bf16.msra.mxu0 %v12178_v6  ;;  %11217 = vmatprep.subr.bf16.mxu1 %v15993_v48  ;;  %v3437_v6 = vadd.f32 %v14181_v46, %v3366_v24  ;;  %v12195_v24 = vld [vmem:[%s15878_s9 + $0x1b8] sm:$0xff]  }
 0x389   :  { %11565 = vmatprep.subr.bf16.mxu0 %v15993_v48 }
 0x38b   :  { %11218 = vmatpush3.bf16.msra.mxu1 %v12179_v1  ;;  %v3471_v1 = vmax.f32 %v3407_v41, 0.0  ;;  %v12196_v41 = vld [vmem:[%s15878_s9 + $0x598] sm:$0xff]  }
 0x38c   :  { %11566 = vmatpush3.bf16.msra.mxu0 %v12180_v18  ;;  %11223 = vmatprep.subr.bf16.mxu1 %v15993_v48  ;;  %v3501_v18 = vmax.f32 %v3437_v6, 0.0 }
 0x38d   :  { %11583 = vmatprep.subr.bf16.mxu0 %v15993_v48 }
 0x38e   :  { %11220 = vmatmul.mubr.msk.bf16.vlgmr.msra.gmra.mrb[116].mxu1 %vm1822_vm2, %v4378_v44  ;;  %v4456_v44 = vpack.c.bf16 %v3471_v1, %v3471_v1 }
 0x38f   :  { %11224 = vmatpush3.bf16.msra.mxu1 %v12181_v7  ;;  %11568 = vmatmul.mubr.msk.bf16.vlgmr.msra.gmra.mrb[156].mxu0 %vm1822_vm2, %v6640_v49  ;;  %v3266_v7 = vadd.f32 %v14222_v36, %v14170_v53  ;;  %v3297_v49 = vadd.f32 %v14170_v53, %v14423_v39  ;;  %v12191_v36 = vld [vmem:[%s15878_s9 + $0x1a8] sm:$0xff]  }
 0x390   :  { %11584 = vmatpush3.bf16.msra.mxu0 %v12182_v58  ;;  %11225 = vmatprep.subr.bf16.mxu1 %v15993_v48  ;;  %v6796_v58 = vpack.c.bf16 %v3501_v18, %v3501_v18  ;;  %v12192_v53 = vld [vmem:[%s15878_s9 + $0x588] sm:$0xff]  }
 0x391   :  { %11585 = vmatprep.subr.bf16.mxu0 %v15993_v48  ;;  %11231 = vmatprep.mubr.msk.bf16.mxu1 %vm12363_vm3, %v15993_v48  ;;  %v3337_v8 = vmul.f32 %v14175_v43, %v3266_v7  ;;  %v3368_v39 = vmul.f32 %v14175_v43, %v3297_v49  ;;  %v12194_v43 = vld [vmem:[%s15878_s9 + $0x590] sm:$0xff]   ;;  %v14849_v7 = vld [vmem:[%s15880_s7] ss:$0 sm:$0xff] }
 0x392   :  { %11591 = vmatprep.mubr.msk.bf16.mxu0 %vm12363_vm3, %v15993_v48 }
 0x393   :  { %11226 = vmatpush3.bf16.msra.mxu1 %v12183_v59  ;;  %v12193_v59 = vld [vmem:[%s15878_s9 + $0x1b0] sm:$0xff]   ;;  %v3408_v47 = vadd.f32 %v14181_v46, %v3337_v8 }
 0x394   :  { %11586 = vmatpush3.bf16.msra.mxu0 %v12184_v37  ;;  %11227 = vmatprep.subr.bf16.mxu1 %v15993_v48  ;;  %v3439_v37 = vadd.f32 %v14181_v46, %v3368_v39  ;;  %v12197_v46 = vld [vmem:[%s15878_s9 + $0x1c0] sm:$0xff]   ;;  %v12201_v8 = vld [vmem:[%s15878_s9 + $0x1d0] sm:$0xff]  }
 0x395   :  { %11587 = vmatprep.subr.bf16.mxu0 %v15993_v48 }
 0x397   :  { %11228 = vmatpush3.bf16.msra.mxu1 %v12185_v38  ;;  %v3472_v38 = vmax.f32 %v3408_v47, 0.0  ;;  %v12202_v47 = vld [vmem:[%s15878_s9 + $0x5d0] sm:$0xff]  }
 0x398   :  { %11588 = vmatpush3.bf16.msra.mxu0 %v12186_v16  ;;  %11229 = vmatprep.subr.bf16.mxu1 %v15993_v48  ;;  %v3503_v16 = vmax.f32 %v3439_v37, 0.0  ;;  %v12203_v37 = vld [vmem:[%s15878_s9 + $0x1d8] sm:$0xff]  }
 0x399   :  { %11589 = vmatprep.subr.bf16.mxu0 %v15993_v48  ;;  %v4534_v6 = vpack.c.bf16 %v3472_v38, %v3472_v38  ;;  %v12204_v38 = vld [vmem:[%s15878_s9 + $0x5d8] sm:$0xff]  }
 0x39a   :  { %v6952_v18 = vpack.c.bf16 %v3503_v16, %v3503_v16  ;;  %v12205_v16 = vld [vmem:[%s15878_s9 + $0x1e0] sm:$0xff]  }
 0x39b   :  { %11230 = vmatpush3.bf16.msra.mxu1 %v12187_v3  ;;  %v14830_v3 = vld [vmem:[%s15879_s6] ss:$0 sm:$0xff] }
 0x39c   :  { %11590 = vmatpush3.bf16.msra.mxu0 %v12188_v42  ;;  %11235 = vmatprep.subr.bf16.mxu1 %v15993_v48  ;;  %v3267_v1 = vadd.f32 %v14830_v3, %v14240_v29  ;;  %v12198_v42 = vld [vmem:[%s15878_s9 + $0x5c0] sm:$0xff]   ;;  %v12199_v29 = vld [vmem:[%s15878_s9 + $0x1c8] sm:$0xff]  }
 0x39d   :  { %11607 = vmatprep.subr.bf16.mxu0 %v15993_v48 }
 0x39e   :  { %11232 = vmatmul.mubr.msk.bf16.vlgmr.msra.gmra.mrb[120].mxu1 %vm1822_vm2, %v4456_v44  ;;  %v3338_v44 = vmul.f32 %v14849_v7, %v3267_v1  ;;  %v12206_v1 = vld [vmem:[%s15878_s9 + $0x600] sm:$0xff]  }
 0x39f   :  { %11236 = vmatpush3.bf16.msra.mxu1 %v12189_v61  ;;  %11592 = vmatmul.mubr.msk.bf16.vlgmr.msra.gmra.mrb[160].mxu0 %vm1822_vm2, %v6796_v58  ;;  %v3299_v61 = vadd.f32 %v14830_v3, %v14440_v25  ;;  %v12200_v25 = vld [vmem:[%s15878_s9 + $0x5c8] sm:$0xff]  }
 0x3a0   :  { %11608 = vmatpush3.bf16.msra.mxu0 %v12190_v63  ;;  %11237 = vmatprep.subr.bf16.mxu1 %v15993_v48 }
 0x3a1   :  { %11609 = vmatprep.subr.bf16.mxu0 %v15993_v48  ;;  %11243 = vmatprep.mubr.msk.bf16.mxu1 %vm12363_vm3, %v15993_v48  ;;  %v3370_v63 = vmul.f32 %v14849_v7, %v3299_v61 }
 0x3a2   :  { %11615 = vmatprep.mubr.msk.bf16.mxu0 %vm12363_vm3, %v15993_v48 }
 0x3a3   :  { %11238 = vmatpush3.bf16.msra.mxu1 %v12191_v36 }
 0x3a4   :  { %11610 = vmatpush3.bf16.msra.mxu0 %v12192_v53  ;;  %11239 = vmatprep.subr.bf16.mxu1 %v15993_v48  ;;  %v14868_v53 = vld [vmem:[%s15881_s8] ss:$0 sm:$0xff] }
 0x3a5   :  { %11611 = vmatprep.subr.bf16.mxu0 %v15993_v48  ;;  %v3409_v39 = vadd.f32 %v14868_v53, %v3338_v44 }
 0x3a7   :  { %11240 = vmatpush3.bf16.msra.mxu1 %v12193_v59 }
 0x3a8   :  { %11612 = vmatpush3.bf16.msra.mxu0 %v12194_v43  ;;  %11241 = vmatprep.subr.bf16.mxu1 %v15993_v48  ;;  %v3441_v43 = vadd.f32 %v14868_v53, %v3370_v63 }
 0x3a9   :  { %11613 = vmatprep.subr.bf16.mxu0 %v15993_v48 }
 0x3ab   :  { %11242 = vmatpush3.bf16.msra.mxu1 %v12195_v24  ;;  %v3473_v24 = vmax.f32 %v3409_v39, 0.0 }
 0x3ac   :  { %11614 = vmatpush3.bf16.msra.mxu0 %v12196_v41  ;;  %11247 = vmatprep.subr.bf16.mxu1 %v15993_v48  ;;  %v3505_v41 = vmax.f32 %v3441_v43, 0.0 }
 0x3ad   :  { %11631 = vmatprep.subr.bf16.mxu0 %v15993_v48 }
 0x3ae   :  { %11244 = vmatmul.mubr.msk.bf16.vlgmr.msra.gmra.mrb[124].mxu1 %vm1822_vm2, %v4534_v6  ;;  %v4612_v6 = vpack.c.bf16 %v3473_v24, %v3473_v24 }
 0x3af   :  { %11248 = vmatpush3.bf16.msra.mxu1 %v12197_v46  ;;  %11616 = vmatmul.mubr.msk.bf16.vlgmr.msra.gmra.mrb[164].mxu0 %vm1822_vm2, %v6952_v18  ;;  %v3268_v46 = vadd.f32 %v14830_v3, %v14232_v20  ;;  %v3301_v18 = vadd.f32 %v14830_v3, %v14458_v13  ;;  %v12207_v20 = vld [vmem:[%s15878_s9 + $0x1e8] sm:$0xff]  }
 0x3b0   :  { %11632 = vmatpush3.bf16.msra.mxu0 %v12198_v42  ;;  %11249 = vmatprep.subr.bf16.mxu1 %v15993_v48  ;;  %v7108_v42 = vpack.c.bf16 %v3505_v41, %v3505_v41  ;;  %v12208_v13 = vld [vmem:[%s15878_s9 + $0x608] sm:$0xff]  }
 0x3b1   :  { %v3603_v58 = vpop.f32.mrb[72].mxu1  ;;  %11633 = vmatprep.subr.bf16.mxu0 %v15993_v48  ;;  %11255 = vmatprep.mubr.msk.bf16.mxu1 %vm12363_vm3, %v15993_v48  ;;  %v3339_v61 = vmul.f32 %v14849_v7, %v3268_v46  ;;  %v12214_v46 = vld [vmem:[%s15878_s9 + $0x640] sm:$0xff]  }
 0x3b2   :  { %v11089_v49 = vpop.f32.mrb[73].mxu1  ;;  %11639 = vmatprep.mubr.msk.bf16.mxu0 %vm12363_vm3, %v15993_v48 }
 0x3b3   :  { %11250 = vmatpush3.bf16.msra.mxu1 %v12199_v29  ;;  %v3606_v36 = vpop.f32.mrb[74].mxu1  ;;  %v3372_v29 = vmul.f32 %v14849_v7, %v3301_v18 }
 0x3b4   :  { %11634 = vmatpush3.bf16.msra.mxu0 %v12200_v25  ;;  %v11090_v59 = vpop.f32.mrb[75].mxu1  ;;  %11251 = vmatprep.subr.bf16.mxu1 %v15993_v48  ;;  %v12209_v36 = vld [vmem:[%s15878_s9 + $0x1f0] sm:$0xff]  }
 0x3b5   :  { %11635 = vmatprep.subr.bf16.mxu0 %v15993_v48  ;;  %v3443_v59 = vadd.f32 %v14868_v53, %v3372_v29 }
 0x3b7   :  { %11252 = vmatpush3.bf16.msra.mxu1 %v12201_v8  ;;  %v3410_v8 = vadd.f32 %v14868_v53, %v3339_v61  ;;  %v3507_v24 = vmax.f32 %v3443_v59, 0.0 }
 0x3b8   :  { %11636 = vmatpush3.bf16.msra.mxu0 %v12202_v47  ;;  %11253 = vmatprep.subr.bf16.mxu1 %v15993_v48  ;;  %v12211_v47 = vld [vmem:[%s15878_s9 + $0x1f8] sm:$0xff]  }
 0x3b9   :  { %11637 = vmatprep.subr.bf16.mxu0 %v15993_v48  ;;  %v3474_v43 = vmax.f32 %v3410_v8, 0.0  ;;  %v12219_v8 = vld [vmem:[%s15878_s9 + $0x218] sm:$0xff]  }
 0x3bb   :  { %11254 = vmatpush3.bf16.msra.mxu1 %v12203_v37  ;;  %v12212_v37 = vld [vmem:[%s15878_s9 + $0x618] sm:$0xff]   ;;  %v4690_v41 = vpack.c.bf16 %v3474_v43, %v3474_v43  ;;  %v3270_v43 = vadd.f32 %v14830_v3, %v14243_v51  ;;  %v12223_v51 = vld [vmem:[%s15878_s9 + $0x228] sm:$0xff]  }
 0x3bc   :  { %11638 = vmatpush3.bf16.msra.mxu0 %v12204_v38  ;;  %11259 = vmatprep.subr.bf16.mxu1 %v15993_v48  ;;  %v12213_v38 = vld [vmem:[%s15878_s9 + $0x200] sm:$0xff]  }
 0x3bd   :  { %11655 = vmatprep.subr.bf16.mxu0 %v15993_v48 }
 0x3be   :  { %11256 = vmatmul.mubr.msk.bf16.vlgmr.msra.gmra.mrb[128].mxu1 %vm1822_vm2, %v4612_v6  ;;  %v7264_v6 = vpack.c.bf16 %v3507_v24, %v3507_v24  ;;  %v12222_v24 = vld [vmem:[%s15878_s9 + $0x680] sm:$0xff]  }
 0x3bf   :  { %11260 = vmatpush3.bf16.msra.mxu1 %v12205_v16  ;;  %11640 = vmatmul.mubr.msk.bf16.vlgmr.msra.gmra.mrb[168].mxu0 %vm1822_vm2, %v7108_v42  ;;  %v3269_v16 = vadd.f32 %v14830_v3, %v14249_v4  ;;  %v12215_v4 = vld [vmem:[%s15878_s9 + $0x208] sm:$0xff]  }
 0x3c0   :  { %11656 = vmatpush3.bf16.msra.mxu0 %v12206_v1  ;;  %11261 = vmatprep.subr.bf16.mxu1 %v15993_v48  ;;  %v3303_v1 = vadd.f32 %v14830_v3, %v14471_v27  ;;  %v12216_v27 = vld [vmem:[%s15878_s9 + $0x648] sm:$0xff]  }
 0x3c1   :  { %v3670_v44 = vpop.f32.mrb[76].mxu1  ;;  %11657 = vmatprep.subr.bf16.mxu0 %v15993_v48  ;;  %11267 = vmatprep.mubr.msk.bf16.mxu1 %vm12363_vm3, %v15993_v48  ;;  %v3340_v42 = vmul.f32 %v14849_v7, %v3269_v16  ;;  %v3341_v16 = vmul.f32 %v14849_v7, %v3270_v43  ;;  %v12230_v43 = vld [vmem:[%s15878_s9 + $0x6c0] sm:$0xff]  }
 0x3c2   :  { %v3671_v25 = vadd.f32 %v3670_v44, %v3603_v58  ;;  %v11101_v63 = vpop.f32.mrb[77].mxu1  ;;  %11663 = vmatprep.mubr.msk.bf16.mxu0 %vm12363_vm3, %v15993_v48  ;;  %v12210_v58 = vld [vmem:[%s15878_s9 + $0x610] sm:$0xff]   ;;  %v3374_v18 = vmul.f32 %v14849_v7, %v3303_v1 }
 0x3c3   :  { %v3673_v49 = vpop.f32.mrb[78].mxu1  ;;  %11262 = vmatpush3.bf16.msra.mxu1 %v12207_v20  ;;  %v12217_v44 = vld [vmem:[%s15878_s9 + $0x210] sm:$0xff]   ;;  %v3411_v63 = vadd.f32 %v14868_v53, %v3340_v42 }
 0x3c4   :  { %v11102_v39 = vpop.f32.mrb[79].mxu1  ;;  %11658 = vmatpush3.bf16.msra.mxu0 %v12208_v13  ;;  %11263 = vmatprep.subr.bf16.mxu1 %v15993_v48 }
 0x3c5   :  { %11659 = vmatprep.subr.bf16.mxu0 %v15993_v48  ;;  %v3475_v39 = vmax.f32 %v3411_v63, 0.0 }
 0x3c7   :  { %11264 = vmatpush3.bf16.msra.mxu1 %v12209_v36  ;;  %v3445_v36 = vadd.f32 %v14868_v53, %v3374_v18 }
 0x3c8   :  { %11660 = vmatpush3.bf16.msra.mxu0 %v12210_v58  ;;  %11265 = vmatprep.subr.bf16.mxu1 %v15993_v48  ;;  %v12220_v58 = vld [vmem:[%s15878_s9 + $0x658] sm:$0xff]  }
 0x3c9   :  { %11661 = vmatprep.subr.bf16.mxu0 %v15993_v48  ;;  %v3509_v59 = vmax.f32 %v3445_v36, 0.0 }
 0x3cb   :  { %11266 = vmatpush3.bf16.msra.mxu1 %v12211_v47  ;;  %v12221_v47 = vld [vmem:[%s15878_s9 + $0x220] sm:$0xff]  }
 0x3cc   :  { %11662 = vmatpush3.bf16.msra.mxu0 %v12212_v37  ;;  %11271 = vmatprep.subr.bf16.mxu1 %v15993_v48  ;;  %v4768_v37 = vpack.c.bf16 %v3475_v39, %v3475_v39 }
 0x3cd   :  { %11679 = vmatprep.subr.bf16.mxu0 %v15993_v48 }
 0x3ce   :  { %11268 = vmatmul.mubr.msk.bf16.vlgmr.msra.gmra.mrb[132].mxu1 %vm1822_vm2, %v4690_v41  ;;  %v3305_v41 = vadd.f32 %v14830_v3, %v14485_v54  ;;  %v12224_v54 = vld [vmem:[%s15878_s9 + $0x688] sm:$0xff]  }
 0x3cf   :  { %11272 = vmatpush3.bf16.msra.mxu1 %v12213_v38  ;;  %11664 = vmatmul.mubr.msk.bf16.vlgmr.msra.gmra.mrb[172].mxu0 %vm1822_vm2, %v7264_v6  ;;  %v7420_v38 = vpack.c.bf16 %v3509_v59, %v3509_v59 }
 0x3d0   :  { %11680 = vmatpush3.bf16.msra.mxu0 %v12214_v46  ;;  %11273 = vmatprep.subr.bf16.mxu1 %v15993_v48  ;;  %v3376_v46 = vmul.f32 %v14849_v7, %v3305_v41 }
 0x3d1   :  { %v3747_v20 = vpop.f32.mrb[80].mxu1  ;;  %11681 = vmatprep.subr.bf16.mxu0 %v15993_v48  ;;  %11279 = vmatprep.mubr.msk.bf16.mxu1 %vm12363_vm3, %v15993_v48 }
 0x3d2   :  { %v3753_v61 = vadd.f32 %v3747_v20, %v3671_v25  ;;  %v11113_v13 = vpop.f32.mrb[81].mxu1  ;;  %11687 = vmatprep.mubr.msk.bf16.mxu0 %vm12363_vm3, %v15993_v48  ;;  %v12218_v25 = vld [vmem:[%s15878_s9 + $0x650] sm:$0xff]   ;;  %v3447_v63 = vadd.f32 %v14868_v53, %v3376_v46 }
 0x3d3   :  { %v3750_v29 = vpop.f32.mrb[82].mxu1  ;;  %11274 = vmatpush3.bf16.msra.mxu1 %v12215_v4  ;;  %v12225_v20 = vld [vmem:[%s15878_s9 + $0x230] sm:$0xff]   ;;  %v3412_v13 = vadd.f32 %v14868_v53, %v3341_v16 }
 0x3d4   :  { %v11114_v49 = vpop.f32.mrb[83].mxu1  ;;  %11682 = vmatpush3.bf16.msra.mxu0 %v12216_v27  ;;  %11275 = vmatprep.subr.bf16.mxu1 %v15993_v48  ;;  %v3511_v39 = vmax.f32 %v3447_v63, 0.0 }
 0x3d5   :  { %11683 = vmatprep.subr.bf16.mxu0 %v15993_v48  ;;  %v3476_v36 = vmax.f32 %v3412_v13, 0.0 }
 0x3d7   :  { %11276 = vmatpush3.bf16.msra.mxu1 %v12217_v44  ;;  %v4846_v59 = vpack.c.bf16 %v3476_v36, %v3476_v36  ;;  %v12237_v36 = vld [vmem:[%s15878_s9 + $0x260] sm:$0xff]  }
 0x3d8   :  { %11684 = vmatpush3.bf16.msra.mxu0 %v12218_v25  ;;  %11277 = vmatprep.subr.bf16.mxu1 %v15993_v48  ;;  %v12227_v25 = vld [vmem:[%s15878_s9 + $0x238] sm:$0xff]  }
 0x3d9   :  { %11685 = vmatprep.subr.bf16.mxu0 %v15993_v48 }
 0x3db   :  { %11278 = vmatpush3.bf16.msra.mxu1 %v12219_v8  ;;  %v12228_v8 = vld [vmem:[%s15878_s9 + $0x698] sm:$0xff]  }
 0x3dc   :  { %11686 = vmatpush3.bf16.msra.mxu0 %v12220_v58  ;;  %11283 = vmatprep.subr.bf16.mxu1 %v15993_v48  ;;  %v12229_v58 = vld [vmem:[%s15878_s9 + $0x240] sm:$0xff]  }
 0x3dd   :  { %11703 = vmatprep.subr.bf16.mxu0 %v15993_v48 }
 0x3de   :  { %11280 = vmatmul.mubr.msk.bf16.vlgmr.msra.gmra.mrb[136].mxu1 %vm1822_vm2, %v4768_v37  ;;  %v7576_v37 = vpack.c.bf16 %v3511_v39, %v3511_v39 }
 0x3df   :  { %11284 = vmatpush3.bf16.msra.mxu1 %v12221_v47  ;;  %11688 = vmatmul.mubr.msk.bf16.vlgmr.msra.gmra.mrb[176].mxu0 %vm1822_vm2, %v7420_v38  ;;  %v3271_v47 = vadd.f32 %v14830_v3, %v14257_v0  ;;  %v12231_v0 = vld [vmem:[%s15878_s9 + $0x248] sm:$0xff]  }
 0x3e0   :  { %11704 = vmatpush3.bf16.msra.mxu0 %v12222_v24  ;;  %11285 = vmatprep.subr.bf16.mxu1 %v15993_v48  ;;  %v3307_v24 = vadd.f32 %v14830_v3, %v14502_v33  ;;  %v12232_v33 = vld [vmem:[%s15878_s9 + $0x6c8] sm:$0xff]  }
 0x3e1   :  { %v3825_v6 = vpop.f32.mrb[84].mxu1  ;;  %11705 = vmatprep.subr.bf16.mxu0 %v15993_v48  ;;  %11291 = vmatprep.mubr.msk.bf16.mxu1 %vm12363_vm3, %v15993_v48  ;;  %v3342_v38 = vmul.f32 %v14849_v7, %v3271_v47  ;;  %v3309_v47 = vadd.f32 %v14830_v3, %v14520_v14  ;;  %v12240_v14 = vld [vmem:[%s15878_s9 + $0x708] sm:$0xff]  }
 0x3e2   :  { %v3831_v1 = vadd.f32 %v3825_v6, %v3753_v61  ;;  %v11125_v4 = vpop.f32.mrb[85].mxu1  ;;  %v15003_v42 = vpop.f32.mrb[124].mxu0  ;;  %11711 = vmatprep.mubr.msk.bf16.mxu0 %vm12363_vm3, %v15993_v48  ;;  %v12226_v61 = vld [vmem:[%s15878_s9 + $0x690] sm:$0xff]   ;;  %v3378_v41 = vmul.f32 %v14849_v7, %v3307_v24 }
 0x3e3   :  { %v3828_v27 = vpop.f32.mrb[86].mxu1  ;;  %11286 = vmatpush3.bf16.msra.mxu1 %v12223_v51  ;;  %v11377_v18 = vpop.f32.mrb[125].mxu0 }
 0x3e4   :  { %v11126_v29 = vpop.f32.mrb[87].mxu1  ;;  %11706 = vmatpush3.bf16.msra.mxu0 %v12224_v54  ;;  %v5466_v44 = vpop.f32.mrb[126].mxu0  ;;  %11287 = vmatprep.subr.bf16.mxu1 %v15993_v48  ;;  %v12233_v27 = vld [vmem:[%s15878_s9 + $0x250] sm:$0xff]   ;;  %v3413_v18 = vadd.f32 %v14868_v53, %v3342_v38 }
 0x3e5   :  { %v11378_v49 = vpop.f32.mrb[127].mxu0  ;;  %11707 = vmatprep.subr.bf16.mxu0 %v15993_v48  ;;  %v3449_v29 = vadd.f32 %v14868_v53, %v3378_v41 }
 0x3e6   :  { %v3477_v63 = vmax.f32 %v3413_v18, 0.0  ;;  %v12236_v49 = vld [vmem:[%s15878_s9 + $0x6d8] sm:$0xff]  }
 0x3e7   :  { %11288 = vmatpush3.bf16.msra.mxu1 %v12225_v20 }
 0x3e8   :  { %11708 = vmatpush3.bf16.msra.mxu0 %v12226_v61  ;;  %11289 = vmatprep.subr.bf16.mxu1 %v15993_v48  ;;  %v12235_v61 = vld [vmem:[%s15878_s9 + $0x258] sm:$0xff]   ;;  %v4924_v39 = vpack.c.bf16 %v3477_v63, %v3477_v63 }
 0x3e9   :  { %11709 = vmatprep.subr.bf16.mxu0 %v15993_v48 }
 0x3eb   :  { %11290 = vmatpush3.bf16.msra.mxu1 %v12227_v25  ;;  %v3513_v25 = vmax.f32 %v3449_v29, 0.0  ;;  %v12244_v29 = vld [vmem:[%s15878_s9 + $0x718] sm:$0xff]  }
 0x3ec   :  { %11710 = vmatpush3.bf16.msra.mxu0 %v12228_v8  ;;  %11295 = vmatprep.subr.bf16.mxu1 %v15993_v48  ;;  %v3272_v8 = vadd.f32 %v14830_v3, %v14252_v21  ;;  %v12239_v21 = vld [vmem:[%s15878_s9 + $0x268] sm:$0xff]  }
 0x3ed   :  { %11727 = vmatprep.subr.bf16.mxu0 %v15993_v48 }
 0x3ee   :  { %11292 = vmatmul.mubr.msk.bf16.vlgmr.msra.gmra.mrb[140].mxu1 %vm1822_vm2, %v4846_v59  ;;  %v7732_v59 = vpack.c.bf16 %v3513_v25, %v3513_v25  ;;  %v12246_v25 = vld [vmem:[%s15878_s9 + $0x740] sm:$0xff]  }
 0x3ef   :  { %11296 = vmatpush3.bf16.msra.mxu1 %v12229_v58  ;;  %11712 = vmatmul.mubr.msk.bf16.vlgmr.msra.gmra.mrb[180].mxu0 %vm1822_vm2, %v7576_v37  ;;  %v12238_v58 = vld [vmem:[%s15878_s9 + $0x700] sm:$0xff]   ;;  %v3380_v37 = vmul.f32 %v14849_v7, %v3309_v47 }
 0x3f0   :  { %11728 = vmatpush3.bf16.msra.mxu0 %v12230_v43  ;;  %11297 = vmatprep.subr.bf16.mxu1 %v15993_v48  ;;  %v3343_v43 = vmul.f32 %v14849_v7, %v3272_v8  ;;  %v3311_v8 = vadd.f32 %v14830_v3, %v14533_v34  ;;  %v12248_v34 = vld [vmem:[%s15878_s9 + $0x748] sm:$0xff]  }
 0x3f1   :  { %v3903_v51 = vpop.f32.mrb[88].mxu1  ;;  %11729 = vmatprep.subr.bf16.mxu0 %v15993_v48  ;;  %11303 = vmatprep.mubr.msk.bf16.mxu1 %vm12363_vm3, %v15993_v48  ;;  %v3451_v18 = vadd.f32 %v14868_v53, %v3380_v37 }
 0x3f2   :  { %v3909_v16 = vadd.f32 %v3903_v51, %v3831_v1  ;;  %v11137_v54 = vpop.f32.mrb[89].mxu1  ;;  %v15051_v46 = vpop.f32.mrb[128].mxu0  ;;  %11735 = vmatprep.mubr.msk.bf16.mxu0 %vm12363_vm3, %v15993_v48  ;;  %v12234_v1 = vld [vmem:[%s15878_s9 + $0x6d0] sm:$0xff]  }
 0x3f3   :  { %v3906_v6 = vpop.f32.mrb[90].mxu1  ;;  %11298 = vmatpush3.bf16.msra.mxu1 %v12231_v0  ;;  %v11401_v4 = vpop.f32.mrb[129].mxu0  ;;  %v12241_v54 = vld [vmem:[%s15878_s9 + $0x270] sm:$0xff]  }
 0x3f4   :  { %v11138_v20 = vpop.f32.mrb[91].mxu1  ;;  %v5622_v13 = vpop.f32.mrb[130].mxu0  ;;  %11730 = vmatpush3.bf16.msra.mxu0 %v12232_v33  ;;  %11299 = vmatprep.subr.bf16.mxu1 %v15993_v48  ;;  %v3414_v6 = vadd.f32 %v14868_v53, %v3343_v43 }
 0x3f5   :  { %v11402_v44 = vpop.f32.mrb[131].mxu0  ;;  %11731 = vmatprep.subr.bf16.mxu0 %v15993_v48  ;;  %v12243_v13 = vld [vmem:[%s15878_s9 + $0x278] sm:$0xff]  }
 0x3f6   :  { %v3515_v44 = vmax.f32 %v3451_v18, 0.0 }
 0x3f7   :  { %11300 = vmatpush3.bf16.msra.mxu1 %v12233_v27 }
 0x3f8   :  { %11732 = vmatpush3.bf16.msra.mxu0 %v12234_v1  ;;  %11301 = vmatprep.subr.bf16.mxu1 %v15993_v48  ;;  %v3478_v1 = vmax.f32 %v3414_v6, 0.0 }
 0x3f9   :  { %11733 = vmatprep.subr.bf16.mxu0 %v15993_v48 }
 0x3fa   :  { %v5002_v63 = vpack.c.bf16 %v3478_v1, %v3478_v1 }
 0x3fb   :  { %11302 = vmatpush3.bf16.msra.mxu1 %v12235_v61  ;;  %v12245_v61 = vld [vmem:[%s15878_s9 + $0x280] sm:$0xff]  }
 0x3fc   :  { %11734 = vmatpush3.bf16.msra.mxu0 %v12236_v49  ;;  %11307 = vmatprep.subr.bf16.mxu1 %v15993_v48  ;;  %v3273_v49 = vadd.f32 %v14830_v3, %v14266_v10  ;;  %v12247_v10 = vld [vmem:[%s15878_s9 + $0x288] sm:$0xff]  }
 0x3fd   :  { %11751 = vmatprep.subr.bf16.mxu0 %v15993_v48 }
 0x3fe   :  { %11304 = vmatmul.mubr.msk.bf16.vlgmr.msra.gmra.mrb[144].mxu1 %vm1822_vm2, %v4924_v39  ;;  %v3344_v39 = vmul.f32 %v14849_v7, %v3273_v49 }
 0x3ff   :  { %11308 = vmatpush3.bf16.msra.mxu1 %v12237_v36  ;;  %11736 = vmatmul.mubr.msk.bf16.vlgmr.msra.gmra.mrb[184].mxu0 %vm1822_vm2, %v7732_v59  ;;  %v7888_v36 = vpack.c.bf16 %v3515_v44, %v3515_v44 }
 0x400   :  { %11752 = vmatpush3.bf16.msra.mxu0 %v12238_v58  ;;  %11309 = vmatprep.subr.bf16.mxu1 %v15993_v48  ;;  %v3382_v58 = vmul.f32 %v14849_v7, %v3311_v8 }
 0x401   :  { %v3981_v24 = vpop.f32.mrb[92].mxu1  ;;  %11753 = vmatprep.subr.bf16.mxu0 %v15993_v48  ;;  %11315 = vmatprep.mubr.msk.bf16.mxu1 %vm12363_vm3, %v15993_v48 }
 0x402   :  { %v3987_v0 = vadd.f32 %v3981_v24, %v3909_v16  ;;  %v11149_v38 = vpop.f32.mrb[93].mxu1  ;;  %v15099_v33 = vpop.f32.mrb[132].mxu0  ;;  %11759 = vmatprep.mubr.msk.bf16.mxu0 %vm12363_vm3, %v15993_v48  ;;  %v12242_v16 = vld [vmem:[%s15878_s9 + $0x710] sm:$0xff]  }
 0x403   :  { %v3984_v41 = vpop.f32.mrb[94].mxu1  ;;  %11310 = vmatpush3.bf16.msra.mxu1 %v12239_v21  ;;  %v11425_v51 = vpop.f32.mrb[133].mxu0  ;;  %v12249_v24 = vld [vmem:[%s15878_s9 + $0x290] sm:$0xff]   ;;  %v3415_v38 = vadd.f32 %v14868_v53, %v3344_v39 }
 0x404   :  { %v11150_v4 = vpop.f32.mrb[95].mxu1  ;;  %v5778_v27 = vpop.f32.mrb[134].mxu0  ;;  %11754 = vmatpush3.bf16.msra.mxu0 %v12240_v14  ;;  %11311 = vmatprep.subr.bf16.mxu1 %v15993_v48 }
 0x405   :  { %v11426_v20 = vpop.f32.mrb[135].mxu0  ;;  %11755 = vmatprep.subr.bf16.mxu0 %v15993_v48  ;;  %v12251_v4 = vld [vmem:[%s15878_s9 + $0x298] sm:$0xff]   ;;  %v3479_v27 = vmax.f32 %v3415_v38, 0.0 }
 0x406   :  { %v12253_v20 = vld [vmem:[%s15878_s9 + $0x2a0] sm:$0xff]   ;;  %v12259_v38 = vld [vmem:[%s15878_s9 + $0x2b8] sm:$0xff]  }
 0x407   :  { %11312 = vmatpush3.bf16.msra.mxu1 %v12241_v54  ;;  %v3453_v54 = vadd.f32 %v14868_v53, %v3382_v58  ;;  %v5080_v1 = vpack.c.bf16 %v3479_v27, %v3479_v27  ;;  %v12257_v58 = vld [vmem:[%s15878_s9 + $0x2b0] sm:$0xff]   ;;  %v12262_v27 = vld [vmem:[%s15878_s9 + $0x7c0] sm:$0xff]  }
 0x408   :  { %11756 = vmatpush3.bf16.msra.mxu0 %v12242_v16  ;;  %11313 = vmatprep.subr.bf16.mxu1 %v15993_v48  ;;  %v12252_v16 = vld [vmem:[%s15878_s9 + $0x758] sm:$0xff]  }
 0x409   :  { %11757 = vmatprep.subr.bf16.mxu0 %v15993_v48  ;;  %v3517_v18 = vmax.f32 %v3453_v54, 0.0  ;;  %v12261_v54 = vld [vmem:[%s15878_s9 + $0x2c0] sm:$0xff]  }
 0x40b   :  { %11314 = vmatpush3.bf16.msra.mxu1 %v12243_v13  ;;  %v3274_v13 = vadd.f32 %v14830_v3, %v14260_v32  ;;  %v8044_v44 = vpack.c.bf16 %v3517_v18, %v3517_v18  ;;  %v12255_v32 = vld [vmem:[%s15878_s9 + $0x2a8] sm:$0xff]   ;;  %v3315_v18 = vadd.f32 %v14830_v3, %v14564_v35 }
 0x40c   :  { %11758 = vmatpush3.bf16.msra.mxu0 %v12244_v29  ;;  %11319 = vmatprep.subr.bf16.mxu1 %v15993_v48  ;;  %v12254_v29 = vld [vmem:[%s15878_s9 + $0x780] sm:$0xff]   ;;  %v12264_v35 = vld [vmem:[%s15878_s9 + $0x7c8] sm:$0xff]  }
 0x40d   :  { %11775 = vmatprep.subr.bf16.mxu0 %v15993_v48 }
 0x40e   :  { %11316 = vmatmul.mubr.msk.bf16.vlgmr.msra.gmra.mrb[148].mxu1 %vm1822_vm2, %v5002_v63  ;;  %v3345_v63 = vmul.f32 %v14849_v7, %v3274_v13  ;;  %v3386_v13 = vmul.f32 %v14849_v7, %v3315_v18 }
 0x40f   :  { %11320 = vmatpush3.bf16.msra.mxu1 %v12245_v61  ;;  %11760 = vmatmul.mubr.msk.bf16.vlgmr.msra.gmra.mrb[188].mxu0 %vm1822_vm2, %v7888_v36  ;;  %v3313_v61 = vadd.f32 %v14830_v3, %v14547_v17  ;;  %v12256_v17 = vld [vmem:[%s15878_s9 + $0x788] sm:$0xff]  }
 0x410   :  { %11776 = vmatpush3.bf16.msra.mxu0 %v12246_v25  ;;  %11321 = vmatprep.subr.bf16.mxu1 %v15993_v48 }
 0x411   :  { %v4059_v59 = vpop.f32.mrb[96].mxu1  ;;  %11777 = vmatprep.subr.bf16.mxu0 %v15993_v48  ;;  %11327 = vmatprep.mubr.msk.bf16.mxu1 %vm12363_vm3, %v15993_v48  ;;  %v3384_v49 = vmul.f32 %v14849_v7, %v3313_v61 }
 0x412   :  { %v4065_v47 = vadd.f32 %v4059_v59, %v3987_v0  ;;  %v11161_v21 = vpop.f32.mrb[97].mxu1  ;;  %v15147_v43 = vpop.f32.mrb[136].mxu0  ;;  %11783 = vmatprep.mubr.msk.bf16.mxu0 %vm12363_vm3, %v15993_v48  ;;  %v12250_v0 = vld [vmem:[%s15878_s9 + $0x750] sm:$0xff]   ;;  %v3416_v59 = vadd.f32 %v14868_v53, %v3345_v63 }
 0x413   :  { %v4062_v14 = vpop.f32.mrb[98].mxu1  ;;  %11322 = vmatpush3.bf16.msra.mxu1 %v12247_v10  ;;  %v11449_v37 = vpop.f32.mrb[137].mxu0 }
 0x414   :  { %v11162_v41 = vpop.f32.mrb[99].mxu1  ;;  %v5934_v51 = vpop.f32.mrb[138].mxu0  ;;  %11778 = vmatpush3.bf16.msra.mxu0 %v12248_v34  ;;  %11323 = vmatprep.subr.bf16.mxu1 %v15993_v48  ;;  %v3455_v37 = vadd.f32 %v14868_v53, %v3384_v49 }
 0x415   :  { %v11450_v6 = vpop.f32.mrb[139].mxu0  ;;  %11779 = vmatprep.subr.bf16.mxu0 %v15993_v48  ;;  %v3480_v41 = vmax.f32 %v3416_v59, 0.0  ;;  %v12260_v51 = vld [vmem:[%s15878_s9 + $0x798] sm:$0xff]  }
 0x417   :  { %11324 = vmatpush3.bf16.msra.mxu1 %v12249_v24  ;;  %v5158_v6 = vpack.c.bf16 %v3480_v41, %v3480_v41  ;;  %v12270_v41 = vld [vmem:[%s15878_s9 + $0x2e8] sm:$0xff]  }
 0x418   :  { %11780 = vmatpush3.bf16.msra.mxu0 %v12250_v0  ;;  %11325 = vmatprep.subr.bf16.mxu1 %v15993_v48  ;;  %v3519_v0 = vmax.f32 %v3455_v37, 0.0  ;;  %v3276_v37 = vadd.f32 %v14830_v3, %v14270_v11 }
 0x419   :  { %11781 = vmatprep.subr.bf16.mxu0 %v15993_v48 }
 0x41b   :  { %11326 = vmatpush3.bf16.msra.mxu1 %v12251_v4  ;;  %v3275_v4 = vadd.f32 %v14830_v3, %v14278_v45  ;;  %v12263_v45 = vld [vmem:[%s15878_s9 + $0x2c8] sm:$0xff]  }
 0x41c   :  { %11782 = vmatpush3.bf16.msra.mxu0 %v12252_v16  ;;  %11331 = vmatprep.subr.bf16.mxu1 %v15993_v48  ;;  %v8200_v16 = vpack.c.bf16 %v3519_v0, %v3519_v0 }
 0x41d   :  { %11799 = vmatprep.subr.bf16.mxu0 %v15993_v48 }
 0x41e   :  { %11328 = vmatmul.mubr.msk.bf16.vlgmr.msra.gmra.mrb[152].mxu1 %vm1822_vm2, %v5080_v1 }
 0x41f   :  { %11332 = vmatpush3.bf16.msra.mxu1 %v12253_v20  ;;  %11784 = vmatmul.mubr.msk.bf16.vlgmr.msra.gmra.mrb[192].mxu0 %vm1822_vm2, %v8044_v44  ;;  %v3346_v20 = vmul.f32 %v14849_v7, %v3275_v4 }
 0x420   :  { %11800 = vmatpush3.bf16.msra.mxu0 %v12254_v29  ;;  %11333 = vmatprep.subr.bf16.mxu1 %v15993_v48 }
 0x421   :  { %v4137_v25 = vpop.f32.mrb[100].mxu1  ;;  %11801 = vmatprep.subr.bf16.mxu0 %v15993_v48  ;;  %11339 = vmatprep.mubr.msk.bf16.mxu1 %vm12363_vm3, %v15993_v48  ;;  %v3417_v49 = vadd.f32 %v14868_v53, %v3346_v20 }
 0x422   :  { %v4143_v36 = vadd.f32 %v4137_v25, %v4065_v47  ;;  %v11173_v8 = vpop.f32.mrb[101].mxu1  ;;  %v15195_v10 = vpop.f32.mrb[140].mxu0  ;;  %11807 = vmatprep.mubr.msk.bf16.mxu0 %vm12363_vm3, %v15993_v48  ;;  %v12258_v47 = vld [vmem:[%s15878_s9 + $0x790] sm:$0xff]  }
 0x423   :  { %v4140_v39 = vpop.f32.mrb[102].mxu1  ;;  %11334 = vmatpush3.bf16.msra.mxu1 %v12255_v32  ;;  %v11473_v34 = vpop.f32.mrb[141].mxu0  ;;  %v3481_v59 = vmax.f32 %v3417_v49, 0.0 }
 0x424   :  { %v11174_v21 = vpop.f32.mrb[103].mxu1  ;;  %v6090_v14 = vpop.f32.mrb[142].mxu0  ;;  %11802 = vmatpush3.bf16.msra.mxu0 %v12256_v17  ;;  %11335 = vmatprep.subr.bf16.mxu1 %v15993_v48  ;;  %v12265_v17 = vld [vmem:[%s15878_s9 + $0x2d0] sm:$0xff]   ;;  %v3457_v39 = vadd.f32 %v14868_v53, %v3386_v13  ;;  %v12272_v13 = vld [vmem:[%s15878_s9 + $0x2f8] sm:$0xff]  }
 0x425   :  { %v11474_v24 = vpop.f32.mrb[143].mxu0  ;;  %11803 = vmatprep.subr.bf16.mxu0 %v15993_v48  ;;  %v12268_v21 = vld [vmem:[%s15878_s9 + $0x7d8] sm:$0xff]  }
 0x426   :  { %v3521_v14 = vmax.f32 %v3457_v39, 0.0  ;;  %v5236_v24 = vpack.c.bf16 %v3481_v59, %v3481_v59 }
 0x427   :  { %11336 = vmatpush3.bf16.msra.mxu1 %v12257_v58  ;;  %v12267_v58 = vld [vmem:[%s15878_s9 + $0x2d8] sm:$0xff]  }
 0x428   :  { %11804 = vmatpush3.bf16.msra.mxu0 %v12258_v47  ;;  %11337 = vmatprep.subr.bf16.mxu1 %v15993_v48  ;;  %v12269_v47 = vld [vmem:[%s15878_s9 + $0x2e0] sm:$0xff]  }
 0x429   :  { %11805 = vmatprep.subr.bf16.mxu0 %v15993_v48 }
 0x42b   :  { %11338 = vmatpush3.bf16.msra.mxu1 %v12259_v38  ;;  %v8356_v38 = vpack.c.bf16 %v3521_v14, %v3521_v14 }
 0x42c   :  { %11806 = vmatpush3.bf16.msra.mxu0 %v12260_v51  ;;  %11343 = vmatprep.subr.bf16.mxu1 %v15993_v48  ;;  %v3347_v51 = vmul.f32 %v14849_v7, %v3276_v37 }
 0x42d   :  { %11823 = vmatprep.subr.bf16.mxu0 %v15993_v48 }
 0x42e   :  { %11340 = vmatmul.mubr.msk.bf16.vlgmr.msra.gmra.mrb[156].mxu1 %vm1822_vm2, %v5158_v6  ;;  %v3418_v18 = vadd.f32 %v14868_v53, %v3347_v51  ;;  %v12278_v51 = vld [vmem:[%s15878_s9 + $0x368] sm:$0xff]  }
 0x42f   :  { %11344 = vmatpush3.bf16.msra.mxu1 %v12261_v54  ;;  %11808 = vmatmul.mubr.msk.bf16.vlgmr.msra.gmra.mrb[196].mxu0 %vm1822_vm2, %v8200_v16  ;;  %v12271_v16 = vld [vmem:[%s15878_s9 + $0x2f0] sm:$0xff]  }
 0x430   :  { %11824 = vmatpush3.bf16.msra.mxu0 %v12262_v27  ;;  %11345 = vmatprep.subr.bf16.mxu1 %v15993_v48 }
 0x431   :  { %v4215_v1 = vpop.f32.mrb[104].mxu1  ;;  %11825 = vmatprep.subr.bf16.mxu0 %v15993_v48  ;;  %11351 = vmatprep.mubr.msk.bf16.mxu1 %vm12363_vm3, %v15993_v48 }
 0x432   :  { %v4221_v29 = vadd.f32 %v4215_v1, %v4143_v36  ;;  %v11185_v44 = vpop.f32.mrb[105].mxu1  ;;  %v15243_v61 = vpop.f32.mrb[144].mxu0  ;;  %11831 = vmatprep.mubr.msk.bf16.mxu0 %vm12363_vm3, %v15993_v48  ;;  %v12266_v36 = vld [vmem:[%s15878_s9 + $0x7d0] sm:$0xff]   ;;  %v3482_v1 = vmax.f32 %v3418_v18, 0.0 }
 0x433   :  { %v4218_v32 = vpop.f32.mrb[106].mxu1  ;;  %11346 = vmatpush3.bf16.msra.mxu1 %v12263_v45  ;;  %v11497_v63 = vpop.f32.mrb[145].mxu0  ;;  %v12279_v18 = vld [vmem:[%s15878_s9 + $0x370] sm:$0xff]  }
 0x434   :  { %v11186_v25 = vpop.f32.mrb[107].mxu1  ;;  %v6246_v8 = vpop.f32.mrb[146].mxu0  ;;  %11826 = vmatpush3.bf16.msra.mxu0 %v12264_v35  ;;  %11347 = vmatprep.subr.bf16.mxu1 %v15993_v48  ;;  %v5314_v44 = vpack.c.bf16 %v3482_v1, %v3482_v1  ;;  %v3278_v32 = vadd.f32 %v14830_v3, %v14281_v19  ;;  %v12274_v63 = vld [vmem:[%s15878_s9 + $0x328] sm:$0xff]   ;;  %v12280_v1 = vld [vmem:[%s15878_s9 + $0x378] sm:$0xff]  }
 0x435   :  { %v11498_v34 = vpop.f32.mrb[147].mxu0  ;;  %11827 = vmatprep.subr.bf16.mxu0 %v15993_v48 }
 0x436   :  { %v12275_v34 = vld [vmem:[%s15878_s9 + $0x330] sm:$0xff]  }
 0x437   :  { %11348 = vmatpush3.bf16.msra.mxu1 %v12265_v17  ;;  %v3349_v17 = vmul.f32 %v14849_v7, %v3278_v32 }
 0x438   :  { %11828 = vmatpush3.bf16.msra.mxu0 %v12266_v36  ;;  %11349 = vmatprep.subr.bf16.mxu1 %v15993_v48 }
 0x439   :  { %11829 = vmatprep.subr.bf16.mxu0 %v15993_v48 }
 0x43b   :  { %11350 = vmatpush3.bf16.msra.mxu1 %v12267_v58  ;;  %v3420_v58 = vadd.f32 %v14868_v53, %v3349_v17  ;;  %v12282_v17 = vld [vmem:[%s15878_s9 + $0x3a8] sm:$0xff]  }
 0x43c   :  { %11830 = vmatpush3.bf16.msra.mxu0 %v12268_v21  ;;  %11355 = vmatprep.subr.bf16.mxu1 %v15993_v48 }
 0x43d   :  { %v3484_v37 = vmax.f32 %v3420_v58, 0.0 }
 0x43e   :  { %11352 = vmatmul.mubr.msk.bf16.vlgmr.msra.gmra.mrb[160].mxu1 %vm1822_vm2, %v5236_v24  ;;  %v12277_v24 = vld [vmem:[%s15878_s9 + $0x360] sm:$0xff]  }
 0x43f   :  { %11356 = vmatpush3.bf16.msra.mxu1 %v12269_v47  ;;  %11832 = vmatmul.mubr.msk.bf16.vlgmr.msra.gmra.mrb[200].mxu0 %vm1822_vm2, %v8356_v38  ;;  %v12276_v47 = vld [vmem:[%s15878_s9 + $0x338] sm:$0xff]   ;;  %v5470_v38 = vpack.c.bf16 %v3484_v37, %v3484_v37  ;;  %v12285_v37 = vld [vmem:[%s15878_s9 + $0x3e0] sm:$0xff]  }
 0x440   :  { %11357 = vmatprep.subr.bf16.mxu1 %v15993_v48  ;;  %11363 = vmatprep.mubr.msk.bf16.mxu1 %vm12363_vm3, %v15993_v48 }
 0x441   :  { %v4293_v11 = vpop.f32.mrb[108].mxu1  ;;  %11879 = vmatprep.mubr.msk.f32.mxu0 %vm12363_vm3, %v15993_v48 }
 0x442   :  { %v4299_v0 = vadd.f32 %v4293_v11, %v4221_v29  ;;  %v11197_v54 = vpop.f32.mrb[109].mxu1  ;;  %v15282_v6 = vpop.f32.mrb[148].mxu0  ;;  %v12273_v29 = vld [vmem:[%s15878_s9 + $0x320] sm:$0xff]  }
 0x443   :  { %v4296_v4 = vpop.f32.mrb[110].mxu1  ;;  %11358 = vmatpush3.bf16.msra.mxu1 %v12270_v41  ;;  %v11521_v27 = vpop.f32.mrb[149].mxu0  ;;  %v3280_v41 = vadd.f32 %v14830_v3, %v14290_v62 }
 0x444   :  { %v11198_v45 = vpop.f32.mrb[111].mxu1  ;;  %v6402_v20 = vpop.f32.mrb[150].mxu0  ;;  %11359 = vmatprep.subr.bf16.mxu1 %v15993_v48 }
 0x445   :  { %v11522_v35 = vpop.f32.mrb[151].mxu0  ;;  %v3351_v11 = vmul.f32 %v14849_v7, %v3280_v41  ;;  %v12286_v41 = vld [vmem:[%s15878_s9 + $0x3e8] sm:$0xff]  }
 0x447   :  { %11360 = vmatpush3.bf16.msra.mxu1 %v12271_v16  ;;  %v3422_v45 = vadd.f32 %v14868_v53, %v3351_v11 }
 0x448   :  { %11361 = vmatprep.subr.bf16.mxu1 %v15993_v48 }
 0x44b   :  { %11362 = vmatpush3.bf16.msra.mxu1 %v12272_v13 }
 0x44c   :  { %11379 = vmatprep.subr.bf16.mxu1 %v15993_v48 }
 0x44e   :  { %11364 = vmatmul.mubr.msk.bf16.vlgmr.msra.gmra.mrb[164].mxu1 %vm1822_vm2, %v5314_v44  ;;  %v12281_v44 = vld [vmem:[%s15878_s9 + $0x3a0] sm:$0xff]  }
 0x44f   :  { %11380 = vmatpush3.bf16.msra.mxu1 %v12273_v29  ;;  %11387 = vmatprep.mubr.msk.bf16.mxu1 %vm12363_vm3, %v15993_v48  ;;  %v3486_v29 = vmax.f32 %v3422_v45, 0.0  ;;  %v15400_v45 = vld [vmem:[%s15881_s8] ss:$0 sm:$0xff] }
 0x450   :  { %11381 = vmatprep.subr.bf16.mxu1 %v15993_v48 }
 0x451   :  { %v4371_v49 = vpop.f32.mrb[112].mxu1  ;;  %v5626_v32 = vpack.c.bf16 %v3486_v29, %v3486_v29  ;;  %v12288_v29 = vld [vmem:[%s15878_s9 + $0x3f8] sm:$0xff]  }
 0x452   :  { %v4377_v25 = vadd.f32 %v4371_v49, %v4299_v0  ;;  %v11209_v8 = vpop.f32.mrb[113].mxu1  ;;  %v15307_v19 = vpop.f32.mrb[152].mxu0 }
 0x453   :  { %v4374_v36 = vpop.f32.mrb[114].mxu1  ;;  %11382 = vmatpush3.bf16.msra.mxu1 %v12274_v63  ;;  %v11545_v39 = vpop.f32.mrb[153].mxu0  ;;  %v3282_v63 = vadd.f32 %v14830_v3, %v14297_v12 }
 0x454   :  { %v11210_v59 = vpop.f32.mrb[115].mxu1  ;;  %v6558_v21 = vpop.f32.mrb[154].mxu0  ;;  %11383 = vmatprep.subr.bf16.mxu1 %v15993_v48 }
 0x455   :  { %v11546_v14 = vpop.f32.mrb[155].mxu0  ;;  %v3353_v49 = vmul.f32 %v14849_v7, %v3282_v63 }
 0x456   :  { %v12284_v14 = vld [vmem:[%s15878_s9 + $0x3b8] sm:$0xff]  }
 0x457   :  { %11384 = vmatpush3.bf16.msra.mxu1 %v12275_v34  ;;  %v12283_v34 = vld [vmem:[%s15878_s9 + $0x3b0] sm:$0xff]   ;;  %v3424_v58 = vadd.f32 %v14868_v53, %v3353_v49  ;;  %v15374_v53 = vld [vmem:[%s15879_s6] ss:$0 sm:$0xff]  ;;  %v12290_v49 = vld [vmem:[%s15878_s9 + $0x428] sm:$0xff]  }
 0x458   :  { %11385 = vmatprep.subr.bf16.mxu1 %v15993_v48 }
 0x45b   :  { %11386 = vmatpush3.bf16.msra.mxu1 %v12276_v47  ;;  %v3488_v47 = vmax.f32 %v3424_v58, 0.0  ;;  %v12291_v58 = vld [vmem:[%s15878_s9 + $0x430] sm:$0xff]  }
 0x45c   :  { %11403 = vmatprep.subr.bf16.mxu1 %v15993_v48 }
 0x45e   :  { %11388 = vmatmul.mubr.msk.bf16.vlgmr.msra.gmra.mrb[168].mxu1 %vm1822_vm2, %v5470_v38  ;;  %v3284_v38 = vadd.f32 %v15374_v53, %v14310_v57 }
 0x45f   :  { %11404 = vmatpush3.bf16.msra.mxu1 %v12277_v24  ;;  %11411 = vmatprep.mubr.msk.bf16.mxu1 %vm12363_vm3, %v15993_v48  ;;  %v5782_v24 = vpack.c.bf16 %v3488_v47, %v3488_v47  ;;  %v12292_v47 = vld [vmem:[%s15878_s9 + $0x438] sm:$0xff]  }
 0x460   :  { %11405 = vmatprep.subr.bf16.mxu1 %v15993_v48 }
 0x461   :  { %v4449_v0 = vpop.f32.mrb[116].mxu1 }
 0x462   :  { %v4455_v54 = vadd.f32 %v4449_v0, %v4377_v25  ;;  %v11221_v4 = vpop.f32.mrb[117].mxu1  ;;  %v15332_v62 = vpop.f32.mrb[156].mxu0 }
 0x463   :  { %v4452_v27 = vpop.f32.mrb[118].mxu1  ;;  %11406 = vmatpush3.bf16.msra.mxu1 %v12278_v51  ;;  %v11569_v16 = vpop.f32.mrb[157].mxu0  ;;  %v15388_v51 = vld [vmem:[%s15880_s7] ss:$0 sm:$0xff] }
 0x464   :  { %v11222_v20 = vpop.f32.mrb[119].mxu1  ;;  %v6714_v35 = vpop.f32.mrb[158].mxu0  ;;  %11407 = vmatprep.subr.bf16.mxu1 %v15993_v48  ;;  %v3355_v11 = vmul.f32 %v15388_v51, %v3284_v38 }
 0x465   :  { %v11570_v13 = vpop.f32.mrb[159].mxu0 }
 0x466   :  { %v3426_v20 = vadd.f32 %v15400_v45, %v3355_v11  ;;  %v12294_v11 = vld [vmem:[%s15878_s9 + $0x468] sm:$0xff]  }
 0x467   :  { %11408 = vmatpush3.bf16.msra.mxu1 %v12279_v18  ;;  %v12287_v18 = vld [vmem:[%s15878_s9 + $0x3f0] sm:$0xff]  }
 0x468   :  { %11409 = vmatprep.subr.bf16.mxu1 %v15993_v48 }
 0x46b   :  { %11410 = vmatpush3.bf16.msra.mxu1 %v12280_v1 }
 0x46c   :  { %11427 = vmatprep.subr.bf16.mxu1 %v15993_v48 }
 0x46e   :  { %11412 = vmatmul.mubr.msk.bf16.vlgmr.msra.gmra.mrb[172].mxu1 %vm1822_vm2, %v5626_v32  ;;  %v12289_v32 = vld [vmem:[%s15878_s9 + $0x420] sm:$0xff]  }
 0x46f   :  { %11428 = vmatpush3.bf16.msra.mxu1 %v12281_v44  ;;  %11435 = vmatprep.mubr.msk.bf16.mxu1 %vm12363_vm3, %v15993_v48  ;;  %v3490_v44 = vmax.f32 %v3426_v20, 0.0  ;;  %v12295_v20 = vld [vmem:[%s15878_s9 + $0x470] sm:$0xff]  }
 0x470   :  { %11429 = vmatprep.subr.bf16.mxu1 %v15993_v48 }
 0x471   :  { %v4527_v25 = vpop.f32.mrb[120].mxu1  ;;  %v5938_v63 = vpack.c.bf16 %v3490_v44, %v3490_v44  ;;  %v12296_v44 = vld [vmem:[%s15878_s9 + $0x478] sm:$0xff]  }
 0x472   :  { %v4533_v8 = vadd.f32 %v4527_v25, %v4455_v54  ;;  %v11233_v36 = vpop.f32.mrb[121].mxu1  ;;  %v15357_v12 = vpop.f32.mrb[160].mxu0 }
 0x473   :  { %v4530_v3 = vpop.f32.mrb[122].mxu1  ;;  %11430 = vmatpush3.bf16.msra.mxu1 %v12282_v17  ;;  %v11593_v39 = vpop.f32.mrb[161].mxu0  ;;  %v3286_v17 = vadd.f32 %v15374_v53, %v14329_v52 }
 0x474   :  { %v11234_v59 = vpop.f32.mrb[123].mxu1  ;;  %v6870_v21 = vpop.f32.mrb[162].mxu0  ;;  %11431 = vmatprep.subr.bf16.mxu1 %v15993_v48 }
 0x475   :  { %v11594_v7 = vpop.f32.mrb[163].mxu0  ;;  %v3357_v25 = vmul.f32 %v15388_v51, %v3286_v17 }
 0x477   :  { %11432 = vmatpush3.bf16.msra.mxu1 %v12283_v34  ;;  %v3428_v59 = vadd.f32 %v15400_v45, %v3357_v25  ;;  %v12298_v25 = vld [vmem:[%s15878_s9 + $0x4a8] sm:$0xff]  }
 0x478   :  { %11433 = vmatprep.subr.bf16.mxu1 %v15993_v48 }
 0x47b   :  { %11434 = vmatpush3.bf16.msra.mxu1 %v12284_v14 }
 0x47c   :  { %11451 = vmatprep.subr.bf16.mxu1 %v15993_v48 }
 0x47e   :  { %11436 = vmatmul.mubr.msk.bf16.vlgmr.msra.gmra.mrb[176].mxu1 %vm1822_vm2, %v5782_v24  ;;  %v12293_v24 = vld [vmem:[%s15878_s9 + $0x460] sm:$0xff]  }
 0x47f   :  { %11452 = vmatpush3.bf16.msra.mxu1 %v12285_v37  ;;  %11459 = vmatprep.mubr.msk.bf16.mxu1 %vm12363_vm3, %v15993_v48  ;;  %v3492_v37 = vmax.f32 %v3428_v59, 0.0  ;;  %v12299_v59 = vld [vmem:[%s15878_s9 + $0x4b0] sm:$0xff]  }
 0x480   :  { %11453 = vmatprep.subr.bf16.mxu1 %v15993_v48 }
 0x481   :  { %v4605_v57 = vpop.f32.mrb[124].mxu1  ;;  %v6094_v38 = vpack.c.bf16 %v3492_v37, %v3492_v37  ;;  %v12300_v37 = vld [vmem:[%s15878_s9 + $0x4b8] sm:$0xff]  }
 0x482   :  { %v4611_v0 = vadd.f32 %v4605_v57, %v4533_v8  ;;  %v11245_v54 = vpop.f32.mrb[125].mxu1  ;;  %v15392_v4 = vpop.f32.mrb[164].mxu0 }
 0x483   :  { %v4608_v27 = vpop.f32.mrb[126].mxu1  ;;  %11454 = vmatpush3.bf16.msra.mxu1 %v12286_v41  ;;  %v11617_v16 = vpop.f32.mrb[165].mxu0  ;;  %v3288_v41 = vadd.f32 %v15374_v53, %v14343_v40 }
 0x484   :  { %v11246_v35 = vpop.f32.mrb[127].mxu1  ;;  %v7026_v13 = vpop.f32.mrb[166].mxu0  ;;  %11455 = vmatprep.subr.bf16.mxu1 %v15993_v48 }
 0x485   :  { %v11618_v1 = vpop.f32.mrb[167].mxu0  ;;  %v3359_v57 = vmul.f32 %v15388_v51, %v3288_v41 }
 0x487   :  { %11456 = vmatpush3.bf16.msra.mxu1 %v12287_v18  ;;  %v3430_v35 = vadd.f32 %v15400_v45, %v3359_v57  ;;  %v12302_v57 = vld [vmem:[%s15878_s9 + $0x4e8] sm:$0xff]  }
 0x488   :  { %11457 = vmatprep.subr.bf16.mxu1 %v15993_v48 }
 0x48b   :  { %11458 = vmatpush3.bf16.msra.mxu1 %v12288_v29 }
 0x48c   :  { %11475 = vmatprep.subr.bf16.mxu1 %v15993_v48 }
 0x48e   :  { %11460 = vmatmul.mubr.msk.bf16.vlgmr.msra.gmra.mrb[180].mxu1 %vm1822_vm2, %v5938_v63  ;;  %v12297_v63 = vld [vmem:[%s15878_s9 + $0x4a0] sm:$0xff]  }
 0x48f   :  { %11476 = vmatpush3.bf16.msra.mxu1 %v12289_v32  ;;  %11483 = vmatprep.mubr.msk.bf16.mxu1 %vm12363_vm3, %v15993_v48  ;;  %v3494_v32 = vmax.f32 %v3430_v35, 0.0  ;;  %v12303_v35 = vld [vmem:[%s15878_s9 + $0x4f0] sm:$0xff]  }
 0x490   :  { %11477 = vmatprep.subr.bf16.mxu1 %v15993_v48 }
 0x491   :  { %v4683_v8 = vpop.f32.mrb[128].mxu1  ;;  %v6250_v17 = vpack.c.bf16 %v3494_v32, %v3494_v32  ;;  %v12304_v32 = vld [vmem:[%s15878_s9 + $0x4f8] sm:$0xff]  }
 0x492   :  { %v4689_v36 = vadd.f32 %v4683_v8, %v4611_v0  ;;  %v11257_v3 = vpop.f32.mrb[129].mxu1  ;;  %v15422_v52 = vpop.f32.mrb[168].mxu0 }
 0x493   :  { %v4686_v39 = vpop.f32.mrb[130].mxu1  ;;  %11478 = vmatpush3.bf16.msra.mxu1 %v12290_v49  ;;  %v11641_v34 = vpop.f32.mrb[169].mxu0  ;;  %v3290_v49 = vadd.f32 %v15374_v53, %v14355_v23 }
 0x494   :  { %v11258_v21 = vpop.f32.mrb[131].mxu1  ;;  %v7182_v7 = vpop.f32.mrb[170].mxu0  ;;  %11479 = vmatprep.subr.bf16.mxu1 %v15993_v48 }
 0x495   :  { %v11642_v14 = vpop.f32.mrb[171].mxu0  ;;  %v3361_v8 = vmul.f32 %v15388_v51, %v3290_v49 }
 0x497   :  { %11480 = vmatpush3.bf16.msra.mxu1 %v12291_v58  ;;  %v3432_v21 = vadd.f32 %v15400_v45, %v3361_v8  ;;  %v12306_v8 = vld [vmem:[%s15878_s9 + $0x528] sm:$0xff]  }
 0x498   :  { %11481 = vmatprep.subr.bf16.mxu1 %v15993_v48 }
 0x49b   :  { %11482 = vmatpush3.bf16.msra.mxu1 %v12292_v47 }
 0x49c   :  { %11499 = vmatprep.subr.bf16.mxu1 %v15993_v48 }
 0x49e   :  { %11484 = vmatmul.mubr.msk.bf16.vlgmr.msra.gmra.mrb[184].mxu1 %vm1822_vm2, %v6094_v38  ;;  %v12301_v38 = vld [vmem:[%s15878_s9 + $0x4e0] sm:$0xff]  }
 0x49f   :  { %11500 = vmatpush3.bf16.msra.mxu1 %v12293_v24  ;;  %11507 = vmatprep.mubr.msk.bf16.mxu1 %vm12363_vm3, %v15993_v48  ;;  %v3496_v24 = vmax.f32 %v3432_v21, 0.0  ;;  %v12307_v21 = vld [vmem:[%s15878_s9 + $0x530] sm:$0xff]  }
 0x4a0   :  { %11501 = vmatprep.subr.bf16.mxu1 %v15993_v48 }
 0x4a1   :  { %v4761_v0 = vpop.f32.mrb[132].mxu1  ;;  %v6406_v41 = vpack.c.bf16 %v3496_v24, %v3496_v24  ;;  %v12308_v24 = vld [vmem:[%s15878_s9 + $0x538] sm:$0xff]  }
 0x4a2   :  { %v4767_v54 = vadd.f32 %v4761_v0, %v4689_v36  ;;  %v11269_v27 = vpop.f32.mrb[133].mxu1  ;;  %v15447_v40 = vpop.f32.mrb[172].mxu0 }
 0x4a3   :  { %v4764_v16 = vpop.f32.mrb[134].mxu1  ;;  %11502 = vmatpush3.bf16.msra.mxu1 %v12294_v11  ;;  %v11665_v18 = vpop.f32.mrb[173].mxu0  ;;  %v3292_v11 = vadd.f32 %v15374_v53, %v14372_v30 }
 0x4a4   :  { %v11270_v13 = vpop.f32.mrb[135].mxu1  ;;  %v7338_v1 = vpop.f32.mrb[174].mxu0  ;;  %11503 = vmatprep.subr.bf16.mxu1 %v15993_v48 }
 0x4a5   :  { %v11666_v29 = vpop.f32.mrb[175].mxu0  ;;  %v3363_v0 = vmul.f32 %v15388_v51, %v3292_v11 }
 0x4a7   :  { %11504 = vmatpush3.bf16.msra.mxu1 %v12295_v20  ;;  %v3434_v13 = vadd.f32 %v15400_v45, %v3363_v0  ;;  %v12310_v0 = vld [vmem:[%s15878_s9 + $0x568] sm:$0xff]  }
 0x4a8   :  { %11505 = vmatprep.subr.bf16.mxu1 %v15993_v48 }
 0x4ab   :  { %11506 = vmatpush3.bf16.msra.mxu1 %v12296_v44 }
 0x4ac   :  { %11523 = vmatprep.subr.bf16.mxu1 %v15993_v48 }
 0x4ae   :  { %11508 = vmatmul.mubr.msk.bf16.vlgmr.msra.gmra.mrb[188].mxu1 %vm1822_vm2, %v6250_v17  ;;  %v12305_v17 = vld [vmem:[%s15878_s9 + $0x520] sm:$0xff]  }
 0x4af   :  { %11524 = vmatpush3.bf16.msra.mxu1 %v12297_v63  ;;  %11531 = vmatprep.mubr.msk.bf16.mxu1 %vm12363_vm3, %v15993_v48  ;;  %v3498_v63 = vmax.f32 %v3434_v13, 0.0  ;;  %v12311_v13 = vld [vmem:[%s15878_s9 + $0x570] sm:$0xff]  }
 0x4b0   :  { %11525 = vmatprep.subr.bf16.mxu1 %v15993_v48 }
 0x4b1   :  { %v4839_v36 = vpop.f32.mrb[136].mxu1  ;;  %v6562_v49 = vpack.c.bf16 %v3498_v63, %v3498_v63  ;;  %v12312_v63 = vld [vmem:[%s15878_s9 + $0x578] sm:$0xff]  }
 0x4b2   :  { %v4845_v3 = vadd.f32 %v4839_v36, %v4767_v54  ;;  %v11281_v39 = vpop.f32.mrb[137].mxu1  ;;  %v15472_v23 = vpop.f32.mrb[176].mxu0 }
 0x4b3   :  { %v4842_v34 = vpop.f32.mrb[138].mxu1  ;;  %11526 = vmatpush3.bf16.msra.mxu1 %v12298_v25  ;;  %v11689_v58 = vpop.f32.mrb[177].mxu0  ;;  %v3294_v25 = vadd.f32 %v15374_v53, %v14390_v22 }
 0x4b4   :  { %v11282_v7 = vpop.f32.mrb[139].mxu1  ;;  %v7494_v14 = vpop.f32.mrb[178].mxu0  ;;  %11527 = vmatprep.subr.bf16.mxu1 %v15993_v48 }
 0x4b5   :  { %v11690_v47 = vpop.f32.mrb[179].mxu0  ;;  %v3365_v36 = vmul.f32 %v15388_v51, %v3294_v25 }
 0x4b7   :  { %11528 = vmatpush3.bf16.msra.mxu1 %v12299_v59  ;;  %v3436_v7 = vadd.f32 %v15400_v45, %v3365_v36  ;;  %v12314_v36 = vld [vmem:[%s15878_s9 + $0x5a8] sm:$0xff]  }
 0x4b8   :  { %11529 = vmatprep.subr.bf16.mxu1 %v15993_v48 }
 0x4bb   :  { %11530 = vmatpush3.bf16.msra.mxu1 %v12300_v37 }
 0x4bc   :  { %11547 = vmatprep.subr.bf16.mxu1 %v15993_v48 }
 0x4be   :  { %11532 = vmatmul.mubr.msk.bf16.vlgmr.msra.gmra.mrb[192].mxu1 %vm1822_vm2, %v6406_v41  ;;  %v12309_v41 = vld [vmem:[%s15878_s9 + $0x560] sm:$0xff]  }
 0x4bf   :  { %11548 = vmatpush3.bf16.msra.mxu1 %v12301_v38  ;;  %11555 = vmatprep.mubr.msk.bf16.mxu1 %vm12363_vm3, %v15993_v48  ;;  %v3500_v38 = vmax.f32 %v3436_v7, 0.0  ;;  %v12315_v7 = vld [vmem:[%s15878_s9 + $0x5b0] sm:$0xff]  }
 0x4c0   :  { %11549 = vmatprep.subr.bf16.mxu1 %v15993_v48 }
 0x4c1   :  { %v4917_v54 = vpop.f32.mrb[140].mxu1  ;;  %v6718_v11 = vpack.c.bf16 %v3500_v38, %v3500_v38  ;;  %v12316_v38 = vld [vmem:[%s15878_s9 + $0x5b8] sm:$0xff]  }
 0x4c2   :  { %v4923_v27 = vadd.f32 %v4917_v54, %v4845_v3  ;;  %v11293_v16 = vpop.f32.mrb[141].mxu1  ;;  %v15497_v30 = vpop.f32.mrb[180].mxu0 }
 0x4c3   :  { %v4920_v18 = vpop.f32.mrb[142].mxu1  ;;  %11550 = vmatpush3.bf16.msra.mxu1 %v12302_v57  ;;  %v11713_v20 = vpop.f32.mrb[181].mxu0  ;;  %v3296_v57 = vadd.f32 %v15374_v53, %v14404_v31 }
 0x4c4   :  { %v11294_v1 = vpop.f32.mrb[143].mxu1  ;;  %v7650_v29 = vpop.f32.mrb[182].mxu0  ;;  %11551 = vmatprep.subr.bf16.mxu1 %v15993_v48 }
 0x4c5   :  { %v11714_v44 = vpop.f32.mrb[183].mxu0  ;;  %v3367_v54 = vmul.f32 %v15388_v51, %v3296_v57 }
 0x4c7   :  { %11552 = vmatpush3.bf16.msra.mxu1 %v12303_v35  ;;  %v3438_v1 = vadd.f32 %v15400_v45, %v3367_v54  ;;  %v12318_v54 = vld [vmem:[%s15878_s9 + $0x5e8] sm:$0xff]  }
 0x4c8   :  { %11553 = vmatprep.subr.bf16.mxu1 %v15993_v48 }
 0x4cb   :  { %11554 = vmatpush3.bf16.msra.mxu1 %v12304_v32 }
 0x4cc   :  { %11571 = vmatprep.subr.bf16.mxu1 %v15993_v48 }
 0x4ce   :  { %11556 = vmatmul.mubr.msk.bf16.vlgmr.msra.gmra.mrb[196].mxu1 %vm1822_vm2, %v6562_v49  ;;  %v12313_v49 = vld [vmem:[%s15878_s9 + $0x5a0] sm:$0xff]  }
 0x4cf   :  { %11572 = vmatpush3.bf16.msra.mxu1 %v12305_v17  ;;  %11579 = vmatprep.mubr.msk.bf16.mxu1 %vm12363_vm3, %v15993_v48  ;;  %v3502_v17 = vmax.f32 %v3438_v1, 0.0  ;;  %v12319_v1 = vld [vmem:[%s15878_s9 + $0x5f0] sm:$0xff]  }
 0x4d0   :  { %11573 = vmatprep.subr.bf16.mxu1 %v15993_v48 }
 0x4d1   :  { %v4995_v3 = vpop.f32.mrb[144].mxu1  ;;  %v6874_v25 = vpack.c.bf16 %v3502_v17, %v3502_v17  ;;  %v12320_v17 = vld [vmem:[%s15878_s9 + $0x5f8] sm:$0xff]  }
 0x4d2   :  { %v5001_v39 = vadd.f32 %v4995_v3, %v4923_v27  ;;  %v11305_v34 = vpop.f32.mrb[145].mxu1  ;;  %v15522_v22 = vpop.f32.mrb[184].mxu0 }
 0x4d3   :  { %v4998_v58 = vpop.f32.mrb[146].mxu1  ;;  %11574 = vmatpush3.bf16.msra.mxu1 %v12306_v8  ;;  %v11737_v59 = vpop.f32.mrb[185].mxu0  ;;  %v3298_v8 = vadd.f32 %v15374_v53, %v14416_v5 }
 0x4d4   :  { %v11306_v14 = vpop.f32.mrb[147].mxu1  ;;  %v7806_v47 = vpop.f32.mrb[186].mxu0  ;;  %11575 = vmatprep.subr.bf16.mxu1 %v15993_v48 }
 0x4d5   :  { %v11738_v37 = vpop.f32.mrb[187].mxu0  ;;  %v3369_v3 = vmul.f32 %v15388_v51, %v3298_v8 }
 0x4d7   :  { %11576 = vmatpush3.bf16.msra.mxu1 %v12307_v21  ;;  %v3440_v14 = vadd.f32 %v15400_v45, %v3369_v3  ;;  %v12322_v3 = vld [vmem:[%s15878_s9 + $0x628] sm:$0xff]  }
 0x4d8   :  { %11577 = vmatprep.subr.bf16.mxu1 %v15993_v48 }
 0x4db   :  { %11578 = vmatpush3.bf16.msra.mxu1 %v12308_v24 }
 0x4dc   :  { %11595 = vmatprep.subr.bf16.mxu1 %v15993_v48 }
 0x4de   :  { %11580 = vmatmul.mubr.msk.bf16.vlgmr.msra.gmra.mrb[200].mxu1 %vm1822_vm2, %v6718_v11  ;;  %v12317_v11 = vld [vmem:[%s15878_s9 + $0x5e0] sm:$0xff]  }
 0x4df   :  { %11596 = vmatpush3.bf16.msra.mxu1 %v12309_v41  ;;  %11603 = vmatprep.mubr.msk.bf16.mxu1 %vm12363_vm3, %v15993_v48  ;;  %v3504_v41 = vmax.f32 %v3440_v14, 0.0  ;;  %v12323_v14 = vld [vmem:[%s15878_s9 + $0x630] sm:$0xff]  }
 0x4e0   :  { %11597 = vmatprep.subr.bf16.mxu1 %v15993_v48 }
 0x4e1   :  { %v5073_v27 = vpop.f32.mrb[148].mxu1  ;;  %v7030_v57 = vpack.c.bf16 %v3504_v41, %v3504_v41  ;;  %v12324_v41 = vld [vmem:[%s15878_s9 + $0x638] sm:$0xff]  }
 0x4e2   :  { %v5079_v16 = vadd.f32 %v5073_v27, %v5001_v39  ;;  %v11317_v18 = vpop.f32.mrb[149].mxu1  ;;  %v15547_v31 = vpop.f32.mrb[188].mxu0 }
 0x4e3   :  { %v5076_v20 = vpop.f32.mrb[150].mxu1  ;;  %11598 = vmatpush3.bf16.msra.mxu1 %v12310_v0  ;;  %v11761_v35 = vpop.f32.mrb[189].mxu0  ;;  %v3300_v0 = vadd.f32 %v15374_v53, %v14434_v28 }
 0x4e4   :  { %v11318_v29 = vpop.f32.mrb[151].mxu1  ;;  %v7962_v44 = vpop.f32.mrb[190].mxu0  ;;  %11599 = vmatprep.subr.bf16.mxu1 %v15993_v48 }
 0x4e5   :  { %v11762_v32 = vpop.f32.mrb[191].mxu0  ;;  %v3371_v27 = vmul.f32 %v15388_v51, %v3300_v0 }
 0x4e7   :  { %11600 = vmatpush3.bf16.msra.mxu1 %v12311_v13  ;;  %v3442_v29 = vadd.f32 %v15400_v45, %v3371_v27  ;;  %v12326_v27 = vld [vmem:[%s15878_s9 + $0x668] sm:$0xff]  }
 0x4e8   :  { %11601 = vmatprep.subr.bf16.mxu1 %v15993_v48 }
 0x4eb   :  { %11602 = vmatpush3.bf16.msra.mxu1 %v12312_v63 }
 0x4ec   :  { %11619 = vmatprep.subr.bf16.mxu1 %v15993_v48 }
 0x4ee   :  { %11604 = vmatmul.mubr.msk.bf16.vlgmr.msra.gmra.mrb[204].mxu1 %vm1822_vm2, %v6874_v25  ;;  %v12321_v25 = vld [vmem:[%s15878_s9 + $0x620] sm:$0xff]  }
 0x4ef   :  { %11620 = vmatpush3.bf16.msra.mxu1 %v12313_v49  ;;  %11627 = vmatprep.mubr.msk.bf16.mxu1 %vm12363_vm3, %v15993_v48  ;;  %v3506_v49 = vmax.f32 %v3442_v29, 0.0 }
 0x4f0   :  { %11621 = vmatprep.subr.bf16.mxu1 %v15993_v48 }
 0x4f1   :  { %v5151_v39 = vpop.f32.mrb[152].mxu1  ;;  %v7186_v8 = vpack.c.bf16 %v3506_v49, %v3506_v49 }
 0x4f2   :  { %v5157_v34 = vadd.f32 %v5151_v39, %v5079_v16  ;;  %v11329_v58 = vpop.f32.mrb[153].mxu1  ;;  %v15572_v5 = vpop.f32.mrb[192].mxu0 }
 0x4f3   :  { %v5154_v59 = vpop.f32.mrb[154].mxu1  ;;  %11622 = vmatpush3.bf16.msra.mxu1 %v12314_v36  ;;  %v11785_v21 = vpop.f32.mrb[193].mxu0  ;;  %v3302_v36 = vadd.f32 %v15374_v53, %v14452_v50 }
 0x4f4   :  { %v11330_v47 = vpop.f32.mrb[155].mxu1  ;;  %v8118_v37 = vpop.f32.mrb[194].mxu0  ;;  %11623 = vmatprep.subr.bf16.mxu1 %v15993_v48 }
 0x4f5   :  { %v11786_v24 = vpop.f32.mrb[195].mxu0  ;;  %v3373_v39 = vmul.f32 %v15388_v51, %v3302_v36 }
 0x4f7   :  { %11624 = vmatpush3.bf16.msra.mxu1 %v12315_v7  ;;  %v3444_v47 = vadd.f32 %v15400_v45, %v3373_v39 }
 0x4f8   :  { %11625 = vmatprep.subr.bf16.mxu1 %v15993_v48 }
 0x4fb   :  { %11626 = vmatpush3.bf16.msra.mxu1 %v12316_v38 }
 0x4fc   :  { %11643 = vmatprep.subr.bf16.mxu1 %v15993_v48 }
 0x4fe   :  { %11628 = vmatmul.mubr.msk.bf16.vlgmr.msra.gmra.mrb[208].mxu1 %vm1822_vm2, %v7030_v57  ;;  %v12325_v57 = vld [vmem:[%s15878_s9 + $0x660] sm:$0xff]  }
 0x4ff   :  { %11644 = vmatpush3.bf16.msra.mxu1 %v12317_v11  ;;  %11651 = vmatprep.mubr.msk.bf16.mxu1 %vm12363_vm3, %v15993_v48  ;;  %v3508_v11 = vmax.f32 %v3444_v47, 0.0  ;;  %v12333_v47 = vld [vmem:[%s15878_s9 + $0x6e0] sm:$0xff]  }
 0x500   :  { %11645 = vmatprep.subr.bf16.mxu1 %v15993_v48 }
 0x501   :  { %v5229_v16 = vpop.f32.mrb[156].mxu1  ;;  %v7342_v0 = vpack.c.bf16 %v3508_v11, %v3508_v11 }
 0x502   :  { %v5235_v18 = vadd.f32 %v5229_v16, %v5157_v34  ;;  %v11341_v20 = vpop.f32.mrb[157].mxu1  ;;  %v15597_v28 = vpop.f32.mrb[196].mxu0 }
 0x503   :  { %v5232_v35 = vpop.f32.mrb[158].mxu1  ;;  %11646 = vmatpush3.bf16.msra.mxu1 %v12318_v54  ;;  %v11809_v13 = vpop.f32.mrb[197].mxu0  ;;  %v3304_v54 = vadd.f32 %v15374_v53, %v14466_v56 }
 0x504   :  { %v11342_v44 = vpop.f32.mrb[159].mxu1  ;;  %v8274_v32 = vpop.f32.mrb[198].mxu0  ;;  %11647 = vmatprep.subr.bf16.mxu1 %v15993_v48  ;;  %v12327_v13 = vld [vmem:[%s15878_s9 + $0x670] sm:$0xff]  }
 0x505   :  { %v11810_v63 = vpop.f32.mrb[199].mxu0  ;;  %v3375_v16 = vmul.f32 %v15388_v51, %v3304_v54  ;;  %v12328_v32 = vld [vmem:[%s15878_s9 + $0x678] sm:$0xff]  }
 0x507   :  { %11648 = vmatpush3.bf16.msra.mxu1 %v12319_v1  ;;  %v3446_v1 = vadd.f32 %v15400_v45, %v3375_v16 }
 0x508   :  { %11649 = vmatprep.subr.bf16.mxu1 %v15993_v48 }
 0x509   :  { %v3510_v63 = vmax.f32 %v3446_v1, 0.0 }
 0x50b   :  { %11650 = vmatpush3.bf16.msra.mxu1 %v12320_v17  ;;  %v12329_v17 = vld [vmem:[%s15878_s9 + $0x6a0] sm:$0xff]   ;;  %v7498_v49 = vpack.c.bf16 %v3510_v63, %v3510_v63  ;;  %v12339_v63 = vld [vmem:[%s15878_s9 + $0x730] sm:$0xff]  }
 0x50c   :  { %11667 = vmatprep.subr.bf16.mxu1 %v15993_v48 }
 0x50e   :  { %11652 = vmatmul.mubr.msk.bf16.vlgmr.msra.gmra.mrb[212].mxu1 %vm1822_vm2, %v7186_v8 }
 0x50f   :  { %11668 = vmatpush3.bf16.msra.mxu1 %v12321_v25  ;;  %11675 = vmatprep.mubr.msk.bf16.mxu1 %vm12363_vm3, %v15993_v48  ;;  %v3306_v25 = vadd.f32 %v15374_v53, %v14478_v55 }
 0x510   :  { %11669 = vmatprep.subr.bf16.mxu1 %v15993_v48 }
 0x511   :  { %v5307_v34 = vpop.f32.mrb[160].mxu1  ;;  %v3377_v8 = vmul.f32 %v15388_v51, %v3306_v25 }
 0x512   :  { %v5313_v58 = vadd.f32 %v5307_v34, %v5235_v18  ;;  %v11353_v59 = vpop.f32.mrb[161].mxu1  ;;  %v15622_v50 = vpop.f32.mrb[200].mxu0  ;;  %v12331_v34 = vld [vmem:[%s15878_s9 + $0x6b0] sm:$0xff]  }
 0x513   :  { %v5310_v21 = vpop.f32.mrb[162].mxu1  ;;  %11670 = vmatpush3.bf16.msra.mxu1 %v12322_v3  ;;  %v11833_v7 = vpop.f32.mrb[201].mxu0 }
 0x514   :  { %v11354_v37 = vpop.f32.mrb[163].mxu1  ;;  %v8430_v24 = vpop.f32.mrb[202].mxu0  ;;  %11671 = vmatprep.subr.bf16.mxu1 %v15993_v48  ;;  %v12332_v7 = vld [vmem:[%s15878_s9 + $0x6b8] sm:$0xff]  }
 0x515   :  { %v11834_v38 = vpop.f32.mrb[203].mxu0  ;;  %v3308_v24 = vadd.f32 %v15374_v53, %v14496_v60 }
 0x517   :  { %11672 = vmatpush3.bf16.msra.mxu1 %v12323_v14  ;;  %v3379_v38 = vmul.f32 %v15388_v51, %v3308_v24 }
 0x518   :  { %11673 = vmatprep.subr.bf16.mxu1 %v15993_v48 }
 0x519   :  { %v3450_v54 = vadd.f32 %v15400_v45, %v3379_v38 }
 0x51b   :  { %11674 = vmatpush3.bf16.msra.mxu1 %v12324_v41 }
 0x51c   :  { %11691 = vmatprep.subr.bf16.mxu1 %v15993_v48 }
 0x51e   :  { %11676 = vmatmul.mubr.msk.bf16.vlgmr.msra.gmra.mrb[216].mxu1 %vm1822_vm2, %v7342_v0  ;;  %v12335_v0 = vld [vmem:[%s15878_s9 + $0x6f0] sm:$0xff]  }
 0x51f   :  { %11692 = vmatpush3.bf16.msra.mxu1 %v12325_v57  ;;  %11699 = vmatprep.mubr.msk.bf16.mxu1 %vm12363_vm3, %v15993_v48 }
 0x520   :  { %11693 = vmatprep.subr.bf16.mxu1 %v15993_v48 }
 0x521   :  { %v5385_v18 = vpop.f32.mrb[164].mxu1 }
 0x522   :  { %v5391_v20 = vadd.f32 %v5385_v18, %v5313_v58  ;;  %v11365_v35 = vpop.f32.mrb[165].mxu1  ;;  %v3448_v58 = vadd.f32 %v15400_v45, %v3377_v8  ;;  %v12336_v18 = vld [vmem:[%s15878_s9 + $0x6f8] sm:$0xff]  }
 0x523   :  { %v5388_v56 = vpop.f32.mrb[166].mxu1  ;;  %11694 = vmatpush3.bf16.msra.mxu1 %v12326_v27  ;;  %v12337_v35 = vld [vmem:[%s15878_s9 + $0x720] sm:$0xff]  }
 0x524   :  { %v11366_v29 = vpop.f32.mrb[167].mxu1  ;;  %11695 = vmatprep.subr.bf16.mxu1 %v15993_v48  ;;  %v5469_v44 = vadd.f32 %v15003_v42, %v5391_v20  ;;  %v12330_v42 = vld [vmem:[%s15878_s9 + $0x6a8] sm:$0xff]   ;;  %v3512_v14 = vmax.f32 %v3448_v58, 0.0  ;;  %v3514_v20 = vmax.f32 %v3450_v54, 0.0  ;;  %v12347_v54 = vld [vmem:[%s15878_s9 + $0x7b0] sm:$0xff]  }
 0x526   :  { %v7654_v37 = vpack.c.bf16 %v3512_v14, %v3512_v14  ;;  %v7810_v56 = vpack.c.bf16 %v3514_v20, %v3514_v20  ;;  %v12348_v20 = vld [vmem:[%s15878_s9 + $0x7b8] sm:$0xff]  }
 0x527   :  { %11696 = vmatpush3.bf16.msra.mxu1 %v12327_v13  ;;  %v3310_v13 = vadd.f32 %v15374_v53, %v14514_v26 }
 0x528   :  { %11697 = vmatprep.subr.bf16.mxu1 %v15993_v48 }
 0x529   :  { %v3381_v1 = vmul.f32 %v15388_v51, %v3310_v13 }
 0x52b   :  { %11698 = vmatpush3.bf16.msra.mxu1 %v12328_v32 }
 0x52c   :  { %11715 = vmatprep.subr.bf16.mxu1 %v15993_v48 }
 0x52e   :  { %11700 = vmatmul.mubr.msk.bf16.vlgmr.msra.gmra.mrb[220].mxu1 %vm1822_vm2, %v7498_v49 }
 0x52f   :  { %11716 = vmatpush3.bf16.msra.mxu1 %v12329_v17  ;;  %11723 = vmatprep.mubr.msk.bf16.mxu1 %vm12363_vm3, %v15993_v48  ;;  %v3452_v17 = vadd.f32 %v15400_v45, %v3381_v1 }
 0x530   :  { %11717 = vmatprep.subr.bf16.mxu1 %v15993_v48 }
 0x531   :  { %v5541_v36 = vpop.f32.mrb[168].mxu1  ;;  %v3516_v8 = vmax.f32 %v3452_v17, 0.0 }
 0x532   :  { %v5547_v3 = vadd.f32 %v5541_v36, %v5469_v44  ;;  %v11389_v39 = vpop.f32.mrb[169].mxu1  ;;  %v12341_v36 = vld [vmem:[%s15878_s9 + $0x760] sm:$0xff]  }
 0x533   :  { %v5544_v55 = vpop.f32.mrb[170].mxu1  ;;  %11718 = vmatpush3.bf16.msra.mxu1 %v12330_v42  ;;  %v12340_v42 = vld [vmem:[%s15878_s9 + $0x738] sm:$0xff]   ;;  %v3312_v39 = vadd.f32 %v15374_v53, %v14528_v9 }
 0x534   :  { %v11390_v59 = vpop.f32.mrb[171].mxu1  ;;  %11719 = vmatprep.subr.bf16.mxu1 %v15993_v48  ;;  %v5625_v21 = vadd.f32 %v15051_v46, %v5547_v3  ;;  %v12334_v46 = vld [vmem:[%s15878_s9 + $0x6e8] sm:$0xff]   ;;  %v7966_v3 = vpack.c.bf16 %v3516_v8, %v3516_v8 }
 0x535   :  { %v3383_v55 = vmul.f32 %v15388_v51, %v3312_v39 }
 0x537   :  { %11720 = vmatpush3.bf16.msra.mxu1 %v12331_v34 }
 0x538   :  { %11721 = vmatprep.subr.bf16.mxu1 %v15993_v48 }
 0x53b   :  { %11722 = vmatpush3.bf16.msra.mxu1 %v12332_v7  ;;  %v3454_v7 = vadd.f32 %v15400_v45, %v3383_v55 }
 0x53c   :  { %11739 = vmatprep.subr.bf16.mxu1 %v15993_v48 }
 0x53d   :  { %v3518_v24 = vmax.f32 %v3454_v7, 0.0 }
 0x53e   :  { %11724 = vmatmul.mubr.msk.bf16.vlgmr.msra.gmra.mrb[224].mxu1 %vm1822_vm2, %v7654_v37  ;;  %v12344_v37 = vld [vmem:[%s15878_s9 + $0x778] sm:$0xff]  }
 0x53f   :  { %11740 = vmatpush3.bf16.msra.mxu1 %v12333_v47  ;;  %11747 = vmatprep.mubr.msk.bf16.mxu1 %vm12363_vm3, %v15993_v48  ;;  %v8122_v38 = vpack.c.bf16 %v3518_v24, %v3518_v24 }
 0x540   :  { %11741 = vmatprep.subr.bf16.mxu1 %v15993_v48 }
 0x541   :  { %v5697_v41 = vpop.f32.mrb[172].mxu1 }
 0x542   :  { %v5703_v11 = vadd.f32 %v5697_v41, %v5625_v21  ;;  %v11413_v57 = vpop.f32.mrb[173].mxu1  ;;  %v12343_v21 = vld [vmem:[%s15878_s9 + $0x770] sm:$0xff]   ;;  %v3314_v41 = vadd.f32 %v15374_v53, %v14540_v15 }
 0x543   :  { %v5700_v60 = vpop.f32.mrb[174].mxu1  ;;  %11742 = vmatpush3.bf16.msra.mxu1 %v12334_v46  ;;  %v12345_v46 = vld [vmem:[%s15878_s9 + $0x7a0] sm:$0xff]  }
 0x544   :  { %v11414_v27 = vpop.f32.mrb[175].mxu1  ;;  %11743 = vmatprep.subr.bf16.mxu1 %v15993_v48  ;;  %v5781_v16 = vadd.f32 %v15099_v33, %v5703_v11  ;;  %v12338_v33 = vld [vmem:[%s15878_s9 + $0x728] sm:$0xff]   ;;  %v3385_v11 = vmul.f32 %v15388_v51, %v3314_v41 }
 0x546   :  { %v3456_v27 = vadd.f32 %v15400_v45, %v3385_v11  ;;  %v8522_v11 = vld [vmem:[%s15882_s11 + $0x8] sm:$0xff] }
 0x547   :  { %11744 = vmatpush3.bf16.msra.mxu1 %v12335_v0 }
 0x548   :  { %11745 = vmatprep.subr.bf16.mxu1 %v15993_v48 }
 0x54b   :  { %11746 = vmatpush3.bf16.msra.mxu1 %v12336_v18 }
 0x54c   :  { %11763 = vmatprep.subr.bf16.mxu1 %v15993_v48 }
 0x54e   :  { %11748 = vmatmul.mubr.msk.bf16.vlgmr.msra.gmra.mrb[228].mxu1 %vm1822_vm2, %v7810_v56  ;;  %v12349_v56 = vld [vmem:[%s15878_s9 + $0x7e0] sm:$0xff]  }
 0x54f   :  { %11764 = vmatpush3.bf16.msra.mxu1 %v12337_v35  ;;  %11771 = vmatprep.mubr.msk.bf16.mxu1 %vm12363_vm3, %v15993_v48  ;;  %v3520_v35 = vmax.f32 %v3456_v27, 0.0 }
 0x550   :  { %11765 = vmatprep.subr.bf16.mxu1 %v15993_v48 }
 0x551   :  { %v5853_v29 = vpop.f32.mrb[176].mxu1  ;;  %v8278_v13 = vpack.c.bf16 %v3520_v35, %v3520_v35  ;;  %v8528_v35 = vld [vmem:[%s15882_s11 + $0x38] sm:$0xff] }
 0x552   :  { %v5859_v44 = vadd.f32 %v5853_v29, %v5781_v16  ;;  %v11437_v32 = vpop.f32.mrb[177].mxu1 }
 0x553   :  { %v5856_v26 = vpop.f32.mrb[178].mxu1  ;;  %11766 = vmatpush3.bf16.msra.mxu1 %v12338_v33  ;;  %v3316_v33 = vadd.f32 %v15374_v53, %v14558_v2  ;;  %v12351_v53 = vld [vmem:[%s15878_s9 + $0x7f0] sm:$0xff]  }
 0x554   :  { %v11438_v49 = vpop.f32.mrb[179].mxu1  ;;  %11767 = vmatprep.subr.bf16.mxu1 %v15993_v48  ;;  %v5937_v25 = vadd.f32 %v15147_v43, %v5859_v44  ;;  %v12342_v43 = vld [vmem:[%s15878_s9 + $0x768] sm:$0xff]  }
 0x555   :  { %v3387_v1 = vmul.f32 %v15388_v51, %v3316_v33  ;;  %v12352_v51 = vld [vmem:[%s15878_s9 + $0x7f8] sm:$0xff]  }
 0x557   :  { %11768 = vmatpush3.bf16.msra.mxu1 %v12339_v63  ;;  %v3458_v26 = vadd.f32 %v15400_v45, %v3387_v1  ;;  %v8529_v1 = vld [vmem:[%s15882_s11 + $0x40] sm:$0xff] }
 0x558   :  { %11769 = vmatprep.subr.bf16.mxu1 %v15993_v48 }
 0x559   :  { %v3522_v49 = vmax.f32 %v3458_v26, 0.0  ;;  %v8534_v26 = vld [vmem:[%s15882_s11 + $0x68] sm:$0xff] }
 0x55b   :  { %11770 = vmatpush3.bf16.msra.mxu1 %v12340_v42 }
 0x55c   :  { %11787 = vmatprep.subr.bf16.mxu1 %v15993_v48 }
 0x55e   :  { %11772 = vmatmul.mubr.msk.bf16.vlgmr.msra.gmra.mrb[232].mxu1 %vm1822_vm2, %v7966_v3 }
 0x55f   :  { %11788 = vmatpush3.bf16.msra.mxu1 %v12341_v36  ;;  %11795 = vmatprep.mubr.msk.bf16.mxu1 %vm12363_vm3, %v15993_v48 }
 0x560   :  { %11789 = vmatprep.subr.bf16.mxu1 %v15993_v48 }
 0x561   :  { %v6009_v34 = vpop.f32.mrb[180].mxu1 }
 0x562   :  { %v6015_v58 = vadd.f32 %v6009_v34, %v5937_v25  ;;  %v11461_v59 = vpop.f32.mrb[181].mxu1  ;;  %v8434_v25 = vpack.c.bf16 %v3522_v49, %v3522_v49 }
 0x563   :  { %v6012_v9 = vpop.f32.mrb[182].mxu1  ;;  %11790 = vmatpush3.bf16.msra.mxu1 %v12342_v43 }
 0x564   :  { %v11462_v14 = vpop.f32.mrb[183].mxu1  ;;  %11791 = vmatprep.subr.bf16.mxu1 %v15993_v48  ;;  %v6093_v47 = vadd.f32 %v15195_v10, %v6015_v58  ;;  %v12346_v10 = vld [vmem:[%s15878_s9 + $0x7a8] sm:$0xff]  }
 0x567   :  { %11792 = vmatpush3.bf16.msra.mxu1 %v12343_v21 }
 0x568   :  { %11793 = vmatprep.subr.bf16.mxu1 %v15993_v48 }
 0x56b   :  { %11794 = vmatpush3.bf16.msra.mxu1 %v12344_v37 }
 0x56c   :  { %11811 = vmatprep.subr.bf16.mxu1 %v15993_v48 }
 0x56e   :  { %11796 = vmatmul.mubr.msk.bf16.vlgmr.msra.gmra.mrb[236].mxu1 %vm1822_vm2, %v8122_v38 }
 0x56f   :  { %11812 = vmatpush3.bf16.msra.mxu1 %v12345_v46  ;;  %11819 = vmatprep.mubr.msk.bf16.mxu1 %vm12363_vm3, %v15993_v48 }
 0x570   :  { %11813 = vmatprep.subr.bf16.mxu1 %v15993_v48 }
 0x571   :  { %v6165_v57 = vpop.f32.mrb[184].mxu1 }
 0x572   :  { %v6171_v60 = vadd.f32 %v6165_v57, %v6093_v47  ;;  %v11485_v0 = vpop.f32.mrb[185].mxu1 }
 0x573   :  { %v6168_v15 = vpop.f32.mrb[186].mxu1  ;;  %11814 = vmatpush3.bf16.msra.mxu1 %v12346_v10  ;;  %v12364_v10 = vmov 0.0|0.0   ;;  %v8525_v0 = vld [vmem:[%s15882_s11 + $0x20] sm:$0xff] }
 0x574   :  { %v11486_v16 = vpop.f32.mrb[187].mxu1  ;;  %11815 = vmatprep.subr.bf16.mxu1 %v15993_v48  ;;  %v6249_v18 = vadd.f32 %v15243_v61, %v6171_v60  ;;  %v12350_v61 = vld [vmem:[%s15878_s9 + $0x7e8] sm:$0xff]   ;;  %11938 = vmatprep.subr.bf16.mxu0 %v12364_v10  ;;  %v8524_v60 = vld [vmem:[%s15882_s11 + $0x18] sm:$0xff] }
 0x575   :  { %v8526_v15 = vld [vmem:[%s15882_s11 + $0x28] sm:$0xff] }
 0x577   :  { %11816 = vmatpush3.bf16.msra.mxu1 %v12347_v54  ;;  %v11945_v54 = vpack.c.bf16 %v8526_v15, %v8525_v0 }
 0x578   :  { %11817 = vmatprep.subr.bf16.mxu1 %v15993_v48 }
 0x57b   :  { %11818 = vmatpush3.bf16.msra.mxu1 %v12348_v20  ;;  %v8527_v20 = vld [vmem:[%s15882_s11 + $0x30] sm:$0xff] }
 0x57c   :  { %11835 = vmatprep.subr.bf16.mxu1 %v15993_v48 }
 0x57e   :  { %11820 = vmatmul.mubr.msk.bf16.vlgmr.msra.gmra.mrb[240].mxu1 %vm1822_vm2, %v8278_v13  ;;  %v11948_v13 = vpack.c.bf16 %v8528_v35, %v8527_v20 }
 0x57f   :  { %11836 = vmatpush3.bf16.msra.mxu1 %v12349_v56  ;;  %11843 = vmatprep.mubr.msk.bf16.mxu1 %vm12363_vm3, %v15993_v48 }
 0x580   :  { %11837 = vmatprep.subr.bf16.mxu1 %v15993_v48 }
 0x581   :  { %v6321_v29 = vpop.f32.mrb[188].mxu1 }
 0x582   :  { %v6327_v44 = vadd.f32 %v6321_v29, %v6249_v18  ;;  %v11509_v32 = vpop.f32.mrb[189].mxu1  ;;  %v8530_v29 = vld [vmem:[%s15882_s11 + $0x48] sm:$0xff] }
 0x583   :  { %v6324_v2 = vpop.f32.mrb[190].mxu1  ;;  %11838 = vmatpush3.bf16.msra.mxu1 %v12350_v61  ;;  %v8531_v32 = vld [vmem:[%s15882_s11 + $0x50] sm:$0xff] }
 0x584   :  { %v11510_v63 = vpop.f32.mrb[191].mxu1  ;;  %11839 = vmatprep.subr.bf16.mxu1 %v15993_v48  ;;  %v6405_v17 = vadd.f32 %v15282_v6, %v6327_v44  ;;  %v11951_v44 = vpack.c.bf16 %v8530_v29, %v8529_v1  ;;  %v8532_v2 = vld [vmem:[%s15882_s11 + $0x58] sm:$0xff]  ;;  %v9850_v1 = vld [vmem:[%s15883_s10] ss:$0 sm:$0xff] }
 0x587   :  { %11840 = vmatpush3.bf16.msra.mxu1 %v12351_v53  ;;  %v8533_v53 = vld [vmem:[%s15882_s11 + $0x60] sm:$0xff] }
 0x588   :  { %11841 = vmatprep.subr.bf16.mxu1 %v15993_v48  ;;  %v11957_v63 = vpack.c.bf16 %v8534_v26, %v8533_v53 }
 0x58b   :  { %11842 = vmatpush3.bf16.msra.mxu1 %v12352_v51 }
 0x58e   :  { %11844 = vmatmul.mubr.msk.bf16.vlgmr.msra.gmra.mrb[244].mxu1 %vm1822_vm2, %v8434_v25  ;;  %v8535_v25 = vld [vmem:[%s15882_s11 + $0x70] sm:$0xff] }
 0x591   :  { %v6477_v42 = vpop.f32.mrb[192].mxu1 }
 0x592   :  { %v6483_v8 = vadd.f32 %v6477_v42, %v6405_v17  ;;  %v11533_v45 = vpop.f32.mrb[193].mxu1  ;;  %v8536_v42 = vld [vmem:[%s15882_s11 + $0x78] sm:$0xff] }
 0x593   :  { %v6480_v36 = vpop.f32.mrb[194].mxu1  ;;  %v11960_v45 = vpack.c.bf16 %v8536_v42, %v8535_v25 }
 0x594   :  { %v11534_v3 = vpop.f32.mrb[195].mxu1  ;;  %v6561_v39 = vadd.f32 %v15307_v19, %v6483_v8 }
 0x5a1   :  { %v6633_v6 = vpop.f32.mrb[196].mxu1 }
 0x5a2   :  { %v6639_v43 = vadd.f32 %v6633_v6, %v6561_v39  ;;  %v11557_v55 = vpop.f32.mrb[197].mxu1 }
 0x5a3   :  { %v6636_v34 = vpop.f32.mrb[198].mxu1 }
 0x5a4   :  { %v11558_v58 = vpop.f32.mrb[199].mxu1  ;;  %v6717_v59 = vadd.f32 %v15332_v62, %v6639_v43  ;;  %v8521_v62 = vld [vmem:[%s15882_s11] sm:$0xff] }
 0x5a5   :  { %v11939_v57 = vpack.c.bf16 %v8522_v11, %v8521_v62 }
 0x5a7   :  { %11940 = vmatpush3.bf16.msra.mxu0 %v11939_v57 }
 0x5a8   :  { %11941 = vmatprep.subr.bf16.mxu0 %v12364_v10 }
 0x5b1   :  { %v6789_v9 = vpop.f32.mrb[200].mxu1 }
 0x5b2   :  { %v6795_v48 = vadd.f32 %v6789_v9, %v6717_v59  ;;  %v11581_v21 = vpop.f32.mrb[201].mxu1 }
 0x5b3   :  { %v6792_v7 = vpop.f32.mrb[202].mxu1 }
 0x5b4   :  { %v11582_v14 = vpop.f32.mrb[203].mxu1  ;;  %v6873_v47 = vadd.f32 %v15357_v12, %v6795_v48  ;;  %v8523_v12 = vld [vmem:[%s15882_s11 + $0x10] sm:$0xff] }
 0x5c1   :  { %v6945_v37 = vpop.f32.mrb[204].mxu1 }
 0x5c2   :  { %v6951_v24 = vadd.f32 %v6945_v37, %v6873_v47  ;;  %v11605_v46 = vpop.f32.mrb[205].mxu1 }
 0x5c3   :  { %v6948_v38 = vpop.f32.mrb[206].mxu1 }
 0x5c4   :  { %v11606_v41 = vpop.f32.mrb[207].mxu1  ;;  %v7029_v19 = vadd.f32 %v15392_v4, %v6951_v24  ;;  %v11942_v4 = vpack.c.bf16 %v8524_v60, %v8523_v12 }
 0x5c6   :  { %11943 = vmatpush3.bf16.msra.mxu0 %v11942_v4 }
 0x5c7   :  { %11944 = vmatprep.subr.bf16.mxu0 %v12364_v10 }
 0x5ca   :  { %11946 = vmatpush3.bf16.msra.mxu0 %v11945_v54 }
 0x5cb   :  { %11947 = vmatprep.subr.bf16.mxu0 %v12364_v10 }
 0x5ce   :  { %11949 = vmatpush3.bf16.msra.mxu0 %v11948_v13 }
 0x5cf   :  { %11950 = vmatprep.subr.bf16.mxu0 %v12364_v10 }
 0x5d1   :  { %v7101_v27 = vpop.f32.mrb[208].mxu1 }
 0x5d2   :  { %v7107_v16 = vadd.f32 %v7101_v27, %v7029_v19  ;;  %v11629_v18 = vpop.f32.mrb[209].mxu1  ;;  %11952 = vmatpush3.bf16.msra.mxu0 %v11951_v44 }
 0x5d3   :  { %v7104_v56 = vpop.f32.mrb[210].mxu1  ;;  %11953 = vmatprep.subr.bf16.mxu0 %v12364_v10 }
 0x5d4   :  { %v11630_v33 = vpop.f32.mrb[211].mxu1  ;;  %v7185_v61 = vadd.f32 %v15422_v52, %v7107_v16  ;;  %v11954_v52 = vpack.c.bf16 %v8532_v2, %v8531_v32 }
 0x5d6   :  { %11955 = vmatpush3.bf16.msra.mxu0 %v11954_v52 }
 0x5d7   :  { %11956 = vmatprep.subr.bf16.mxu0 %v12364_v10 }
 0x5da   :  { %11958 = vmatpush3.bf16.msra.mxu0 %v11957_v63 }
 0x5db   :  { %11959 = vmatprep.subr.bf16.mxu0 %v12364_v10 }
 0x5de   :  { %11961 = vmatpush3.bf16.msra.mxu0 %v11960_v45 }
 0x5e1   :  { %v7257_v17 = vpop.f32.mrb[212].mxu1 }
 0x5e2   :  { %v7263_v51 = vadd.f32 %v7257_v17, %v7185_v61  ;;  %v11653_v49 = vpop.f32.mrb[213].mxu1 }
 0x5e3   :  { %v7260_v8 = vpop.f32.mrb[214].mxu1 }
 0x5e4   :  { %v11654_v36 = vpop.f32.mrb[215].mxu1  ;;  %v7341_v3 = vadd.f32 %v15447_v40, %v7263_v51 }
 0x5f1   :  { %v7413_v39 = vpop.f32.mrb[216].mxu1 }
 0x5f2   :  { %v7419_v6 = vadd.f32 %v7413_v39, %v7341_v3  ;;  %v11677_v43 = vpop.f32.mrb[217].mxu1 }
 0x5f3   :  { %v7416_v55 = vpop.f32.mrb[218].mxu1 }
 0x5f4   :  { %v11678_v34 = vpop.f32.mrb[219].mxu1  ;;  %v7497_v58 = vadd.f32 %v15472_v23, %v7419_v6 }
 0x601   :  { %v7569_v59 = vpop.f32.mrb[220].mxu1 }
 0x602   :  { %v7575_v9 = vadd.f32 %v7569_v59, %v7497_v58  ;;  %v11701_v48 = vpop.f32.mrb[221].mxu1 }
 0x603   :  { %v7572_v21 = vpop.f32.mrb[222].mxu1 }
 0x604   :  { %v11702_v7 = vpop.f32.mrb[223].mxu1  ;;  %v7653_v14 = vadd.f32 %v15497_v30, %v7575_v9 }
 0x611   :  { %v7725_v47 = vpop.f32.mrb[224].mxu1 }
 0x612   :  { %v7731_v37 = vadd.f32 %v7725_v47, %v7653_v14  ;;  %v11725_v24 = vpop.f32.mrb[225].mxu1 }
 0x613   :  { %v7728_v46 = vpop.f32.mrb[226].mxu1 }
 0x614   :  { %v11726_v40 = vpop.f32.mrb[227].mxu1  ;;  %v7809_v38 = vadd.f32 %v15522_v22, %v7731_v37 }
 0x621   :  { %v7881_v41 = vpop.f32.mrb[228].mxu1 }
 0x622   :  { %v7887_v19 = vadd.f32 %v7881_v41, %v7809_v38  ;;  %v11749_v10 = vpop.f32.mrb[229].mxu1 }
 0x623   :  { %v7884_v62 = vpop.f32.mrb[230].mxu1 }
 0x624   :  { %v11750_v11 = vpop.f32.mrb[231].mxu1  ;;  %v7965_v23 = vadd.f32 %v15547_v31, %v7887_v19 }
 0x631   :  { %v8037_v12 = vpop.f32.mrb[232].mxu1 }
 0x632   :  { %v8043_v57 = vadd.f32 %v8037_v12, %v7965_v23  ;;  %v11773_v60 = vpop.f32.mrb[233].mxu1 }
 0x633   :  { %v8040_v4 = vpop.f32.mrb[234].mxu1 }
 0x634   :  { %v11774_v0 = vpop.f32.mrb[235].mxu1  ;;  %v8121_v30 = vadd.f32 %v15572_v5, %v8043_v57 }
 0x641   :  { %v8193_v15 = vpop.f32.mrb[236].mxu1 }
 0x642   :  { %v8199_v54 = vadd.f32 %v8193_v15, %v8121_v30  ;;  %v11797_v27 = vpop.f32.mrb[237].mxu1 }
 0x643   :  { %v8196_v16 = vpop.f32.mrb[238].mxu1 }
 0x644   :  { %v11798_v18 = vpop.f32.mrb[239].mxu1  ;;  %v8277_v22 = vadd.f32 %v15597_v28, %v8199_v54  ;;  %v9851_v28 = vld [vmem:[%s15884_s12] ss:$0 sm:$0xff] }
 0x651   :  { %v8349_v20 = vpop.f32.mrb[240].mxu1 }
 0x652   :  { %v8355_v35 = vadd.f32 %v8349_v20, %v8277_v22  ;;  %v11821_v56 = vpop.f32.mrb[241].mxu1 }
 0x653   :  { %v8352_v13 = vpop.f32.mrb[242].mxu1 }
 0x654   :  { %v11822_v33 = vpop.f32.mrb[243].mxu1  ;;  %v8433_v31 = vadd.f32 %v15622_v50, %v8355_v35 }
 0x661   :  { %v8505_v61 = vpop.f32.mrb[244].mxu1 }
 0x662   :  { %v8511_v5 = vadd.f32 %v8505_v61, %v8433_v31  ;;  %v11845_v29 = vpop.f32.mrb[245].mxu1 }
 0x663   :  { %v8508_v44 = vpop.f32.mrb[246].mxu1 }
 0x664   :  { %v8519_v32 = vadd.f32 %v9850_v1, %v8511_v5  ;;  %v11846_v2 = vpop.f32.mrb[247].mxu1 }
 0x666   :  { %v8520_v52 = vmax.f32 %v8519_v32, 0.0 }
 0x668   :  { %11880 = vmatmul.mubr.f32.vlgmr.msra.gmra.mrb[122].mxu0 %v8520_v52 }
 0x73b   :  { %v8610_v53 = vpop.f32.mrb[122].mxu0 }
 0x73c   :  { %v8611_v26 = vadd.f32 %v9851_v28, %v8610_v53  ;;  %v11881_v50 = vpop.f32.mrb[123].mxu0 }
 0x73e   :  { %8615 = vst.msk [vmem:[%s15885_s13] sm:$0xff] %vm8614_vm4, %v8611_v26 }

</bundles_post_ra>
